<compile_context>
chip_gen: v7x
topology: tpu7x:2x2x1
jax: 0.10.0
libtpu: 0.0.40
codegen_flags: <defaults>
</compile_context>

<pallas_src>
import math
import functools

import jax
import jax.numpy as jnp
from jax import lax
from jax.experimental import pallas as pl
from jax.experimental.pallas import tpu as pltpu


def _mem_kernel(shrink_thres, store_att):
    """One row-tile of the MemoryUnit forward: linear -> softmax -> (shrink + L1) -> linear."""

    def kernel(x_ref, w1_ref, b1_ref, w2_ref, b2_ref, out_ref, *maybe_att_ref):
        # ---- l1: a = x @ W1^T + b1  (W1 pre-transposed to (fea, mem)) ----
        x = x_ref[...]
        if x.dtype != w1_ref.dtype:
            x = x.astype(w1_ref.dtype)        # e.g. f32 activations with bf16 weights
        a = jnp.dot(x, w1_ref[...], preferred_element_type=jnp.float32)
        a = a + b1_ref[...].astype(jnp.float32)

        # ---- softmax over the memory dimension (dim=1) ----
        m = jnp.max(a, axis=-1, keepdims=True)
        e = jnp.exp(a - m)
        denom = jnp.sum(e, axis=-1, keepdims=True)
        # Exact reciprocal: (TM,1) column -> exactness is perf-free; approx would leak a
        # ~1e-4 relative error into 'att' when shrink_thres == 0 (no L1 renorm to cancel it).
        a = e * pl.reciprocal(denom, approx=False)

        if shrink_thres > 0:
            # hard_shrink_relu exactly as the PyTorch reference:
            #   relu(a - lambd) * a / (|a - lambd| + 1e-12)
            lambd = jnp.float32(shrink_thres)
            eps = jnp.float32(1e-12)
            shifted = a - lambd
            a = jnp.maximum(shifted, jnp.float32(0.0)) * a / (jnp.abs(shifted) + eps)
            # F.normalize(p=1, dim=1)
            l1 = jnp.maximum(jnp.sum(jnp.abs(a), axis=-1, keepdims=True),
                             jnp.float32(1e-12))
            a = a * pl.reciprocal(l1, approx=False)

        if store_att:
            maybe_att_ref[0][...] = a.astype(maybe_att_ref[0].dtype)

        # ---- l2: out = att @ W2^T + b2  (W2 pre-transposed to (mem, fea)) ----
        out = jnp.dot(a.astype(w2_ref.dtype), w2_ref[...],
                      preferred_element_type=jnp.float32)
        out = out + b2_ref[...].astype(jnp.float32)
        out_ref[...] = out.astype(out_ref.dtype)

    return kernel


def prepare_mem_params(w1, b1, w2, b2, param_dtype=None):
    """One-time parameter prep (hoisted out of the per-call forward path).

    Pre-transposes the nn.Linear weights so the kernel runs plain `x @ W`, keeps the
    biases as f32 (1, dim) rows, and optionally casts the weights.  On v6e/v7x pass
    param_dtype=jnp.bfloat16 for ~3x MXU throughput and half the weight VMEM/HBM
    footprint (v7x has no int8 MXU path -- bf16/fp8 only).  The f32 default keeps
    bit-accuracy for the checks below.
    """
    mem, fea = w1.shape
    w1_t = jnp.transpose(w1)            # (fea, mem)
    w2_t = jnp.transpose(w2)            # (mem, fea)
    if param_dtype is not None:
        w1_t = w1_t.astype(param_dtype)
        w2_t = w2_t.astype(param_dtype)
    return (w1_t,
            b1.reshape(1, mem).astype(jnp.float32),
            w2_t,
            b2.reshape(1, fea).astype(jnp.float32))


def _vmem_budget_bytes():
    """Generation-aware scoped-VMEM limit and tile-sizing budget.

    ~78% of per-core VMEM: ~100 MiB on v5e/v6e (128 MiB physical) and ~50 MiB on v7x
    (64 MiB per TensorCore), leaving headroom for compiler-internal scratch.
    """
    try:
        cap = int(pltpu.get_tpu_info().vmem_capacity_bytes)
    except Exception:
        cap = 64 * 1024 * 1024          # conservative fallback (v7x per-TC size)
    limit = (cap * 25) // 32            # ~78% of physical
    tile_budget = max(limit - 6 * 1024 * 1024, limit // 2)
    return limit, tile_budget


def _round_down(x, m):
    return max((x // m) * m, m)


def _pick_block_rows(n, fea, mem, io_itemsize, w_itemsize, budget_bytes):
    """Largest row tile whose pipelined row tiles + single-buffered resident weights fit."""
    # Weights/biases use Buffered(1) (constant index_map) -> only one copy resident.
    weight_bytes = (2 * fea * mem + fea + mem) * w_itemsize
    avail = budget_bytes - weight_bytes
    if avail <= 0:
        # TODO(synk): add a mem/fea-tiled reduction fallback (second "arbitrary" grid axis
        # + f32 VMEM accumulator with pl.when init/finalize) for weights too large to stay
        # VMEM-resident (v7x 64 MiB with big mem_dim * fea_dim).
        raise ValueError(
            f"MemoryUnit weights ({weight_bytes / 2**20:.1f} MiB) do not fit the VMEM tile "
            f"budget ({budget_bytes / 2**20:.1f} MiB); cast them with "
            "prepare_mem_params(..., param_dtype=jnp.bfloat16) or reduce mem_dim/fea_dim.")
    # Per row: double-buffered x/out/att tiles + a few f32 compute temporaries.
    per_row = 2 * (2 * fea + mem) * io_itemsize + 3 * (fea + mem) * 4
    tm = int(min(avail // max(per_row, 1), n, 2048))
    if tm >= 512:
        tm = _round_down(tm, 256)
    elif tm >= 128:
        tm = _round_down(tm, 128)
    else:
        tm = _round_down(tm, 8)
    return tm


_NUM_TC = 2   # v7x TensorCores; even tile counts load-balance, harmless on 1-TC chips


@functools.partial(jax.jit, static_argnames=("shrink_thres", "block_rows", "return_att"))
def mem_module_forward(x, w1_t, b1_2d, w2_t, b2_2d,
                       shrink_thres=0.0025, block_rows=None, return_att=True):
    """x: (N, fea); w1_t: (fea, mem); b1_2d: (1, mem); w2_t: (mem, fea); b2_2d: (1, fea).

    fea/mem should be multiples of 128 (ideally 256 on v6e/v7x to fill the 2x256x256 MXU);
    other sizes are still correct (full-extent lane blocks are used for the weights).
    Pass return_att=False to skip the (N, mem) att HBM writeback when only 'output' is
    consumed -- this kernel is HBM-store bound for realistic shapes.
    """
    n, fea = x.shape
    mem = w1_t.shape[1]

    vmem_limit, tile_budget = _vmem_budget_bytes()

    if block_rows is None:
        block_rows = _pick_block_rows(n, fea, mem, x.dtype.itemsize,
                                      w1_t.dtype.itemsize, tile_budget)
    tm = min(int(block_rows), n)
    if tm < n:                            # block second-to-last dim must be a multiple of 8
        tm = max((tm // 8) * 8, 8)

    # Best effort: make the number of row tiles a multiple of 2 so the "parallel" row axis
    # load-balances across v7x's two TensorCores (no effect on single-core v5e/v6e).
    g = pl.cdiv(n, tm)
    if g > 1 and g % _NUM_TC:
        tm_even = -(-pl.cdiv(n, g + 1) // 8) * 8
        if tm_even >= 8 and pl.cdiv(n, tm_even) % _NUM_TC == 0:
            tm = tm_even
    grid = (pl.cdiv(n, tm),)              # partial last tile is fine: all math is row-wise
                                          # and OOB rows are never written back.

    row_spec = lambda cols: pl.BlockSpec((tm, cols), lambda i: (i, 0))
    # Constant index_map -> tile is resident across the whole grid; one buffer is enough.
    fixed_spec = lambda shape: pl.BlockSpec(shape, lambda i: (0, 0),
                                            pipeline_mode=pl.Buffered(1))

    out_shapes = [jax.ShapeDtypeStruct((n, fea), x.dtype)]     # output
    out_specs = [row_spec(fea)]
    if return_att:
        out_shapes.append(jax.ShapeDtypeStruct((n, mem), x.dtype))   # att
        out_specs.append(row_spec(mem))

    results = pl.pallas_call(
        _mem_kernel(float(shrink_thres), return_att),
        out_shape=tuple(out_shapes),
        grid=grid,
        in_specs=[
            row_spec(fea),                # x tile        (tm, fea), double-buffered
            fixed_spec((fea, mem)),       # W1^T, VMEM-resident, single-buffered
            fixed_spec((1, mem)),         # b1
            fixed_spec((mem, fea)),       # W2^T, VMEM-resident, single-buffered
            fixed_spec((1, fea)),         # b2
        ],
        out_specs=tuple(out_specs),
        compiler_params=pltpu.CompilerParams(
            dimension_semantics=("parallel",),     # shard row tiles across TCs (v7x megacore)
            vmem_limit_bytes=int(vmem_limit)),
    )(x, w1_t, b1_2d, w2_t, b2_2d)

    if return_att:
        out, att = results
        return {"output": out, "att": att}
    return {"output": results[0], "att": None}


def _reference(x, w1, b1, w2, b2, shrink_thres=0.0025):
    """Pure-JAX replica of the PyTorch MemoryUnit forward.

    Matmuls run at Precision.HIGHEST so the reference itself doesn't introduce bf16-pass
    error (~1e-3) that would swamp the 1e-5 comparison tolerance.
    """
    hp = lax.Precision.HIGHEST
    a = jnp.dot(x, w1.T, precision=hp) + b1
    a = jax.nn.softmax(a, axis=1)
    if shrink_thres > 0:
        eps = 1e-12
        a = jnp.maximum(a - shrink_thres, 0.0) * a / (jnp.abs(a - shrink_thres) + eps)
        a = a / jnp.maximum(jnp.sum(jnp.abs(a), axis=1, keepdims=True), 1e-12)
    out = jnp.dot(a, w2.T, precision=hp) + b2
    return {"output": out, "att": a}


if __name__ == "__main__":
    # Small, MXU-friendly demo shapes (fea/mem multiples of 256 for v6e/v7x).
    N, FEA, MEM = 512, 256, 256

    key = jax.random.PRNGKey(0)
    kx, k1, k2, k3, k4 = jax.random.split(key, 5)

    # PyTorch nn.Linear-style init: U(-1/sqrt(in_features), 1/sqrt(in_features)).
    s1 = 1.0 / math.sqrt(FEA)
    w1 = jax.random.uniform(k1, (MEM, FEA), minval=-s1, maxval=s1, dtype=jnp.float32)
    b1 = jax.random.uniform(k2, (MEM,), minval=-s1, maxval=s1, dtype=jnp.float32)
    s2 = 1.0 / math.sqrt(MEM)
    w2 = jax.random.uniform(k3, (FEA, MEM), minval=-s2, maxval=s2, dtype=jnp.float32)
    b2 = jax.random.uniform(k4, (FEA,), minval=-s2, maxval=s2, dtype=jnp.float32)

    # One-time parameter prep.  Kept in f32 here so the 1e-5 checks below are meaningful;
    # pass param_dtype=jnp.bfloat16 on v6e/v7x for production throughput.
    params = prepare_mem_params(w1, b1, w2, b2)

    def check(x, shrink, tag):
        # block_rows=256 -> grid=(2,): exercises the pipelined path and is TC-even for v7x.
        res = mem_module_forward(x, *params, shrink_thres=shrink, block_rows=256)
        jax.block_until_ready(res)
        ref = _reference(x, w1, b1, w2, b2, shrink)
        for name in ("output", "att"):
            err = float(jnp.max(jnp.abs(res[name] - ref[name])))
            assert jnp.allclose(res[name], ref[name], atol=1e-5, rtol=1e-5), (tag, name, err)
        return res

    # Case A: shrink path.  Small-amplitude inputs give a near-uniform softmax (~1/256),
    # so every attention weight sits comfortably above the 0.0025 threshold and the
    # kernel/reference comparison has no threshold-boundary sensitivity.
    x_a = 0.05 * jax.random.normal(kx, (N, FEA), dtype=jnp.float32)
    check(x_a, 0.0025, "shrink")

    # Case B: shrink_thres == 0 path with a well-spread softmax (no threshold involved).
    x_b = jax.random.normal(kx, (N, FEA), dtype=jnp.float32)
    check(x_b, 0.0, "no_shrink")

    print("KERNEL_OK")
</pallas_src>

<mosaic_0001>
module attributes {stable_mosaic.version = 11 : i64} {
  func.func @kernel(%arg0: i32, %arg1: memref<256x256xf32, #tpu.memory_space<vmem>>, %arg2: memref<256x256xf32, #tpu.memory_space<vmem>>, %arg3: memref<1x256xf32, #tpu.memory_space<vmem>>, %arg4: memref<256x256xf32, #tpu.memory_space<vmem>>, %arg5: memref<1x256xf32, #tpu.memory_space<vmem>>, %arg6: memref<256x256xf32, #tpu.memory_space<vmem>>, %arg7: memref<256x256xf32, #tpu.memory_space<vmem>>) attributes {dimension_semantics = [#tpu.dimension_semantics<parallel>], iteration_bounds = array<i64: 2>, scalar_prefetch = 0 : i64, scratch_operands = 0 : i64, tpu.core_type = #tpu.core_type<tc>, window_params = [{transform_indices = @transform_0, window_bounds = array<i64: 256, 256>}, {pipeline_mode = #tpu.pipeline_mode<synchronous>, transform_indices = @transform_1, window_bounds = array<i64: 256, 256>}, {pipeline_mode = #tpu.pipeline_mode<synchronous>, transform_indices = @transform_2, window_bounds = array<i64: 1, 256>}, {pipeline_mode = #tpu.pipeline_mode<synchronous>, transform_indices = @transform_3, window_bounds = array<i64: 256, 256>}, {pipeline_mode = #tpu.pipeline_mode<synchronous>, transform_indices = @transform_4, window_bounds = array<i64: 1, 256>}, {transform_indices = @transform_5, window_bounds = array<i64: 256, 256>}, {transform_indices = @transform_6, window_bounds = array<i64: 256, 256>}]} {
    %c0 = arith.constant 0 : index
    %c0_0 = arith.constant 0 : index
    %0 = vector.load %arg1[%c0, %c0_0] : memref<256x256xf32, #tpu.memory_space<vmem>>, vector<256x256xf32>
    %c0_1 = arith.constant 0 : index
    %c0_2 = arith.constant 0 : index
    %1 = vector.load %arg2[%c0_1, %c0_2] : memref<256x256xf32, #tpu.memory_space<vmem>>, vector<256x256xf32>
    %cst = arith.constant dense<0.000000e+00> : vector<256x256xf32>
    %2 = tpu.matmul %0, %1, %cst {dimension_numbers = #tpu.dot_dimension_numbers<[1], [0], [0], [1], [0, 0, 1, 1], [], []>} : vector<256x256xf32>, vector<256x256xf32>, vector<256x256xf32> -> vector<256x256xf32>
    %c0_3 = arith.constant 0 : index
    %c0_4 = arith.constant 0 : index
    %3 = vector.load %arg3[%c0_3, %c0_4] : memref<1x256xf32, #tpu.memory_space<vmem>>, vector<1x256xf32>
    %4 = vector.broadcast %3 : vector<1x256xf32> to vector<256x256xf32>
    %5 = arith.addf %2, %4 : vector<256x256xf32>
    %cst_5 = arith.constant dense<0xFF800000> : vector<256xf32>
    %6 = vector.multi_reduction <maximumf>, %5, %cst_5 [1] : vector<256x256xf32> to vector<256xf32>
    %7 = vector.shape_cast %6 : vector<256xf32> to vector<256x1xf32>
    %8 = vector.broadcast %7 : vector<256x1xf32> to vector<256x256xf32>
    %9 = arith.subf %5, %8 : vector<256x256xf32>
    %10 = math.exp %9 : vector<256x256xf32>
    %cst_6 = arith.constant dense<0.000000e+00> : vector<256xf32>
    %11 = vector.multi_reduction <add>, %10, %cst_6 [1] : vector<256x256xf32> to vector<256xf32>
    %12 = vector.shape_cast %11 : vector<256xf32> to vector<256x1xf32>
    %13 = tpu.reciprocal %12 : vector<256x1xf32> -> vector<256x1xf32>
    %14 = vector.broadcast %13 : vector<256x1xf32> to vector<256x256xf32>
    %15 = arith.mulf %10, %14 : vector<256x256xf32>
    %cst_7 = arith.constant 2.500000e-03 : f32
    %16 = vector.broadcast %cst_7 : f32 to vector<256x256xf32>
    %17 = arith.subf %15, %16 : vector<256x256xf32>
    %cst_8 = arith.constant 0.000000e+00 : f32
    %18 = vector.broadcast %cst_8 : f32 to vector<256x256xf32>
    %19 = arith.maximumf %17, %18 : vector<256x256xf32>
    %20 = arith.mulf %19, %15 : vector<256x256xf32>
    %21 = math.absf %17 : vector<256x256xf32>
    %cst_9 = arith.constant 9.99999996E-13 : f32
    %22 = vector.broadcast %cst_9 : f32 to vector<256x256xf32>
    %23 = arith.addf %21, %22 : vector<256x256xf32>
    %24 = arith.divf %20, %23 : vector<256x256xf32>
    %25 = math.absf %24 : vector<256x256xf32>
    %cst_10 = arith.constant dense<0.000000e+00> : vector<256xf32>
    %26 = vector.multi_reduction <add>, %25, %cst_10 [1] : vector<256x256xf32> to vector<256xf32>
    %27 = vector.shape_cast %26 : vector<256xf32> to vector<256x1xf32>
    %cst_11 = arith.constant 9.99999996E-13 : f32
    %28 = vector.broadcast %cst_11 : f32 to vector<256x1xf32>
    %29 = arith.maximumf %27, %28 : vector<256x1xf32>
    %30 = tpu.reciprocal %29 : vector<256x1xf32> -> vector<256x1xf32>
    %31 = vector.broadcast %30 : vector<256x1xf32> to vector<256x256xf32>
    %32 = arith.mulf %24, %31 : vector<256x256xf32>
    %c0_12 = arith.constant 0 : index
    %c0_13 = arith.constant 0 : index
    %33 = vector.load %arg7[%c0_12, %c0_13] : memref<256x256xf32, #tpu.memory_space<vmem>>, vector<256x256xf32>
    tpu.vector_store %arg7[%c0_12, %c0_13], %32 {strides = array<i32>} : memref<256x256xf32, #tpu.memory_space<vmem>>, vector<256x256xf32>,
    %c0_14 = arith.constant 0 : index
    %c0_15 = arith.constant 0 : index
    %34 = vector.load %arg4[%c0_14, %c0_15] : memref<256x256xf32, #tpu.memory_space<vmem>>, vector<256x256xf32>
    %cst_16 = arith.constant dense<0.000000e+00> : vector<256x256xf32>
    %35 = tpu.matmul %32, %34, %cst_16 {dimension_numbers = #tpu.dot_dimension_numbers<[1], [0], [0], [1], [0, 0, 1, 1], [], []>} : vector<256x256xf32>, vector<256x256xf32>, vector<256x256xf32> -> vector<256x256xf32>
    %c0_17 = arith.constant 0 : index
    %c0_18 = arith.constant 0 : index
    %36 = vector.load %arg5[%c0_17, %c0_18] : memref<1x256xf32, #tpu.memory_space<vmem>>, vector<1x256xf32>
    %37 = vector.broadcast %36 : vector<1x256xf32> to vector<256x256xf32>
    %38 = arith.addf %35, %37 : vector<256x256xf32>
    %c0_19 = arith.constant 0 : index
    %c0_20 = arith.constant 0 : index
    %39 = vector.load %arg6[%c0_19, %c0_20] : memref<256x256xf32, #tpu.memory_space<vmem>>, vector<256x256xf32>
    tpu.vector_store %arg6[%c0_19, %c0_20], %38 {strides = array<i32>} : memref<256x256xf32, #tpu.memory_space<vmem>>, vector<256x256xf32>,
    return
  }
  func.func @transform_0(%arg0: i32) -> (i32, i32) {
    %c0_i32 = arith.constant 0 : i32
    %c0_i32_0 = arith.constant 0 : i32
    return %arg0, %c0_i32 : i32, i32
  }
  func.func @transform_1(%arg0: i32) -> (i32, i32) {
    %c0_i32 = arith.constant 0 : i32
    %c0_i32_0 = arith.constant 0 : i32
    %c0_i32_1 = arith.constant 0 : i32
    return %c0_i32, %c0_i32_0 : i32, i32
  }
  func.func @transform_2(%arg0: i32) -> (i32, i32) {
    %c0_i32 = arith.constant 0 : i32
    %c0_i32_0 = arith.constant 0 : i32
    %c0_i32_1 = arith.constant 0 : i32
    return %c0_i32, %c0_i32_0 : i32, i32
  }
  func.func @transform_3(%arg0: i32) -> (i32, i32) {
    %c0_i32 = arith.constant 0 : i32
    %c0_i32_0 = arith.constant 0 : i32
    %c0_i32_1 = arith.constant 0 : i32
    return %c0_i32, %c0_i32_0 : i32, i32
  }
  func.func @transform_4(%arg0: i32) -> (i32, i32) {
    %c0_i32 = arith.constant 0 : i32
    %c0_i32_0 = arith.constant 0 : i32
    %c0_i32_1 = arith.constant 0 : i32
    return %c0_i32, %c0_i32_0 : i32, i32
  }
  func.func @transform_5(%arg0: i32) -> (i32, i32) {
    %c0_i32 = arith.constant 0 : i32
    %c0_i32_0 = arith.constant 0 : i32
    return %arg0, %c0_i32 : i32, i32
  }
  func.func @transform_6(%arg0: i32) -> (i32, i32) {
    %c0_i32 = arith.constant 0 : i32
    %c0_i32_0 = arith.constant 0 : i32
    return %arg0, %c0_i32 : i32, i32
  }
}

</mosaic_0001>

<bundles_post_ra>
// kernel: mem_module_forward.1
= control target key start
LH: loop header
LB: loop body
LE: loop exit
PB: predicated region body
PF: predicated region fallthrough
CT: control target
= control target key end

     0   :  { %12 = vsyncpa [#allocation3], 0  ;;  %s5273_s0 = inlined_call_operand.hbm [shape: f32[512,256], index: 0, kind: input, shape index: {}]   ;;  %s5274_s1 = inlined_call_operand.hbm [shape: f32[256,256], index: 1, kind: input, shape index: {}]   ;;  %s5275_s2 = inlined_call_operand.vmem [shape: f32[1,256], index: 2, kind: input, shape index: {}]   ;;  %s5276_s3 = inlined_call_operand.hbm [shape: f32[256,256], index: 3, kind: input, shape index: {}]   ;;  %s5277_s4 = inlined_call_operand.vmem [shape: f32[1,256], index: 4, kind: input, shape index: {}]   ;;  %s5278_s5 = inlined_call_operand.hbm [shape: f32[512,256], index: 5, kind: output, shape index: {0}]   ;;  %s5279_s6 = inlined_call_operand.hbm [shape: f32[512,256], index: 6, kind: output, shape index: {1}]  }
   0x1   :  { %14 = vsyncpa [#allocation3 + $0x1], 0 }
   0x2   :  { %15 = vsyncpa [#allocation6], 0 }
   0x3   :  { %16 = vsyncpa [#allocation4], 0 }
   0x4   :  { %18 = vsyncpa [#allocation4 + $0x1], 0 }
   0x5   :  { %19 = vsyncpa [#allocation10], 0 }
   0x6   :  { %21 = vsyncpa [#allocation10 + $0x1], 0  ;;  %s3466_s21 = smov 0   ;;  %s3468_s22 = smov 0  }
   0x7   :  { %s3470_s23 = smov 0   ;;  %s3472_s24 = smov 0  }
   0x8 LB: > { %s3487_s25 = sadd.s32 4294967295, %s3420_s24   ;;  %s2549_s26 = sadd.s32 4294967294, %s3420_s24   ;;  %s3420_s24 = sphi %s3472_s24, %s5505_s24   ;;  %s3416_s23 = sphi %s3470_s23, %s5504_s23   ;;  %s3412_s22 = sphi %s3468_s22, %s5503_s22   ;;  %s3408_s21 = sphi %s3466_s21, %s5502_s21  }
   0x9   : > { %p47_p0 = scmp.ne.s32.totalorder %s3412_s22, %s3408_s21  ;;  %p5280_p1 = scmp.eq.s32.totalorder %s3487_s25, 0 }
   0xa   : > { %p161_p3 = scmp.eq.s32.totalorder %s2549_s26, 1  ;;  %p2550_p5 = scmp.ge.s32.totalorder %s3420_s24, 1 }
   0xb   : > { %p3496_p4 = por %p5280_p1, %p47_p0  ;;  %p194_p7 = scmp.lt.s32.totalorder %s3420_s24, 3 }
   0xc   : > { %p3501_p6 = por %p161_p3, %p47_p0  ;;  %s3422_s30 = smov [#allocation5]  }
   0xd   : > { %s5353_s27 = scalar_select %p3496_p4, 1, 0 }
   0xe   : > { %s5354_s28 = scalar_select %p3501_p6, 1, 0 }
   0xf   : > { %p3506_p8 = pnand %p2550_p5, %p194_p7  ;;  %s206_s7 = sshll.u32 %s3422_s30, 4  ;;  %s3510_s7 = int_to_ptr.vmem [resolvable:$true] %s206_s7 }
  0x10   : > { %s3423_s9 = smov [#allocation7]   ;;  %s3232_s13 = scalar_lea.hbm %s5274_s1, 8192 }
  0x11   : > { %p2786_p9 = pneg %p3506_p8  ;;  %s222_s10 = sshll.u32 %s3423_s9, 4  ;;  %s3521_s10 = int_to_ptr.vmem [resolvable:$true] %s222_s10 }
  0x12   : > { %p3233_p12 = scmp.ne.s32.totalorder %s5274_s1, %s3232_s13  ;;  %p3239_p5 = scmp.lt.u32.totalorder %s3232_s13, %s5274_s1 }
  0x13   : > { %p3517_p11 = pnand %p2786_p9, %p5280_p1 }
  0x15   : > { %p3234_p13 = pneg %p3517_p11 }
  0x17   : > { %p3235_p0 = pnand %p3234_p13, %p3233_p12 }
  0x19   : > { %p3236_p3 = pneg %p3235_p0 }
  0x1b   : > { %p3241_p7 = pnand %p3239_p5, %p3236_p3 }
  0x1d   : > { %3244 = shalt.err (!%p3241_p7)
}
  0x1e   : > { %s3245_s18 = scalar_lea.vmem %s3510_s7, 8192  ;;  %p3253_p2 = scmp.lt.s32.totalorder %s3510_s7, %s3510_s7 }
  0x1f   : > { %p3246_p9 = scmp.ne.s32.totalorder %s3510_s7, %s3245_s18  ;;  %p3254_p12 = scmp.lt.s32.totalorder %s3245_s18, %s3245_s18 }
  0x21   : > { %p3248_p10 = pnand %p3246_p9, %p3234_p13  ;;  %p3255_p0 = por %p3254_p12, %p3253_p2 }
  0x23   : > { %p3249_p1 = pneg %p3248_p10 }
  0x25   : > { %p3256_p6 = pnand %p3255_p0, %p3249_p1 }
  0x27   : > { %3259 = shalt.err (!%p3256_p6)
}
  0x28   : > { %s3424_s19 = smov 256   ;;  %s3425_s20 = smov 16  }
  0x29   : > { %2789 = dma.hbm_to_vmem [thread:$0]  (!%p3517_p11), %s5274_s1, 8192, %s3510_s7, [#allocation6], %s3424_s19, %s3424_s19, %s3425_s20  }
  0x2a   : > { %s3260_s12 = scalar_lea.hbm %s5276_s3, 8192 }
  0x2b   : > { %p3261_p1 = scmp.ne.s32.totalorder %s5276_s3, %s3260_s12  ;;  %p3267_p10 = scmp.lt.u32.totalorder %s3260_s12, %s5276_s3 }
  0x2d   : > { %p3263_p2 = pnand %p3261_p1, %p3234_p13 }
  0x2f   : > { %p3264_p6 = pneg %p3263_p2 }
  0x31   : > { %p3269_p3 = pnand %p3267_p10, %p3264_p6 }
  0x33   : > { %3272 = shalt.err (!%p3269_p3)
}
  0x34   : > { %s3273_s7 = scalar_lea.vmem %s3521_s10, 8192  ;;  %p3281_p12 = scmp.lt.s32.totalorder %s3521_s10, %s3521_s10 }
  0x35   : > { %p3274_p5 = scmp.ne.s32.totalorder %s3521_s10, %s3273_s7  ;;  %p3282_p0 = scmp.lt.s32.totalorder %s3273_s7, %s3273_s7 }
  0x37   : > { %p3276_p7 = pnand %p3274_p5, %p3234_p13  ;;  %p3283_p1 = por %p3282_p0, %p3281_p12 }
  0x39   : > { %p3277_p9 = pneg %p3276_p7 }
  0x3b   : > { %p3284_p2 = pnand %p3283_p1, %p3277_p9 }
  0x3d   : > { %3287 = shalt.err (!%p3284_p2)
}
  0x3e   : > { %2792 = dma.hbm_to_vmem [thread:$0]  (!%p3517_p11), %s5276_s3, 8192, %s3521_s10, [#allocation6], %s3424_s19, %s3424_s19, %s3425_s20  }
  0x3f   : > { %s3582_s8 = sadd.s32 1, %s3420_s24   ;;  %s34_s26 = sadd.s32 1, %s3416_s23 }
  0x40   : > { %s31_s30 = ssub.s32 %s3420_s24, %s3582_s8  ;;  %p41_p13 = scmp.ne.s32.totalorder %s3416_s23, %s3412_s22 }
  0x41   : > { %p32_p6 = scmp.eq.s32.totalorder %s31_s30, 0  ;;  %p42_p10 = scmp.eq.s32.totalorder %s3420_s24, 0 }
  0x42   : > { %p5357_p3 = scmp.eq.s32.totalorder %s3487_s25, 1  ;;  %p2806_p7 = scmp.lt.s32.totalorder %s3420_s24, 2 }
  0x43   : > { %s3598_s11 = scalar_select %p32_p6, %s3416_s23, %s34_s26  }
  0x44   : > { %p3592_p5 = por %p5357_p3, %p41_p13  ;;  %p43_p9 = por %p42_p10, %p41_p13 }
  0x45   : > { %s239_s12 = sand.u32 1, %s3416_s23   ;;  %s2639_s10 = sshll.u32 %s3420_s24, 13 }
  0x46   : > { %s5358_s9 = scalar_select %p3592_p5, 1, 0 }
  0x47   : > { %s2554_s13 = sshll.u32 %s239_s12, 9  ;;  %s3605_s16 = scalar_lea.hbm %s5273_s0, %s2639_s10 }
  0x48   : > { %s243_s7 = scalar_lea.vmem [#allocation2], %s2554_s13  ;;  %p3609_p11 = pnand %p2806_p7, %p43_p9 }
  0x49   : > { %s251_s17 = sshll.u32 %s243_s7, 4  ;;  %s3613_s26 = scalar_lea.sflag [#allocation3], %s239_s12  ;;  %s3607_s17 = int_to_ptr.vmem [resolvable:$true] %s251_s17 }
  0x4a   : > { %s3288_s30 = scalar_lea.hbm %s3605_s16, 8192  ;;  %p3290_p0 = pneg %p3609_p11 }
  0x4b   : > { %p3289_p12 = scmp.ne.s32.totalorder %s3605_s16, %s3288_s30  ;;  %s3293_s14 = scalar_lea.hbm %s5273_s0, 16384 }
  0x4c   : > { %p3294_p13 = scmp.lt.u32.totalorder %s3605_s16, %s5273_s0  ;;  %p3295_p6 = scmp.lt.u32.totalorder %s3293_s14, %s3288_s30 }
  0x4d   : > { %p3291_p1 = pnand %p3290_p0, %p3289_p12  ;;  %p3297_p3 = scmp.lt.u32.totalorder %s3288_s30, %s3605_s16 }
  0x4e   : > { %p3296_p10 = por %p3295_p6, %p3294_p13 }
  0x4f   : > { %p3292_p2 = pneg %p3291_p1 }
  0x50   : > { %p3298_p7 = por %p3297_p3, %p3296_p10 }
  0x52   : > { %p3299_p9 = pnand %p3298_p7, %p3292_p2 }
  0x54   : > { %3302 = shalt.err (!%p3299_p9)
}
  0x55   : > { %s3303_s12 = scalar_lea.vmem %s3607_s17, 8192  ;;  %s3426_s13 = smov [#allocation2]  }
  0x56   : > { %p3304_p12 = scmp.ne.s32.totalorder %s3607_s17, %s3303_s12  ;;  %s3308_s10 = sshll.u32 %s3426_s13, 4  ;;  %s3309_s10 = int_to_ptr.vmem [resolvable:$false] %s3308_s10 }
  0x57   : > { %s3310_s15 = scalar_lea.vmem %s3309_s10, 16384  ;;  %p3311_p4 = scmp.lt.s32.totalorder %s3607_s17, %s3309_s10 }
  0x58   : > { %p3306_p1 = pnand %p3304_p12, %p3290_p0  ;;  %p3312_p13 = scmp.lt.s32.totalorder %s3310_s15, %s3303_s12 }
  0x5a   : > { %p3307_p5 = pneg %p3306_p1  ;;  %p3313_p6 = por %p3312_p13, %p3311_p4 }
  0x5c   : > { %p3314_p10 = pnand %p3313_p6, %p3307_p5 }
  0x5e   : > { %3317 = shalt.err (!%p3314_p10)
}
  0x5f   : > { %2796 = dma.hbm_to_vmem [thread:$0]  (!%p3609_p11), %s3605_s16, 8192, %s3607_s17, %s3613_s26, %s3424_s19, %s3424_s19, %s3425_s20  }
  0x60   : > { %263 = sbr.rel (%p3506_p8) target bundleno = 1276 (0x4fc), region = 40 }
  0x67   : > { %s3647_s30 = sand.u32 1, %s3412_s22   ;;  %p5360_p4 = scmp.ne.s32.totalorder %s5353_s27, 0 }
  0x68   : > { %s3650_s14 = sshll.u32 %s3647_s30, 9  ;;  %s266_s18 = scalar_lea.sflag [#allocation3], %s3647_s30 }
  0x69   : > { %s3654_s7 = scalar_lea.vmem [#allocation2], %s3650_s14 }
  0x6a   : > { %3391 = dma.done.wait (%p5360_p4), %s266_s18, 8192  }
  0x6b   : > { %3393 = vsyncadd (%p5360_p4), %s266_s18, 4294959104  ;;  %p5361_p5 = scmp.eq.s32.totalorder %s3487_s25, 0 }
  0x6d   : > { %3395 = dma.done.wait (%p5361_p5), [#allocation6], 16384   ;;  %p5362_p8 = pmov %p5361_p5 }
  0x6e   : > { %v379_v0 = vld [vmem:[#allocation5 + $0x8] sm:$0xff]  ;;  %v381_v1 = vld [vmem:[#allocation5 + $0x18] sm:$0xff]  ;;  %v378_v2 = vld [vmem:[#allocation5] sm:$0xff]  ;;  %s4910_s19 = scalar_lea.vmem [#allocation9], %s3650_s14  ;;  %s5052_s17 = scalar_lea.vmem [#allocation8], %s3650_s14 }
  0x6f   : > { %3397 = vsyncadd (%p5362_p8), [#allocation6], 4294950912  ;;  %v2644_v3 = vpack.c.bf16 %v381_v1, %v379_v0  ;;  %v380_v4 = vld [vmem:[#allocation5 + $0x10] sm:$0xff]  ;;  %v383_v5 = vld [vmem:[#allocation5 + $0x28] sm:$0xff]  ;;  %s2641_s26 = sshll.u32 %s3487_s25, 13  ;;  %s2425_s15 = sshll.u32 %s4910_s19, 4  ;;  %s5088_s15 = int_to_ptr.vmem [resolvable:$true] %s2425_s15 }
  0x70   : > { %v385_v6 = vld [vmem:[#allocation5 + $0x38] sm:$0xff]  ;;  %v2646_v7 = vpack.c.bf16 %v380_v4, %v378_v2  ;;  %v382_v9 = vld [vmem:[#allocation5 + $0x20] sm:$0xff]  ;;  %v384_v10 = vld [vmem:[#allocation5 + $0x30] sm:$0xff]  ;;  %s5084_s10 = scalar_lea.hbm %s5279_s6, %s2641_s26  ;;  %s2394_s14 = scalar_lea.sflag [#allocation10], %s3647_s30 }
  0x71   : > { %v2648_v8 = vpack.c.bf16 %v385_v6, %v383_v5  ;;  %v387_v11 = vld [vmem:[#allocation5 + $0x48] sm:$0xff]  ;;  %2645 = vmatprep.subr.bf16.mxu0 %v2644_v3  ;;  %v389_v12 = vld [vmem:[#allocation5 + $0x58] sm:$0xff]  ;;  %v2650_v13 = vpack.c.bf16 %v384_v10, %v382_v9  ;;  %v386_v15 = vld [vmem:[#allocation5 + $0x40] sm:$0xff]  ;;  %s3318_s18 = scalar_lea.vmem %s5088_s15, 8192  ;;  %p5499_p0 = scmp.ne.s32.totalorder %s5358_s9, 0 }
  0x72   : > { %2647 = vmatpush1.bf16.msra.mxu0 %v2646_v7  ;;  %v2652_v14 = vpack.c.bf16 %v389_v12, %v387_v11  ;;  %v388_v16 = vld [vmem:[#allocation5 + $0x50] sm:$0xff]  ;;  %v391_v17 = vld [vmem:[#allocation5 + $0x68] sm:$0xff]  ;;  %v393_v18 = vld [vmem:[#allocation5 + $0x78] sm:$0xff]  ;;  %p3319_p11 = scmp.ne.s32.totalorder %s5088_s15, %s3318_s18 }
  0x73   : > { %2649 = vmatprep.subr.bf16.mxu0 %v2648_v8  ;;  %v2654_v19 = vpack.c.bf16 %v388_v16, %v386_v15  ;;  %v2656_v20 = vpack.c.bf16 %v393_v18, %v391_v17  ;;  %v390_v21 = vld [vmem:[#allocation5 + $0x60] sm:$0xff]  ;;  %v392_v22 = vld [vmem:[#allocation5 + $0x70] sm:$0xff]  ;;  %v395_v23 = vld [vmem:[#allocation5 + $0x88] sm:$0xff] }
  0x74   : > { %v397_v24 = vld [vmem:[#allocation5 + $0x98] sm:$0xff]  ;;  %v2658_v25 = vpack.c.bf16 %v392_v22, %v390_v21  ;;  %v394_v27 = vld [vmem:[#allocation5 + $0x80] sm:$0xff]  ;;  %v396_v28 = vld [vmem:[#allocation5 + $0x90] sm:$0xff]  ;;  %p3320_p2 = pnand %p3319_p11, %p5499_p0 }
  0x75   : > { %v2660_v26 = vpack.c.bf16 %v397_v24, %v395_v23  ;;  %v399_v29 = vld [vmem:[#allocation5 + $0xa8] sm:$0xff]  ;;  %v401_v30 = vld [vmem:[#allocation5 + $0xb8] sm:$0xff]  ;;  %v2662_v31 = vpack.c.bf16 %v396_v28, %v394_v27  ;;  %v398_v33 = vld [vmem:[#allocation5 + $0xa0] sm:$0xff] }
  0x76   : > { %2651 = vmatpush1.bf16.msra.mxu0 %v2650_v13  ;;  %v2664_v32 = vpack.c.bf16 %v401_v30, %v399_v29  ;;  %v400_v34 = vld [vmem:[#allocation5 + $0xb0] sm:$0xff]  ;;  %v403_v35 = vld [vmem:[#allocation5 + $0xc8] sm:$0xff]  ;;  %v405_v36 = vld [vmem:[#allocation5 + $0xd8] sm:$0xff]  ;;  %p3321_p3 = pneg %p3320_p2 }
  0x77   : > { %2653 = vmatprep.subr.bf16.mxu0 %v2652_v14  ;;  %v2666_v37 = vpack.c.bf16 %v400_v34, %v398_v33  ;;  %v2668_v38 = vpack.c.bf16 %v405_v36, %v403_v35  ;;  %v402_v39 = vld [vmem:[#allocation5 + $0xc0] sm:$0xff]  ;;  %v404_v40 = vld [vmem:[#allocation5 + $0xd0] sm:$0xff]  ;;  %v315_v41 = vld [vmem:[%s3654_s7 + $0x8] sm:$0xff] }
  0x78   : > { %v407_v42 = vld [vmem:[#allocation5 + $0xe8] sm:$0xff]  ;;  %v409_v43 = vld [vmem:[#allocation5 + $0xf8] sm:$0xff]  ;;  %518 = vmatprep.mubr.f32.mxu0 %v315_v41  ;;  %v2670_v44 = vpack.c.bf16 %v404_v40, %v402_v39  ;;  %v406_v46 = vld [vmem:[#allocation5 + $0xe0] sm:$0xff] }
  0x79   : > { %v2672_v45 = vpack.c.bf16 %v409_v43, %v407_v42  ;;  %v408_v47 = vld [vmem:[#allocation5 + $0xf0] sm:$0xff]  ;;  %v411_v48 = vld [vmem:[#allocation5 + $0x108] sm:$0xff]  ;;  %v413_v49 = vld [vmem:[#allocation5 + $0x118] sm:$0xff] }
  0x7a   : > { %2655 = vmatpush1.bf16.msra.mxu0 %v2654_v19  ;;  %v2674_v50 = vpack.c.bf16 %v408_v47, %v406_v46  ;;  %v2676_v51 = vpack.c.bf16 %v413_v49, %v411_v48  ;;  %v410_v52 = vld [vmem:[#allocation5 + $0x100] sm:$0xff]  ;;  %v412_v53 = vld [vmem:[#allocation5 + $0x110] sm:$0xff]  ;;  %v415_v54 = vld [vmem:[#allocation5 + $0x128] sm:$0xff] }
  0x7b   : > { %2657 = vmatprep.subr.bf16.mxu0 %v2656_v20  ;;  %v417_v55 = vld [vmem:[#allocation5 + $0x138] sm:$0xff]  ;;  %v2678_v56 = vpack.c.bf16 %v412_v53, %v410_v52  ;;  %v414_v58 = vld [vmem:[#allocation5 + $0x120] sm:$0xff]  ;;  %v416_v59 = vld [vmem:[#allocation5 + $0x130] sm:$0xff] }
  0x7c   : > { %v2680_v57 = vpack.c.bf16 %v417_v55, %v415_v54  ;;  %v419_v60 = vld [vmem:[#allocation5 + $0x148] sm:$0xff]  ;;  %v421_v61 = vld [vmem:[#allocation5 + $0x158] sm:$0xff]  ;;  %v2682_v62 = vpack.c.bf16 %v416_v59, %v414_v58  ;;  %v418_v0 = vld [vmem:[#allocation5 + $0x140] sm:$0xff] }
  0x7d   : > { %v2684_v63 = vpack.c.bf16 %v421_v61, %v419_v60  ;;  %v420_v1 = vld [vmem:[#allocation5 + $0x150] sm:$0xff]  ;;  %v423_v2 = vld [vmem:[#allocation5 + $0x168] sm:$0xff]  ;;  %v425_v3 = vld [vmem:[#allocation5 + $0x178] sm:$0xff] }
  0x7e   : > { %2659 = vmatpush1.bf16.msra.mxu0 %v2658_v25  ;;  %v2686_v4 = vpack.c.bf16 %v420_v1, %v418_v0  ;;  %v2688_v5 = vpack.c.bf16 %v425_v3, %v423_v2  ;;  %v422_v6 = vld [vmem:[#allocation5 + $0x160] sm:$0xff]  ;;  %v424_v7 = vld [vmem:[#allocation5 + $0x170] sm:$0xff]  ;;  %v427_v8 = vld [vmem:[#allocation5 + $0x188] sm:$0xff] }
  0x7f   : > { %2661 = vmatprep.subr.bf16.mxu0 %v2660_v26  ;;  %v429_v9 = vld [vmem:[#allocation5 + $0x198] sm:$0xff]  ;;  %v2690_v10 = vpack.c.bf16 %v424_v7, %v422_v6  ;;  %v426_v12 = vld [vmem:[#allocation5 + $0x180] sm:$0xff]  ;;  %v428_v13 = vld [vmem:[#allocation5 + $0x190] sm:$0xff] }
  0x80   : > { %v2692_v11 = vpack.c.bf16 %v429_v9, %v427_v8  ;;  %v431_v14 = vld [vmem:[#allocation5 + $0x1a8] sm:$0xff]  ;;  %v433_v15 = vld [vmem:[#allocation5 + $0x1b8] sm:$0xff]  ;;  %v2694_v16 = vpack.c.bf16 %v428_v13, %v426_v12  ;;  %v430_v18 = vld [vmem:[#allocation5 + $0x1a0] sm:$0xff] }
  0x81   : > { %v2696_v17 = vpack.c.bf16 %v433_v15, %v431_v14  ;;  %v432_v19 = vld [vmem:[#allocation5 + $0x1b0] sm:$0xff]  ;;  %v435_v20 = vld [vmem:[#allocation5 + $0x1c8] sm:$0xff]  ;;  %v437_v21 = vld [vmem:[#allocation5 + $0x1d8] sm:$0xff] }
  0x82   : > { %2663 = vmatpush1.bf16.msra.mxu0 %v2662_v31  ;;  %v2698_v22 = vpack.c.bf16 %v432_v19, %v430_v18  ;;  %v2700_v23 = vpack.c.bf16 %v437_v21, %v435_v20  ;;  %v434_v24 = vld [vmem:[#allocation5 + $0x1c0] sm:$0xff]  ;;  %v436_v25 = vld [vmem:[#allocation5 + $0x1d0] sm:$0xff]  ;;  %v439_v26 = vld [vmem:[#allocation5 + $0x1e8] sm:$0xff] }
  0x83   : > { %2665 = vmatprep.subr.bf16.mxu0 %v2664_v32  ;;  %v441_v27 = vld [vmem:[#allocation5 + $0x1f8] sm:$0xff]  ;;  %v2702_v28 = vpack.c.bf16 %v436_v25, %v434_v24  ;;  %v438_v30 = vld [vmem:[#allocation5 + $0x1e0] sm:$0xff]  ;;  %v440_v31 = vld [vmem:[#allocation5 + $0x1f0] sm:$0xff] }
  0x84   : > { %v2704_v29 = vpack.c.bf16 %v441_v27, %v439_v26  ;;  %v2706_v32 = vpack.c.bf16 %v440_v31, %v438_v30  ;;  %v314_v33 = vld [vmem:[%s3654_s7] sm:$0xff]  ;;  %v317_v34 = vld [vmem:[%s3654_s7 + $0x18] sm:$0xff]  ;;  %v316_v35 = vld [vmem:[%s3654_s7 + $0x10] sm:$0xff] }
  0x85   : > { %v319_v36 = vld [vmem:[%s3654_s7 + $0x28] sm:$0xff]  ;;  %v320_v39 = vld [vmem:[%s3654_s7 + $0x30] sm:$0xff]  ;;  %v322_v41 = vld [vmem:[%s3654_s7 + $0x40] sm:$0xff] }
  0x86   : > { %2667 = vmatpush1.bf16.msra.mxu0 %v2666_v37  ;;  %v318_v37 = vld [vmem:[%s3654_s7 + $0x20] sm:$0xff]  ;;  %v323_v40 = vld [vmem:[%s3654_s7 + $0x48] sm:$0xff]  ;;  %v325_v42 = vld [vmem:[%s3654_s7 + $0x58] sm:$0xff] }
  0x87   : > { %2669 = vmatprep.subr.bf16.mxu0 %v2668_v38  ;;  %v321_v38 = vld [vmem:[%s3654_s7 + $0x38] sm:$0xff]  ;;  %v324_v43 = vld [vmem:[%s3654_s7 + $0x50] sm:$0xff]  ;;  %v331_v48 = vld [vmem:[%s3654_s7 + $0x88] sm:$0xff] }
  0x88   : > { %v329_v46 = vld [vmem:[%s3654_s7 + $0x78] sm:$0xff]  ;;  %v328_v47 = vld [vmem:[%s3654_s7 + $0x70] sm:$0xff]  ;;  %v330_v49 = vld [vmem:[%s3654_s7 + $0x80] sm:$0xff] }
  0x89   : > { %v335_v52 = vld [vmem:[%s3654_s7 + $0xa8] sm:$0xff]  ;;  %v334_v53 = vld [vmem:[%s3654_s7 + $0xa0] sm:$0xff]  ;;  %v337_v54 = vld [vmem:[%s3654_s7 + $0xb8] sm:$0xff] }
  0x8a   : > { %2671 = vmatpush1.bf16.msra.mxu0 %v2670_v44  ;;  %v327_v44 = vld [vmem:[%s3654_s7 + $0x68] sm:$0xff]  ;;  %v336_v55 = vld [vmem:[%s3654_s7 + $0xb0] sm:$0xff]  ;;  %v341_v58 = vld [vmem:[%s3654_s7 + $0xd8] sm:$0xff] }
  0x8b   : > { %2673 = vmatprep.subr.bf16.mxu0 %v2672_v45  ;;  %v326_v45 = vld [vmem:[%s3654_s7 + $0x60] sm:$0xff]  ;;  %v340_v59 = vld [vmem:[%s3654_s7 + $0xd0] sm:$0xff]  ;;  %v343_v60 = vld [vmem:[%s3654_s7 + $0xe8] sm:$0xff] }
  0x8c   : > { %v342_v61 = vld [vmem:[%s3654_s7 + $0xe0] sm:$0xff]  ;;  %v347_v0 = vld [vmem:[%s3654_s7 + $0x108] sm:$0xff]  ;;  %v349_v2 = vld [vmem:[%s3654_s7 + $0x118] sm:$0xff] }
  0x8d   : > { %v346_v1 = vld [vmem:[%s3654_s7 + $0x100] sm:$0xff]  ;;  %v348_v3 = vld [vmem:[%s3654_s7 + $0x110] sm:$0xff]  ;;  %v353_v6 = vld [vmem:[%s3654_s7 + $0x138] sm:$0xff] }
  0x8e   : > { %2675 = vmatpush1.bf16.msra.mxu0 %v2674_v50  ;;  %v333_v50 = vld [vmem:[%s3654_s7 + $0x98] sm:$0xff]  ;;  %v352_v7 = vld [vmem:[%s3654_s7 + $0x130] sm:$0xff]  ;;  %v355_v8 = vld [vmem:[%s3654_s7 + $0x148] sm:$0xff] }
  0x8f   : > { %2677 = vmatprep.subr.bf16.mxu0 %v2676_v51  ;;  %v332_v51 = vld [vmem:[%s3654_s7 + $0x90] sm:$0xff]  ;;  %v354_v9 = vld [vmem:[%s3654_s7 + $0x140] sm:$0xff]  ;;  %v359_v12 = vld [vmem:[%s3654_s7 + $0x168] sm:$0xff] }
  0x90   : > { %v358_v13 = vld [vmem:[%s3654_s7 + $0x160] sm:$0xff]  ;;  %v361_v14 = vld [vmem:[%s3654_s7 + $0x178] sm:$0xff]  ;;  %v360_v15 = vld [vmem:[%s3654_s7 + $0x170] sm:$0xff] }
  0x91   : > { %v365_v18 = vld [vmem:[%s3654_s7 + $0x198] sm:$0xff]  ;;  %v364_v19 = vld [vmem:[%s3654_s7 + $0x190] sm:$0xff]  ;;  %v367_v20 = vld [vmem:[%s3654_s7 + $0x1a8] sm:$0xff] }
  0x92   : > { %2679 = vmatpush1.bf16.msra.mxu0 %v2678_v56  ;;  %v339_v56 = vld [vmem:[%s3654_s7 + $0xc8] sm:$0xff]  ;;  %v366_v21 = vld [vmem:[%s3654_s7 + $0x1a0] sm:$0xff]  ;;  %v373_v26 = vld [vmem:[%s3654_s7 + $0x1d8] sm:$0xff] }
  0x93   : > { %2681 = vmatprep.subr.bf16.mxu0 %v2680_v57  ;;  %v338_v57 = vld [vmem:[%s3654_s7 + $0xc0] sm:$0xff]  ;;  %v371_v24 = vld [vmem:[%s3654_s7 + $0x1c8] sm:$0xff]  ;;  %v372_v27 = vld [vmem:[%s3654_s7 + $0x1d0] sm:$0xff] }
  0x94   : > { %v370_v25 = vld [vmem:[%s3654_s7 + $0x1c0] sm:$0xff]  ;;  %v377_v30 = vld [vmem:[%s3654_s7 + $0x1f8] sm:$0xff]  ;;  %v376_v31 = vld [vmem:[%s3654_s7 + $0x1f0] sm:$0xff] }
  0x96   : > { %2683 = vmatpush1.bf16.msra.mxu0 %v2682_v62  ;;  %v345_v62 = vld [vmem:[%s3654_s7 + $0xf8] sm:$0xff] }
  0x97   : > { %2685 = vmatprep.subr.bf16.mxu0 %v2684_v63  ;;  %v344_v63 = vld [vmem:[%s3654_s7 + $0xf0] sm:$0xff] }
  0x9a   : > { %2687 = vmatpush1.bf16.msra.mxu0 %v2686_v4  ;;  %v351_v4 = vld [vmem:[%s3654_s7 + $0x128] sm:$0xff] }
  0x9b   : > { %2689 = vmatprep.subr.bf16.mxu0 %v2688_v5  ;;  %v350_v5 = vld [vmem:[%s3654_s7 + $0x120] sm:$0xff] }
  0x9e   : > { %2691 = vmatpush1.bf16.msra.mxu0 %v2690_v10  ;;  %v357_v10 = vld [vmem:[%s3654_s7 + $0x158] sm:$0xff] }
  0x9f   : > { %2693 = vmatprep.subr.bf16.mxu0 %v2692_v11  ;;  %v356_v11 = vld [vmem:[%s3654_s7 + $0x150] sm:$0xff] }
  0xa2   : > { %2695 = vmatpush1.bf16.msra.mxu0 %v2694_v16  ;;  %v363_v16 = vld [vmem:[%s3654_s7 + $0x188] sm:$0xff] }
  0xa3   : > { %2697 = vmatprep.subr.bf16.mxu0 %v2696_v17  ;;  %v362_v17 = vld [vmem:[%s3654_s7 + $0x180] sm:$0xff] }
  0xa6   : > { %2699 = vmatpush1.bf16.msra.mxu0 %v2698_v22  ;;  %v369_v22 = vld [vmem:[%s3654_s7 + $0x1b8] sm:$0xff] }
  0xa7   : > { %2701 = vmatprep.subr.bf16.mxu0 %v2700_v23  ;;  %v368_v23 = vld [vmem:[%s3654_s7 + $0x1b0] sm:$0xff] }
  0xaa   : > { %2703 = vmatpush1.bf16.msra.mxu0 %v2702_v28  ;;  %v375_v28 = vld [vmem:[%s3654_s7 + $0x1e8] sm:$0xff] }
  0xab   : > { %2705 = vmatprep.subr.bf16.mxu0 %v2704_v29  ;;  %v374_v29 = vld [vmem:[%s3654_s7 + $0x1e0] sm:$0xff]  ;;  %s3427_s7 = smov [#allocation9]  }
  0xac   : > { %s3322_s27 = sshll.u32 %s3427_s7, 4  ;;  %s3323_s27 = int_to_ptr.vmem [resolvable:$false] %s3322_s27 }
  0xad   : > { %s3324_s29 = scalar_lea.vmem %s3323_s27, 16384  ;;  %p3325_p7 = scmp.lt.s32.totalorder %s5088_s15, %s3323_s27 }
  0xae   : > { %2707 = vmatpush1.bf16.msra.mxu0 %v2706_v32  ;;  %v444_v32 = vlaneseq  ;;  %p3326_p9 = scmp.lt.s32.totalorder %s3324_s29, %s3318_s18 }
  0xb0   : > { %p3327_p12 = por %p3326_p9, %p3325_p7 }
  0xb1   : > { %519 = vmatmul.mubr.f32.vlgmr.msra.gmra.mrb[0].mxu0 %v314_v33  ;;  %v3728_v33 = vshrl.u32 %v444_v32, 7 }
  0xb2   : > { %524 = vmatprep.mubr.f32.mxu0 %v317_v34  ;;  %p3328_p1 = pnand %p3327_p12, %p3321_p3 }
  0xb3   : > { %5363 = vst [vmem:[#allocation15_spill] sm:$0xff] %v3728_v33  ;;  %v5284_v34 = vsub.s32 0, %v3728_v33 }
  0xb5   : > { %525 = vmatmul.mubr.f32.gmra.mrb[2].mxu0 %v316_v35  ;;  %v442_v35 = vld [vmem:[%s5275_s2] sm:$0x3] }
  0xb6   : > { %530 = vmatprep.mubr.f32.mxu0 %v319_v36  ;;  %v5283_v36 = vsub.s32 1, %v3728_v33 }
  0xb9   : > { %531 = vmatmul.mubr.f32.gmra.mrb[4].mxu0 %v318_v37  ;;  %v3737_v37 = vrot.slane %v442_v35, %v5284_v34 }
  0xba   : > { %536 = vmatprep.mubr.f32.mxu0 %v321_v38  ;;  %v3741_v38 = vrot.slane %v442_v35, %v5283_v36 }
  0xbd   : > { %537 = vmatmul.mubr.f32.gmra.mrb[6].mxu0 %v320_v39 }
  0xbe   : > { %542 = vmatprep.mubr.f32.mxu0 %v323_v40 }
  0xc1   : > { %543 = vmatmul.mubr.f32.gmra.mrb[8].mxu0 %v322_v41 }
  0xc2   : > { %548 = vmatprep.mubr.f32.mxu0 %v325_v42 }
  0xc5   : > { %549 = vmatmul.mubr.f32.gmra.mrb[10].mxu0 %v324_v43 }
  0xc6   : > { %554 = vmatprep.mubr.f32.mxu0 %v327_v44 }
  0xc9   : > { %555 = vmatmul.mubr.f32.gmra.mrb[12].mxu0 %v326_v45 }
  0xca   : > { %560 = vmatprep.mubr.f32.mxu0 %v329_v46 }
  0xcd   : > { %561 = vmatmul.mubr.f32.gmra.mrb[14].mxu0 %v328_v47 }
  0xce   : > { %566 = vmatprep.mubr.f32.mxu0 %v331_v48 }
  0xd1   : > { %567 = vmatmul.mubr.f32.gmra.mrb[16].mxu0 %v330_v49 }
  0xd2   : > { %572 = vmatprep.mubr.f32.mxu0 %v333_v50 }
  0xd5   : > { %573 = vmatmul.mubr.f32.gmra.mrb[18].mxu0 %v332_v51 }
  0xd6   : > { %578 = vmatprep.mubr.f32.mxu0 %v335_v52 }
  0xd9   : > { %579 = vmatmul.mubr.f32.gmra.mrb[20].mxu0 %v334_v53 }
  0xda   : > { %584 = vmatprep.mubr.f32.mxu0 %v337_v54 }
  0xdd   : > { %585 = vmatmul.mubr.f32.gmra.mrb[22].mxu0 %v336_v55 }
  0xde   : > { %590 = vmatprep.mubr.f32.mxu0 %v339_v56 }
  0xe1   : > { %591 = vmatmul.mubr.f32.gmra.mrb[24].mxu0 %v338_v57 }
  0xe2   : > { %596 = vmatprep.mubr.f32.mxu0 %v341_v58 }
  0xe5   : > { %597 = vmatmul.mubr.f32.gmra.mrb[26].mxu0 %v340_v59 }
  0xe6   : > { %602 = vmatprep.mubr.f32.mxu0 %v343_v60 }
  0xe9   : > { %603 = vmatmul.mubr.f32.gmra.mrb[28].mxu0 %v342_v61 }
  0xea   : > { %608 = vmatprep.mubr.f32.mxu0 %v345_v62 }
  0xed   : > { %609 = vmatmul.mubr.f32.gmra.mrb[30].mxu0 %v344_v63 }
  0xee   : > { %614 = vmatprep.mubr.f32.mxu0 %v347_v0 }
  0xf1   : > { %615 = vmatmul.mubr.f32.gmra.mrb[32].mxu0 %v346_v1 }
  0xf2   : > { %620 = vmatprep.mubr.f32.mxu0 %v349_v2 }
  0xf5   : > { %621 = vmatmul.mubr.f32.gmra.mrb[34].mxu0 %v348_v3 }
  0xf6   : > { %626 = vmatprep.mubr.f32.mxu0 %v351_v4 }
  0xf9   : > { %627 = vmatmul.mubr.f32.gmra.mrb[36].mxu0 %v350_v5 }
  0xfa   : > { %632 = vmatprep.mubr.f32.mxu0 %v353_v6 }
  0xfd   : > { %633 = vmatmul.mubr.f32.gmra.mrb[38].mxu0 %v352_v7 }
  0xfe   : > { %638 = vmatprep.mubr.f32.mxu0 %v355_v8 }
 0x101   : > { %639 = vmatmul.mubr.f32.gmra.mrb[40].mxu0 %v354_v9 }
 0x102   : > { %644 = vmatprep.mubr.f32.mxu0 %v357_v10 }
 0x105   : > { %645 = vmatmul.mubr.f32.gmra.mrb[42].mxu0 %v356_v11 }
 0x106   : > { %650 = vmatprep.mubr.f32.mxu0 %v359_v12 }
 0x109   : > { %651 = vmatmul.mubr.f32.gmra.mrb[44].mxu0 %v358_v13 }
 0x10a   : > { %656 = vmatprep.mubr.f32.mxu0 %v361_v14 }
 0x10d   : > { %657 = vmatmul.mubr.f32.gmra.mrb[46].mxu0 %v360_v15 }
 0x10e   : > { %662 = vmatprep.mubr.f32.mxu0 %v363_v16 }
 0x111   : > { %663 = vmatmul.mubr.f32.gmra.mrb[48].mxu0 %v362_v17 }
 0x112   : > { %668 = vmatprep.mubr.f32.mxu0 %v365_v18 }
 0x115   : > { %669 = vmatmul.mubr.f32.gmra.mrb[50].mxu0 %v364_v19 }
 0x116   : > { %674 = vmatprep.mubr.f32.mxu0 %v367_v20 }
 0x119   : > { %675 = vmatmul.mubr.f32.gmra.mrb[52].mxu0 %v366_v21 }
 0x11a   : > { %680 = vmatprep.mubr.f32.mxu0 %v369_v22 }
 0x11d   : > { %681 = vmatmul.mubr.f32.gmra.mrb[54].mxu0 %v368_v23 }
 0x11e   : > { %686 = vmatprep.mubr.f32.mxu0 %v371_v24 }
 0x121   : > { %687 = vmatmul.mubr.f32.gmra.mrb[56].mxu0 %v370_v25 }
 0x122   : > { %692 = vmatprep.mubr.f32.mxu0 %v373_v26 }
 0x125   : > { %693 = vmatmul.mubr.f32.gmra.mrb[58].mxu0 %v372_v27 }
 0x126   : > { %698 = vmatprep.mubr.f32.mxu0 %v375_v28 }
 0x129   : > { %699 = vmatmul.mubr.f32.gmra.mrb[60].mxu0 %v374_v29 }
 0x12a   : > { %704 = vmatprep.mubr.f32.mxu0 %v377_v30 }
 0x12d   : > { %705 = vmatmul.mubr.f32.gmra.mrb[62].mxu0 %v376_v31 }
 0x184   : > { %v520_v39 = vpop.f32.mrb[0].mxu0 }
 0x185   : > { %v3744_v40 = vadd.f32 %v520_v39, %v3737_v37  ;;  %v522_v41 = vpop.f32.mrb[1].mxu0 }
 0x186   : > { %v3747_v42 = vadd.f32 %v522_v41, %v3741_v38 }
 0x188   : > { %v526_v43 = vpop.f32.mrb[2].mxu0  ;;  %v711_v44 = vmax.f32 %v3744_v40, %v3747_v42 }
 0x189   : > { %v3752_v45 = vadd.f32 %v526_v43, %v3737_v37  ;;  %v528_v46 = vpop.f32.mrb[3].mxu0 }
 0x18a   : > { %v3755_v47 = vadd.f32 %v528_v46, %v3741_v38  ;;  %712 = vmax.xlane.f32.xlu0 %v711_v44 }
 0x18c   : > { %v532_v48 = vpop.f32.mrb[4].mxu0  ;;  %v714_v49 = vmax.f32 %v3752_v45, %v3755_v47 }
 0x18d   : > { %v3760_v50 = vadd.f32 %v532_v48, %v3737_v37  ;;  %v534_v51 = vpop.f32.mrb[5].mxu0 }
 0x18e   : > { %v3763_v52 = vadd.f32 %v534_v51, %v3741_v38  ;;  %715 = vmax.xlane.f32.xlu0 %v714_v49 }
 0x190   : > { %v538_v53 = vpop.f32.mrb[6].mxu0  ;;  %v717_v54 = vmax.f32 %v3760_v50, %v3763_v52 }
 0x191   : > { %v3768_v55 = vadd.f32 %v538_v53, %v3737_v37  ;;  %v540_v56 = vpop.f32.mrb[7].mxu0 }
 0x192   : > { %v3771_v57 = vadd.f32 %v540_v56, %v3741_v38  ;;  %718 = vmax.xlane.f32.xlu1 %v717_v54 }
 0x194   : > { %v544_v58 = vpop.f32.mrb[8].mxu0  ;;  %v720_v59 = vmax.f32 %v3768_v55, %v3771_v57 }
 0x195   : > { %v3776_v60 = vadd.f32 %v544_v58, %v3737_v37  ;;  %v546_v61 = vpop.f32.mrb[9].mxu0 }
 0x196   : > { %v3779_v62 = vadd.f32 %v546_v61, %v3741_v38  ;;  %721 = vmax.xlane.f32.xlu1 %v720_v59 }
 0x198   : > { %v550_v63 = vpop.f32.mrb[10].mxu0  ;;  %v723_v0 = vmax.f32 %v3776_v60, %v3779_v62 }
 0x199   : > { %v3784_v1 = vadd.f32 %v550_v63, %v3737_v37  ;;  %v552_v2 = vpop.f32.mrb[11].mxu0 }
 0x19a   : > { %v3787_v3 = vadd.f32 %v552_v2, %v3741_v38  ;;  %724 = vmax.xlane.f32.xlu0 %v723_v0 }
 0x19c   : > { %v556_v4 = vpop.f32.mrb[12].mxu0  ;;  %v726_v5 = vmax.f32 %v3784_v1, %v3787_v3 }
 0x19d   : > { %v3792_v6 = vadd.f32 %v556_v4, %v3737_v37  ;;  %v558_v7 = vpop.f32.mrb[13].mxu0 }
 0x19e   : > { %v3795_v8 = vadd.f32 %v558_v7, %v3741_v38  ;;  %727 = vmax.xlane.f32.xlu1 %v726_v5 }
 0x1a0   : > { %v562_v9 = vpop.f32.mrb[14].mxu0  ;;  %v729_v10 = vmax.f32 %v3792_v6, %v3795_v8 }
 0x1a1   : > { %v3800_v11 = vadd.f32 %v562_v9, %v3737_v37  ;;  %v564_v12 = vpop.f32.mrb[15].mxu0 }
 0x1a2   : > { %v3803_v13 = vadd.f32 %v564_v12, %v3741_v38  ;;  %730 = vmax.xlane.f32.xlu0 %v729_v10 }
 0x1a4   : > { %v568_v14 = vpop.f32.mrb[16].mxu0  ;;  %v732_v15 = vmax.f32 %v3800_v11, %v3803_v13 }
 0x1a5   : > { %v3808_v16 = vadd.f32 %v568_v14, %v3737_v37  ;;  %v570_v17 = vpop.f32.mrb[17].mxu0 }
 0x1a6   : > { %v3811_v18 = vadd.f32 %v570_v17, %v3741_v38  ;;  %733 = vmax.xlane.f32.xlu1 %v732_v15 }
 0x1a8   : > { %v574_v19 = vpop.f32.mrb[18].mxu0  ;;  %v735_v20 = vmax.f32 %v3808_v16, %v3811_v18 }
 0x1a9   : > { %v3816_v21 = vadd.f32 %v574_v19, %v3737_v37  ;;  %v576_v22 = vpop.f32.mrb[19].mxu0 }
 0x1aa   : > { %v3819_v23 = vadd.f32 %v576_v22, %v3741_v38  ;;  %736 = vmax.xlane.f32.xlu0 %v735_v20 }
 0x1ac   : > { %v580_v24 = vpop.f32.mrb[20].mxu0  ;;  %v738_v25 = vmax.f32 %v3816_v21, %v3819_v23 }
 0x1ad   : > { %v3824_v26 = vadd.f32 %v580_v24, %v3737_v37  ;;  %v582_v27 = vpop.f32.mrb[21].mxu0 }
 0x1ae   : > { %v3827_v28 = vadd.f32 %v582_v27, %v3741_v38  ;;  %739 = vmax.xlane.f32.xlu1 %v738_v25 }
 0x1b0   : > { %v586_v29 = vpop.f32.mrb[22].mxu0  ;;  %v741_v30 = vmax.f32 %v3824_v26, %v3827_v28 }
 0x1b1   : > { %v3832_v31 = vadd.f32 %v586_v29, %v3737_v37  ;;  %v588_v32 = vpop.f32.mrb[23].mxu0 }
 0x1b2   : > { %v3835_v35 = vadd.f32 %v588_v32, %v3741_v38  ;;  %742 = vmax.xlane.f32.xlu0 %v741_v30 }
 0x1b4   : > { %v592_v39 = vpop.f32.mrb[24].mxu0  ;;  %v744_v41 = vmax.f32 %v3832_v31, %v3835_v35 }
 0x1b5   : > { %v3840_v43 = vadd.f32 %v592_v39, %v3737_v37  ;;  %v594_v44 = vpop.f32.mrb[25].mxu0 }
 0x1b6   : > { %v3843_v46 = vadd.f32 %v594_v44, %v3741_v38  ;;  %745 = vmax.xlane.f32.xlu1 %v744_v41 }
 0x1b8   : > { %v598_v48 = vpop.f32.mrb[26].mxu0  ;;  %v747_v49 = vmax.f32 %v3840_v43, %v3843_v46 }
 0x1b9   : > { %v3848_v51 = vadd.f32 %v598_v48, %v3737_v37  ;;  %v600_v53 = vpop.f32.mrb[27].mxu0 }
 0x1ba   : > { %v3851_v54 = vadd.f32 %v600_v53, %v3741_v38  ;;  %748 = vmax.xlane.f32.xlu0 %v747_v49 }
 0x1bc   : > { %v604_v56 = vpop.f32.mrb[28].mxu0  ;;  %v750_v58 = vmax.f32 %v3848_v51, %v3851_v54 }
 0x1bd   : > { %v3856_v59 = vadd.f32 %v604_v56, %v3737_v37  ;;  %v606_v61 = vpop.f32.mrb[29].mxu0 }
 0x1be   : > { %v3859_v63 = vadd.f32 %v606_v61, %v3741_v38  ;;  %751 = vmax.xlane.f32.xlu1 %v750_v58 }
 0x1c0   : > { %v610_v0 = vpop.f32.mrb[30].mxu0  ;;  %v753_v2 = vmax.f32 %v3856_v59, %v3859_v63 }
 0x1c1   : > { %v3864_v4 = vadd.f32 %v610_v0, %v3737_v37  ;;  %v612_v5 = vpop.f32.mrb[31].mxu0 }
 0x1c2   : > { %v3867_v7 = vadd.f32 %v612_v5, %v3741_v38  ;;  %754 = vmax.xlane.f32.xlu0 %v753_v2 }
 0x1c4   : > { %v616_v9 = vpop.f32.mrb[32].mxu0  ;;  %v756_v10 = vmax.f32 %v3864_v4, %v3867_v7 }
 0x1c5   : > { %v3872_v12 = vadd.f32 %v616_v9, %v3737_v37  ;;  %v618_v14 = vpop.f32.mrb[33].mxu0 }
 0x1c6   : > { %v3875_v15 = vadd.f32 %v618_v14, %v3741_v38  ;;  %757 = vmax.xlane.f32.xlu1 %v756_v10 }
 0x1c8   : > { %v622_v17 = vpop.f32.mrb[34].mxu0  ;;  %v759_v19 = vmax.f32 %v3872_v12, %v3875_v15 }
 0x1c9   : > { %v3880_v20 = vadd.f32 %v622_v17, %v3737_v37  ;;  %v624_v22 = vpop.f32.mrb[35].mxu0 }
 0x1ca   : > { %v3883_v24 = vadd.f32 %v624_v22, %v3741_v38  ;;  %760 = vmax.xlane.f32.xlu0 %v759_v19 }
 0x1cc   : > { %v628_v25 = vpop.f32.mrb[36].mxu0  ;;  %v762_v27 = vmax.f32 %v3880_v20, %v3883_v24 }
 0x1cd   : > { %v3888_v29 = vadd.f32 %v628_v25, %v3737_v37  ;;  %v630_v30 = vpop.f32.mrb[37].mxu0 }
 0x1ce   : > { %v3891_v32 = vadd.f32 %v630_v30, %v3741_v38  ;;  %763 = vmax.xlane.f32.xlu1 %v762_v27 }
 0x1d0   : > { %v634_v39 = vpop.f32.mrb[38].mxu0  ;;  %v765_v41 = vmax.f32 %v3888_v29, %v3891_v32 }
 0x1d1   : > { %v3896_v44 = vadd.f32 %v634_v39, %v3737_v37  ;;  %v636_v48 = vpop.f32.mrb[39].mxu0 }
 0x1d2   : > { %v3899_v49 = vadd.f32 %v636_v48, %v3741_v38  ;;  %766 = vmax.xlane.f32.xlu0 %v765_v41 }
 0x1d4   : > { %v640_v53 = vpop.f32.mrb[40].mxu0  ;;  %v768_v56 = vmax.f32 %v3896_v44, %v3899_v49 }
 0x1d5   : > { %v3904_v58 = vadd.f32 %v640_v53, %v3737_v37  ;;  %v642_v61 = vpop.f32.mrb[41].mxu0 }
 0x1d6   : > { %v3907_v0 = vadd.f32 %v642_v61, %v3741_v38  ;;  %769 = vmax.xlane.f32.xlu1 %v768_v56 }
 0x1d8   : > { %v646_v2 = vpop.f32.mrb[42].mxu0  ;;  %v771_v5 = vmax.f32 %v3904_v58, %v3907_v0 }
 0x1d9   : > { %v3912_v9 = vadd.f32 %v646_v2, %v3737_v37  ;;  %v648_v10 = vpop.f32.mrb[43].mxu0 }
 0x1da   : > { %v3915_v14 = vadd.f32 %v648_v10, %v3741_v38  ;;  %772 = vmax.xlane.f32.xlu0 %v771_v5 }
 0x1dc   : > { %v652_v17 = vpop.f32.mrb[44].mxu0  ;;  %v774_v19 = vmax.f32 %v3912_v9, %v3915_v14 }
 0x1dd   : > { %v3920_v22 = vadd.f32 %v652_v17, %v3737_v37  ;;  %v654_v25 = vpop.f32.mrb[45].mxu0 }
 0x1de   : > { %v3923_v27 = vadd.f32 %v654_v25, %v3741_v38  ;;  %775 = vmax.xlane.f32.xlu1 %v774_v19 }
 0x1e0   : > { %v658_v30 = vpop.f32.mrb[46].mxu0  ;;  %v777_v39 = vmax.f32 %v3920_v22, %v3923_v27 }
 0x1e1   : > { %v3928_v41 = vadd.f32 %v658_v30, %v3737_v37  ;;  %v660_v48 = vpop.f32.mrb[47].mxu0 }
 0x1e2   : > { %v3931_v53 = vadd.f32 %v660_v48, %v3741_v38  ;;  %778 = vmax.xlane.f32.xlu0 %v777_v39 }
 0x1e4   : > { %v664_v56 = vpop.f32.mrb[48].mxu0  ;;  %v780_v61 = vmax.f32 %v3928_v41, %v3931_v53 }
 0x1e5   : > { %v3936_v2 = vadd.f32 %v664_v56, %v3737_v37  ;;  %v666_v5 = vpop.f32.mrb[49].mxu0 }
 0x1e6   : > { %v3939_v10 = vadd.f32 %v666_v5, %v3741_v38  ;;  %781 = vmax.xlane.f32.xlu0 %v780_v61 }
 0x1e8   : > { %5364 = vst [vmem:[#allocation16_spill] sm:$0xff] %v3939_v10  ;;  %v670_v17 = vpop.f32.mrb[50].mxu0  ;;  %v783_v19 = vmax.f32 %v3936_v2, %v3939_v10 }
 0x1e9   : > { %v3944_v25 = vadd.f32 %v670_v17, %v3737_v37  ;;  %v672_v30 = vpop.f32.mrb[51].mxu0 }
 0x1ea   : > { %v3947_v39 = vadd.f32 %v672_v30, %v3741_v38  ;;  %784 = vmax.xlane.f32.xlu0 %v783_v19 }
 0x1eb   : > { %5365 = vst [vmem:[#allocation17_spill] sm:$0xff] %v3944_v25 }
 0x1ec   : > { %5366 = vst [vmem:[#allocation18_spill] sm:$0xff] %v3947_v39  ;;  %v676_v48 = vpop.f32.mrb[52].mxu0  ;;  %v786_v56 = vmax.f32 %v3944_v25, %v3947_v39 }
 0x1ed   : > { %v3952_v5 = vadd.f32 %v676_v48, %v3737_v37  ;;  %v678_v61 = vpop.f32.mrb[53].mxu0 }
 0x1ee   : > { %v3955_v36 = vadd.f32 %v678_v61, %v3741_v38  ;;  %787 = vmax.xlane.f32.xlu0 %v786_v56 }
 0x1ef   : > { %5367 = vst [vmem:[#allocation19_spill] sm:$0xff] %v3952_v5 }
 0x1f0   : > { %5368 = vst [vmem:[#allocation20_spill] sm:$0xff] %v3955_v36  ;;  %v682_v34 = vpop.f32.mrb[54].mxu0  ;;  %v789_v17 = vmax.f32 %v3952_v5, %v3955_v36 }
 0x1f1   : > { %v3960_v30 = vadd.f32 %v682_v34, %v3737_v37  ;;  %v684_v19 = vpop.f32.mrb[55].mxu0 }
 0x1f2   : > { %v3963_v33 = vadd.f32 %v684_v19, %v3741_v38  ;;  %790 = vmax.xlane.f32.xlu0 %v789_v17 }
 0x1f3   : > { %5369 = vst [vmem:[#allocation21_spill] sm:$0xff] %v3960_v30 }
 0x1f4   : > { %5370 = vst [vmem:[#allocation22_spill] sm:$0xff] %v3963_v33  ;;  %v688_v39 = vpop.f32.mrb[56].mxu0  ;;  %v792_v48 = vmax.f32 %v3960_v30, %v3963_v33 }
 0x1f5   : > { %v3968_v61 = vadd.f32 %v688_v39, %v3737_v37  ;;  %v690_v56 = vpop.f32.mrb[57].mxu0 }
 0x1f6   : > { %v3971_v25 = vadd.f32 %v690_v56, %v3741_v38  ;;  %793 = vmax.xlane.f32.xlu0 %v792_v48 }
 0x1f7   : > { %5371 = vst [vmem:[#allocation23_spill] sm:$0xff] %v3968_v61 }
 0x1f8   : > { %5372 = vst [vmem:[#allocation24_spill] sm:$0xff] %v3971_v25  ;;  %v694_v36 = vpop.f32.mrb[58].mxu0  ;;  %v795_v34 = vmax.f32 %v3968_v61, %v3971_v25 }
 0x1f9   : > { %v3976_v19 = vadd.f32 %v694_v36, %v3737_v37  ;;  %v696_v17 = vpop.f32.mrb[59].mxu0 }
 0x1fa   : > { %v3979_v5 = vadd.f32 %v696_v17, %v3741_v38  ;;  %796 = vmax.xlane.f32.xlu0 %v795_v34 }
 0x1fb   : > { %5373 = vst [vmem:[#allocation25_spill] sm:$0xff] %v3976_v19 }
 0x1fc   : > { %5374 = vst [vmem:[#allocation26_spill] sm:$0xff] %v3979_v5  ;;  %v700_v33 = vpop.f32.mrb[60].mxu0  ;;  %v798_v39 = vmax.f32 %v3976_v19, %v3979_v5 }
 0x1fd   : > { %v3984_v56 = vadd.f32 %v700_v33, %v3737_v37  ;;  %v702_v48 = vpop.f32.mrb[61].mxu0 }
 0x1fe   : > { %v3987_v30 = vadd.f32 %v702_v48, %v3741_v38  ;;  %799 = vmax.xlane.f32.xlu0 %v798_v39 }
 0x200   : > { %5375 = vst [vmem:[#allocation27_spill] sm:$0xff] %v3987_v30  ;;  %v706_v25 = vpop.f32.mrb[62].mxu0  ;;  %v801_v36 = vmax.f32 %v3984_v56, %v3987_v30 }
 0x201   : > { %v3992_v17 = vadd.f32 %v706_v25, %v3737_v37  ;;  %v708_v34 = vpop.f32.mrb[63].mxu0 }
 0x202   : > { %v3995_v61 = vadd.f32 %v708_v34, %v3741_v38  ;;  %802 = vmax.xlane.f32.xlu0 %v801_v36 }
 0x204   : > { %5376 = vst [vmem:[#allocation28_spill] sm:$0xff] %v3995_v61  ;;  %v804_v33 = vmax.f32 %v3992_v17, %v3995_v61 }
 0x206   : > { %805 = vmax.xlane.f32.xlu0 %v804_v33 }
 0x217   : > { %v713_v5 = vpop.xlane.xlu0 %712 }
 0x218   : > { %v807_v48 = vsub.f32 %v3744_v40, %v713_v5  ;;  %v808_v39 = vsub.f32 %v3747_v42, %v713_v5 }
 0x21a   : > { %v871_v19 = vmul.f32 1.442695, %v807_v48  ;;  %v873_v10 = vmul.f32 1.442695, %v808_v39 }
 0x21b   : > { %v716_v30 = vpop.xlane.xlu0 %715 }
 0x21c   : > { %2848 = vpow2.f32 %v871_v19  ;;  %v809_v37 = vsub.f32 %v3752_v45, %v716_v30  ;;  %v810_v25 = vsub.f32 %v3755_v47, %v716_v30 }
 0x21d   : > { %2850 = vpow2.f32 %v873_v10 }
 0x21e   : > { %v875_v38 = vmul.f32 1.442695, %v809_v37  ;;  %v877_v36 = vmul.f32 1.442695, %v810_v25 }
 0x21f   : > { %v719_v34 = vpop.xlane.xlu1 %718 }
 0x220   : > { %2852 = vpow2.f32 %v875_v38  ;;  %v811_v33 = vsub.f32 %v3760_v50, %v719_v34  ;;  %v812_v61 = vsub.f32 %v3763_v52, %v719_v34 }
 0x221   : > { %2854 = vpow2.f32 %v877_v36 }
 0x222   : > { %v879_v40 = vmul.f32 1.442695, %v811_v33  ;;  %v881_v42 = vmul.f32 1.442695, %v812_v61 }
 0x223   : > { %v722_v5 = vpop.xlane.xlu1 %721 }
 0x224   : > { %2856 = vpow2.f32 %v879_v40  ;;  %v813_v19 = vsub.f32 %v3768_v55, %v722_v5  ;;  %v814_v45 = vsub.f32 %v3771_v57, %v722_v5 }
 0x225   : > { %2858 = vpow2.f32 %v881_v42 }
 0x226   : > { %v4007_v47 = vpop.eup %2848  ;;  %v883_v10 = vmul.f32 1.442695, %v813_v19  ;;  %v885_v30 = vmul.f32 1.442695, %v814_v45 }
 0x227   : > { %v4009_v48 = vpop.eup %2850  ;;  %v725_v39 = vpop.xlane.xlu0 %724 }
 0x228   : > { %2860 = vpow2.f32 %v883_v10  ;;  %v815_v50 = vsub.f32 %v3776_v60, %v725_v39  ;;  %v816_v52 = vsub.f32 %v3779_v62, %v725_v39  ;;  %v999_v61 = vadd.f32 %v4009_v48, %v4007_v47 }
 0x229   : > { %2862 = vpow2.f32 %v885_v30 }
 0x22a   : > { %v4015_v55 = vpop.eup %2852  ;;  %v887_v57 = vmul.f32 1.442695, %v815_v50  ;;  %v889_v37 = vmul.f32 1.442695, %v816_v52  ;;  %1000 = vadd.xlane.f32.xlu1 %v999_v61 }
 0x22b   : > { %v4017_v25 = vpop.eup %2854  ;;  %v728_v38 = vpop.xlane.xlu1 %727 }
 0x22c   : > { %2864 = vpow2.f32 %v887_v57  ;;  %v817_v36 = vsub.f32 %v3784_v1, %v728_v38  ;;  %v818_v34 = vsub.f32 %v3787_v3, %v728_v38  ;;  %v1002_v60 = vadd.f32 %v4017_v25, %v4015_v55 }
 0x22d   : > { %2866 = vpow2.f32 %v889_v37 }
 0x22e   : > { %v4023_v62 = vpop.eup %2856  ;;  %v891_v33 = vmul.f32 1.442695, %v817_v36  ;;  %v893_v40 = vmul.f32 1.442695, %v818_v34  ;;  %1003 = vadd.xlane.f32.xlu1 %v1002_v60 }
 0x22f   : > { %v4025_v42 = vpop.eup %2858  ;;  %v731_v5 = vpop.xlane.xlu0 %730 }
 0x230   : > { %2868 = vpow2.f32 %v891_v33  ;;  %v819_v19 = vsub.f32 %v3792_v6, %v731_v5  ;;  %v820_v45 = vsub.f32 %v3795_v8, %v731_v5  ;;  %v1005_v1 = vadd.f32 %v4025_v42, %v4023_v62 }
 0x231   : > { %2870 = vpow2.f32 %v893_v40 }
 0x232   : > { %v4031_v3 = vpop.eup %2860  ;;  %v895_v10 = vmul.f32 1.442695, %v819_v19  ;;  %v897_v30 = vmul.f32 1.442695, %v820_v45  ;;  %1006 = vadd.xlane.f32.xlu1 %v1005_v1 }
 0x233   : > { %v4033_v39 = vpop.eup %2862  ;;  %v734_v50 = vpop.xlane.xlu1 %733 }
 0x234   : > { %2872 = vpow2.f32 %v895_v10  ;;  %v821_v52 = vsub.f32 %v3800_v11, %v734_v50  ;;  %v822_v61 = vsub.f32 %v3803_v13, %v734_v50  ;;  %v1008_v6 = vadd.f32 %v4033_v39, %v4031_v3 }
 0x235   : > { %2874 = vpow2.f32 %v897_v30 }
 0x236   : > { %v4039_v8 = vpop.eup %2864  ;;  %v899_v57 = vmul.f32 1.442695, %v821_v52  ;;  %v901_v37 = vmul.f32 1.442695, %v822_v61  ;;  %1009 = vadd.xlane.f32.xlu1 %v1008_v6 }
 0x237   : > { %v4041_v38 = vpop.eup %2866  ;;  %v737_v36 = vpop.xlane.xlu0 %736 }
 0x238   : > { %2876 = vpow2.f32 %v899_v57  ;;  %v823_v34 = vsub.f32 %v3808_v16, %v737_v36  ;;  %v824_v60 = vsub.f32 %v3811_v18, %v737_v36  ;;  %v1011_v11 = vadd.f32 %v4041_v38, %v4039_v8 }
 0x239   : > { %2878 = vpow2.f32 %v901_v37 }
 0x23a   : > { %v4047_v13 = vpop.eup %2868  ;;  %v903_v33 = vmul.f32 1.442695, %v823_v34  ;;  %v905_v40 = vmul.f32 1.442695, %v824_v60  ;;  %1012 = vadd.xlane.f32.xlu1 %v1011_v11 }
 0x23b   : > { %v4049_v5 = vpop.eup %2870  ;;  %v740_v19 = vpop.xlane.xlu1 %739 }
 0x23c   : > { %2880 = vpow2.f32 %v903_v33  ;;  %v825_v45 = vsub.f32 %v3816_v21, %v740_v19  ;;  %v826_v1 = vsub.f32 %v3819_v23, %v740_v19  ;;  %v1014_v16 = vadd.f32 %v4049_v5, %v4047_v13 }
 0x23d   : > { %2882 = vpow2.f32 %v905_v40 }
 0x23e   : > { %v4055_v18 = vpop.eup %2872  ;;  %v907_v10 = vmul.f32 1.442695, %v825_v45  ;;  %v909_v30 = vmul.f32 1.442695, %v826_v1  ;;  %1015 = vadd.xlane.f32.xlu1 %v1014_v16 }
 0x23f   : > { %v4057_v50 = vpop.eup %2874  ;;  %v743_v52 = vpop.xlane.xlu0 %742 }
 0x240   : > { %2884 = vpow2.f32 %v907_v10  ;;  %v827_v61 = vsub.f32 %v3824_v26, %v743_v52  ;;  %v828_v6 = vsub.f32 %v3827_v28, %v743_v52  ;;  %v1017_v21 = vadd.f32 %v4057_v50, %v4055_v18 }
 0x241   : > { %2886 = vpow2.f32 %v909_v30 }
 0x242   : > { %v4063_v23 = vpop.eup %2876  ;;  %v911_v57 = vmul.f32 1.442695, %v827_v61  ;;  %v913_v37 = vmul.f32 1.442695, %v828_v6  ;;  %1018 = vadd.xlane.f32.xlu1 %v1017_v21 }
 0x243   : > { %v4065_v36 = vpop.eup %2878  ;;  %v746_v34 = vpop.xlane.xlu1 %745 }
 0x244   : > { %2888 = vpow2.f32 %v911_v57  ;;  %v829_v60 = vsub.f32 %v3832_v31, %v746_v34  ;;  %v830_v11 = vsub.f32 %v3835_v35, %v746_v34  ;;  %v1020_v26 = vadd.f32 %v4065_v36, %v4063_v23 }
 0x245   : > { %2890 = vpow2.f32 %v913_v37 }
 0x246   : > { %v4071_v28 = vpop.eup %2880  ;;  %v915_v33 = vmul.f32 1.442695, %v829_v60  ;;  %v917_v40 = vmul.f32 1.442695, %v830_v11  ;;  %1021 = vadd.xlane.f32.xlu1 %v1020_v26 }
 0x247   : > { %v4073_v19 = vpop.eup %2882  ;;  %v749_v45 = vpop.xlane.xlu0 %748 }
 0x248   : > { %2892 = vpow2.f32 %v915_v33  ;;  %v831_v1 = vsub.f32 %v3840_v43, %v749_v45  ;;  %v832_v16 = vsub.f32 %v3843_v46, %v749_v45  ;;  %v1023_v31 = vadd.f32 %v4073_v19, %v4071_v28 }
 0x249   : > { %2894 = vpow2.f32 %v917_v40 }
 0x24a   : > { %v4079_v35 = vpop.eup %2884  ;;  %v919_v10 = vmul.f32 1.442695, %v831_v1  ;;  %v921_v30 = vmul.f32 1.442695, %v832_v16  ;;  %1024 = vadd.xlane.f32.xlu1 %v1023_v31 }
 0x24b   : > { %v4081_v52 = vpop.eup %2886  ;;  %v752_v61 = vpop.xlane.xlu1 %751 }
 0x24c   : > { %2896 = vpow2.f32 %v919_v10  ;;  %v833_v6 = vsub.f32 %v3848_v51, %v752_v61  ;;  %v834_v21 = vsub.f32 %v3851_v54, %v752_v61  ;;  %v1026_v43 = vadd.f32 %v4081_v52, %v4079_v35 }
 0x24d   : > { %2898 = vpow2.f32 %v921_v30 }
 0x24e   : > { %v4087_v46 = vpop.eup %2888  ;;  %v923_v57 = vmul.f32 1.442695, %v833_v6  ;;  %v925_v37 = vmul.f32 1.442695, %v834_v21  ;;  %1027 = vadd.xlane.f32.xlu1 %v1026_v43 }
 0x24f   : > { %v4089_v34 = vpop.eup %2890  ;;  %v755_v60 = vpop.xlane.xlu0 %754 }
 0x250   : > { %2900 = vpow2.f32 %v923_v57  ;;  %v835_v11 = vsub.f32 %v3856_v59, %v755_v60  ;;  %v836_v26 = vsub.f32 %v3859_v63, %v755_v60  ;;  %v1029_v51 = vadd.f32 %v4089_v34, %v4087_v46 }
 0x251   : > { %2902 = vpow2.f32 %v925_v37 }
 0x252   : > { %v4095_v54 = vpop.eup %2892  ;;  %v927_v33 = vmul.f32 1.442695, %v835_v11  ;;  %v929_v40 = vmul.f32 1.442695, %v836_v26  ;;  %1030 = vadd.xlane.f32.xlu0 %v1029_v51 }
 0x253   : > { %v4097_v45 = vpop.eup %2894  ;;  %v758_v1 = vpop.xlane.xlu1 %757 }
 0x254   : > { %2904 = vpow2.f32 %v927_v33  ;;  %v837_v16 = vsub.f32 %v3864_v4, %v758_v1  ;;  %v838_v31 = vsub.f32 %v3867_v7, %v758_v1  ;;  %v1032_v59 = vadd.f32 %v4097_v45, %v4095_v54 }
 0x255   : > { %2906 = vpow2.f32 %v929_v40 }
 0x256   : > { %v4103_v63 = vpop.eup %2896  ;;  %v931_v10 = vmul.f32 1.442695, %v837_v16  ;;  %v933_v30 = vmul.f32 1.442695, %v838_v31  ;;  %1033 = vadd.xlane.f32.xlu1 %v1032_v59 }
 0x257   : > { %v4105_v61 = vpop.eup %2898  ;;  %v761_v6 = vpop.xlane.xlu0 %760 }
 0x258   : > { %2908 = vpow2.f32 %v931_v10  ;;  %v839_v21 = vsub.f32 %v3872_v12, %v761_v6  ;;  %v840_v43 = vsub.f32 %v3875_v15, %v761_v6  ;;  %v1035_v4 = vadd.f32 %v4105_v61, %v4103_v63 }
 0x259   : > { %2910 = vpow2.f32 %v933_v30 }
 0x25a   : > { %v4111_v7 = vpop.eup %2900  ;;  %v935_v57 = vmul.f32 1.442695, %v839_v21  ;;  %v937_v37 = vmul.f32 1.442695, %v840_v43  ;;  %1036 = vadd.xlane.f32.xlu0 %v1035_v4 }
 0x25b   : > { %v4113_v60 = vpop.eup %2902  ;;  %v764_v11 = vpop.xlane.xlu1 %763 }
 0x25c   : > { %2912 = vpow2.f32 %v935_v57  ;;  %v841_v26 = vsub.f32 %v3880_v20, %v764_v11  ;;  %v842_v51 = vsub.f32 %v3883_v24, %v764_v11  ;;  %v1038_v12 = vadd.f32 %v4113_v60, %v4111_v7 }
 0x25d   : > { %2914 = vpow2.f32 %v937_v37 }
 0x25e   : > { %v4119_v15 = vpop.eup %2904  ;;  %v939_v33 = vmul.f32 1.442695, %v841_v26  ;;  %v941_v40 = vmul.f32 1.442695, %v842_v51  ;;  %1039 = vadd.xlane.f32.xlu1 %v1038_v12 }
 0x25f   : > { %v4121_v1 = vpop.eup %2906  ;;  %v767_v16 = vpop.xlane.xlu0 %766 }
 0x260   : > { %2916 = vpow2.f32 %v939_v33  ;;  %v843_v31 = vsub.f32 %v3888_v29, %v767_v16  ;;  %v844_v59 = vsub.f32 %v3891_v32, %v767_v16  ;;  %v1041_v20 = vadd.f32 %v4121_v1, %v4119_v15 }
 0x261   : > { %2918 = vpow2.f32 %v941_v40 }
 0x262   : > { %v4127_v24 = vpop.eup %2908  ;;  %v943_v10 = vmul.f32 1.442695, %v843_v31  ;;  %v945_v30 = vmul.f32 1.442695, %v844_v59  ;;  %1042 = vadd.xlane.f32.xlu0 %v1041_v20 }
 0x263   : > { %v4129_v6 = vpop.eup %2910  ;;  %v770_v21 = vpop.xlane.xlu1 %769 }
 0x264   : > { %2920 = vpow2.f32 %v943_v10  ;;  %v845_v43 = vsub.f32 %v3896_v44, %v770_v21  ;;  %v846_v4 = vsub.f32 %v3899_v49, %v770_v21  ;;  %v1044_v29 = vadd.f32 %v4129_v6, %v4127_v24 }
 0x265   : > { %2922 = vpow2.f32 %v945_v30 }
 0x266   : > { %v4135_v32 = vpop.eup %2912  ;;  %v947_v57 = vmul.f32 1.442695, %v845_v43  ;;  %v949_v37 = vmul.f32 1.442695, %v846_v4  ;;  %1045 = vadd.xlane.f32.xlu1 %v1044_v29 }
 0x267   : > { %v4137_v11 = vpop.eup %2914  ;;  %v773_v26 = vpop.xlane.xlu0 %772 }
 0x268   : > { %2924 = vpow2.f32 %v947_v57  ;;  %v847_v51 = vsub.f32 %v3904_v58, %v773_v26  ;;  %v848_v12 = vsub.f32 %v3907_v0, %v773_v26  ;;  %v1047_v44 = vadd.f32 %v4137_v11, %v4135_v32 }
 0x269   : > { %2926 = vpow2.f32 %v949_v37 }
 0x26a   : > { %v4143_v49 = vpop.eup %2916  ;;  %v951_v33 = vmul.f32 1.442695, %v847_v51  ;;  %v953_v40 = vmul.f32 1.442695, %v848_v12  ;;  %1048 = vadd.xlane.f32.xlu0 %v1047_v44 }
 0x26b   : > { %v4145_v16 = vpop.eup %2918  ;;  %v776_v31 = vpop.xlane.xlu1 %775 }
 0x26c   : > { %2928 = vpow2.f32 %v951_v33  ;;  %v849_v59 = vsub.f32 %v3912_v9, %v776_v31  ;;  %v850_v20 = vsub.f32 %v3915_v14, %v776_v31  ;;  %v1050_v58 = vadd.f32 %v4145_v16, %v4143_v49 }
 0x26d   : > { %2930 = vpow2.f32 %v953_v40 }
 0x26e   : > { %v4151_v0 = vpop.eup %2920  ;;  %v955_v10 = vmul.f32 1.442695, %v849_v59  ;;  %v957_v30 = vmul.f32 1.442695, %v850_v20  ;;  %1051 = vadd.xlane.f32.xlu1 %v1050_v58  ;;  %v5378_v58 = vld [vmem:[#allocation16_spill] sm:$0xff] }
 0x26f   : > { %v4153_v21 = vpop.eup %2922  ;;  %v779_v43 = vpop.xlane.xlu0 %778 }
 0x270   : > { %2932 = vpow2.f32 %v955_v10  ;;  %v851_v4 = vsub.f32 %v3920_v22, %v779_v43  ;;  %v852_v29 = vsub.f32 %v3923_v27, %v779_v43  ;;  %v1053_v9 = vadd.f32 %v4153_v21, %v4151_v0 }
 0x271   : > { %2934 = vpow2.f32 %v957_v30 }
 0x272   : > { %v4159_v14 = vpop.eup %2924  ;;  %v959_v57 = vmul.f32 1.442695, %v851_v4  ;;  %v961_v37 = vmul.f32 1.442695, %v852_v29  ;;  %1054 = vadd.xlane.f32.xlu0 %v1053_v9  ;;  %v5381_v9 = vld [vmem:[#allocation17_spill] sm:$0xff] }
 0x273   : > { %v4161_v26 = vpop.eup %2926  ;;  %v782_v51 = vpop.xlane.xlu0 %781 }
 0x274   : > { %2936 = vpow2.f32 %v959_v57  ;;  %v853_v12 = vsub.f32 %v3928_v41, %v782_v51  ;;  %v854_v44 = vsub.f32 %v3931_v53, %v782_v51  ;;  %v1056_v22 = vadd.f32 %v4161_v26, %v4159_v14 }
 0x275   : > { %2938 = vpow2.f32 %v961_v37  ;;  %v5382_v37 = vld [vmem:[#allocation18_spill] sm:$0xff] }
 0x276   : > { %v4167_v27 = vpop.eup %2928  ;;  %v963_v33 = vmul.f32 1.442695, %v853_v12  ;;  %v965_v40 = vmul.f32 1.442695, %v854_v44  ;;  %1057 = vadd.xlane.f32.xlu1 %v1056_v22 }
 0x277   : > { %v4169_v31 = vpop.eup %2930  ;;  %v785_v59 = vpop.xlane.xlu0 %784 }
 0x278   : > { %5377 = vst [vmem:[#allocation29_spill] sm:$0xff] %v4169_v31  ;;  %2940 = vpow2.f32 %v963_v33  ;;  %v855_v20 = vsub.f32 %v3936_v2, %v785_v59  ;;  %v856_v10 = vsub.f32 %v5378_v58, %v785_v59  ;;  %v1059_v41 = vadd.f32 %v4169_v31, %v4167_v27  ;;  %v5385_v59 = vld [vmem:[#allocation19_spill] sm:$0xff]  ;;  %v5386_v58 = vld [vmem:[#allocation20_spill] sm:$0xff] }
 0x279   : > { %2942 = vpow2.f32 %v965_v40 }
 0x27a   : > { %v4175_v53 = vpop.eup %2932  ;;  %v967_v30 = vmul.f32 1.442695, %v855_v20  ;;  %v969_v43 = vmul.f32 1.442695, %v856_v10  ;;  %1060 = vadd.xlane.f32.xlu0 %v1059_v41 }
 0x27b   : > { %5379 = vst [vmem:[#allocation16_spill] sm:$0xff] %v4175_v53  ;;  %v4177_v4 = vpop.eup %2934  ;;  %v788_v29 = vpop.xlane.xlu0 %787 }
 0x27c   : > { %5380 = vst [vmem:[#allocation30_spill] sm:$0xff] %v4177_v4  ;;  %2944 = vpow2.f32 %v967_v30  ;;  %v857_v57 = vsub.f32 %v5381_v9, %v788_v29  ;;  %v858_v51 = vsub.f32 %v5382_v37, %v788_v29  ;;  %v1062_v2 = vadd.f32 %v4177_v4, %v4175_v53  ;;  %v5389_v37 = vld [vmem:[#allocation21_spill] sm:$0xff] }
 0x27d   : > { %2946 = vpow2.f32 %v969_v43 }
 0x27e   : > { %v4183_v12 = vpop.eup %2936  ;;  %v971_v44 = vmul.f32 1.442695, %v857_v57  ;;  %v973_v22 = vmul.f32 1.442695, %v858_v51  ;;  %1063 = vadd.xlane.f32.xlu1 %v1062_v2  ;;  %v5390_v2 = vld [vmem:[#allocation22_spill] sm:$0xff] }
 0x27f   : > { %5383 = vst [vmem:[#allocation17_spill] sm:$0xff] %v4183_v12  ;;  %v4185_v33 = vpop.eup %2938  ;;  %v791_v40 = vpop.xlane.xlu0 %790 }
 0x280   : > { %5384 = vst [vmem:[#allocation18_spill] sm:$0xff] %v4185_v33  ;;  %2948 = vpow2.f32 %v971_v44  ;;  %v859_v20 = vsub.f32 %v5385_v59, %v791_v40  ;;  %v860_v10 = vsub.f32 %v5386_v58, %v791_v40  ;;  %v1065_v41 = vadd.f32 %v4185_v33, %v4183_v12 }
 0x281   : > { %2950 = vpow2.f32 %v973_v22 }
 0x282   : > { %v4191_v30 = vpop.eup %2940  ;;  %v975_v43 = vmul.f32 1.442695, %v859_v20  ;;  %v977_v29 = vmul.f32 1.442695, %v860_v10  ;;  %1066 = vadd.xlane.f32.xlu0 %v1065_v41  ;;  %v5393_v41 = vld [vmem:[#allocation23_spill] sm:$0xff] }
 0x283   : > { %5387 = vst [vmem:[#allocation19_spill] sm:$0xff] %v4191_v30  ;;  %v4193_v9 = vpop.eup %2942  ;;  %v794_v57 = vpop.xlane.xlu0 %793 }
 0x284   : > { %5388 = vst [vmem:[#allocation20_spill] sm:$0xff] %v4193_v9  ;;  %2952 = vpow2.f32 %v975_v43  ;;  %v861_v51 = vsub.f32 %v5389_v37, %v794_v57  ;;  %v862_v44 = vsub.f32 %v5390_v2, %v794_v57  ;;  %v1068_v40 = vadd.f32 %v4193_v9, %v4191_v30  ;;  %v5394_v43 = vld [vmem:[#allocation24_spill] sm:$0xff] }
 0x285   : > { %2954 = vpow2.f32 %v977_v29 }
 0x286   : > { %v4199_v59 = vpop.eup %2944  ;;  %v979_v22 = vmul.f32 1.442695, %v861_v51  ;;  %v981_v58 = vmul.f32 1.442695, %v862_v44  ;;  %1069 = vadd.xlane.f32.xlu1 %v1068_v40  ;;  %v5397_v40 = vld [vmem:[#allocation25_spill] sm:$0xff] }
 0x287   : > { %5391 = vst [vmem:[#allocation21_spill] sm:$0xff] %v4199_v59  ;;  %v4201_v20 = vpop.eup %2946  ;;  %v797_v10 = vpop.xlane.xlu0 %796 }
 0x288   : > { %5392 = vst [vmem:[#allocation22_spill] sm:$0xff] %v4201_v20  ;;  %2956 = vpow2.f32 %v979_v22  ;;  %v863_v33 = vsub.f32 %v5393_v41, %v797_v10  ;;  %v864_v12 = vsub.f32 %v5394_v43, %v797_v10  ;;  %v1071_v57 = vadd.f32 %v4201_v20, %v4199_v59  ;;  %v5398_v22 = vld [vmem:[#allocation26_spill] sm:$0xff] }
 0x289   : > { %2958 = vpow2.f32 %v981_v58 }
 0x28a   : > { %v4207_v37 = vpop.eup %2948  ;;  %v983_v29 = vmul.f32 1.442695, %v863_v33  ;;  %v985_v2 = vmul.f32 1.442695, %v864_v12  ;;  %1072 = vadd.xlane.f32.xlu0 %v1071_v57 }
 0x28b   : > { %5395 = vst [vmem:[#allocation23_spill] sm:$0xff] %v4207_v37  ;;  %v4209_v51 = vpop.eup %2950  ;;  %v800_v44 = vpop.xlane.xlu0 %799 }
 0x28c   : > { %5396 = vst [vmem:[#allocation24_spill] sm:$0xff] %v4209_v51  ;;  %2960 = vpow2.f32 %v983_v29  ;;  %v865_v9 = vsub.f32 %v5397_v40, %v800_v44  ;;  %v866_v30 = vsub.f32 %v5398_v22, %v800_v44  ;;  %v1074_v10 = vadd.f32 %v4209_v51, %v4207_v37  ;;  %v5401_v29 = vld [vmem:[#allocation27_spill] sm:$0xff] }
 0x28d   : > { %2962 = vpow2.f32 %v985_v2 }
 0x28e   : > { %v4215_v41 = vpop.eup %2952  ;;  %v987_v58 = vmul.f32 1.442695, %v865_v9  ;;  %v989_v43 = vmul.f32 1.442695, %v866_v30  ;;  %1075 = vadd.xlane.f32.xlu1 %v1074_v10 }
 0x28f   : > { %5399 = vst [vmem:[#allocation25_spill] sm:$0xff] %v4215_v41  ;;  %v4217_v33 = vpop.eup %2954  ;;  %v803_v12 = vpop.xlane.xlu0 %802 }
 0x290   : > { %5400 = vst [vmem:[#allocation26_spill] sm:$0xff] %v4217_v33  ;;  %2964 = vpow2.f32 %v987_v58  ;;  %v867_v57 = vsub.f32 %v3984_v56, %v803_v12  ;;  %v868_v20 = vsub.f32 %v5401_v29, %v803_v12  ;;  %v1077_v44 = vadd.f32 %v4217_v33, %v4215_v41  ;;  %v5404_v58 = vld [vmem:[#allocation28_spill] sm:$0xff] }
 0x291   : > { %2966 = vpow2.f32 %v989_v43 }
 0x292   : > { %v4223_v40 = vpop.eup %2956  ;;  %v991_v2 = vmul.f32 1.442695, %v867_v57  ;;  %v993_v22 = vmul.f32 1.442695, %v868_v20  ;;  %1078 = vadd.xlane.f32.xlu0 %v1077_v44 }
 0x293   : > { %5402 = vst [vmem:[#allocation27_spill] sm:$0xff] %v4223_v40  ;;  %v4225_v9 = vpop.eup %2958  ;;  %v806_v30 = vpop.xlane.xlu0 %805 }
 0x294   : > { %5403 = vst [vmem:[#allocation31_spill] sm:$0xff] %v4225_v9  ;;  %2968 = vpow2.f32 %v991_v2  ;;  %v869_v10 = vsub.f32 %v3992_v17, %v806_v30  ;;  %v870_v51 = vsub.f32 %v5404_v58, %v806_v30  ;;  %v1080_v56 = vadd.f32 %v4225_v9, %v4223_v40 }
 0x295   : > { %2970 = vpow2.f32 %v993_v22 }
 0x296   : > { %v4231_v12 = vpop.eup %2960  ;;  %v995_v43 = vmul.f32 1.442695, %v869_v10  ;;  %v997_v29 = vmul.f32 1.442695, %v870_v51  ;;  %1081 = vadd.xlane.f32.xlu1 %v1080_v56 }
 0x297   : > { %5405 = vst [vmem:[#allocation28_spill] sm:$0xff] %v4231_v12  ;;  %v4233_v57 = vpop.eup %2962 }
 0x298   : > { %5406 = vst [vmem:[#allocation32_spill] sm:$0xff] %v4233_v57  ;;  %2972 = vpow2.f32 %v995_v43  ;;  %v1083_v20 = vadd.f32 %v4233_v57, %v4231_v12 }
 0x299   : > { %2974 = vpow2.f32 %v997_v29 }
 0x29a   : > { %v4237_v44 = vpop.eup %2964  ;;  %1084 = vadd.xlane.f32.xlu1 %v1083_v20 }
 0x29b   : > { %5407 = vst [vmem:[#allocation33_spill] sm:$0xff] %v4237_v44  ;;  %v4239_v17 = vpop.eup %2966 }
 0x29c   : > { %5408 = vst [vmem:[#allocation34_spill] sm:$0xff] %v4239_v17  ;;  %v1086_v2 = vadd.f32 %v4239_v17, %v4237_v44 }
 0x29e   : > { %v4243_v22 = vpop.eup %2968  ;;  %1087 = vadd.xlane.f32.xlu1 %v1086_v2 }
 0x29f   : > { %5409 = vst [vmem:[#allocation35_spill] sm:$0xff] %v4243_v22  ;;  %v4245_v51 = vpop.eup %2970 }
 0x2a0   : > { %5410 = vst [vmem:[#allocation36_spill] sm:$0xff] %v4245_v51  ;;  %v1089_v30 = vadd.f32 %v4245_v51, %v4243_v22 }
 0x2a2   : > { %v4249_v10 = vpop.eup %2972  ;;  %1090 = vadd.xlane.f32.xlu1 %v1089_v30 }
 0x2a3   : > { %5411 = vst [vmem:[#allocation37_spill] sm:$0xff] %v4249_v10  ;;  %v4251_v58 = vpop.eup %2974 }
 0x2a4   : > { %5412 = vst [vmem:[#allocation38_spill] sm:$0xff] %v4251_v58  ;;  %v1092_v56 = vadd.f32 %v4251_v58, %v4249_v10 }
 0x2a6   : > { %1093 = vadd.xlane.f32.xlu1 %v1092_v56 }
 0x2b7   : > { %v1001_v43 = vpop.xlane.xlu1 %1000 }
 0x2b8   : > { %2976 = vrcp.f32 %v1001_v43 }
 0x2bb   : > { %v1004_v29 = vpop.xlane.xlu1 %1003 }
 0x2bc   : > { %2978 = vrcp.f32 %v1004_v29 }
 0x2bf   : > { %v1007_v20 = vpop.xlane.xlu1 %1006 }
 0x2c0   : > { %2980 = vrcp.f32 %v1007_v20 }
 0x2c2   : > { %v2977_v2 = vpop.eup %2976 }
 0x2c3   : > { %v1010_v17 = vpop.xlane.xlu1 %1009  ;;  %v1127_v44 = vmul.f32 %v2977_v2, %v4007_v47  ;;  %v1128_v51 = vmul.f32 %v2977_v2, %v4009_v48 }
 0x2c4   : > { %2982 = vrcp.f32 %v1010_v17 }
 0x2c5   : > { %v2564_v30 = vadd.f32 -0.0025, %v1127_v44  ;;  %v2565_v22 = vadd.f32 -0.0025, %v1128_v51 }
 0x2c6   : > { %v2979_v57 = vpop.eup %2978 }
 0x2c7   : > { %v1013_v12 = vpop.xlane.xlu1 %1012  ;;  %v1383_v9 = vand.u32 2147483647, %v2564_v30  ;;  %v1384_v58 = vand.u32 2147483647, %v2565_v22  ;;  %v1129_v56 = vmul.f32 %v2979_v57, %v4015_v55  ;;  %v1130_v43 = vmul.f32 %v2979_v57, %v4017_v25 }
 0x2c8   : > { %2984 = vrcp.f32 %v1013_v12  ;;  %v1255_v40 = vmax.f32 %v2564_v30, 0.0  ;;  %v1256_v25 = vmax.f32 %v2565_v22, 0.0 }
 0x2c9   : > { %v1447_v29 = vadd.f32 1e-12, %v1383_v9  ;;  %v1448_v20 = vadd.f32 1e-12, %v1384_v58  ;;  %v2566_v33 = vadd.f32 -0.0025, %v1129_v56 }
 0x2ca   : > { %v2981_v10 = vpop.eup %2980  ;;  %v2567_v47 = vadd.f32 -0.0025, %v1130_v43  ;;  %v1319_v9 = vmul.f32 %v1255_v40, %v1127_v44 }
 0x2cb   : > { %v1016_v41 = vpop.xlane.xlu1 %1015  ;;  %2986 = vrcp.f32 %v1447_v29  ;;  %v1131_v48 = vmul.f32 %v2981_v10, %v4023_v62  ;;  %v1132_v17 = vmul.f32 %v2981_v10, %v4025_v42  ;;  %v1385_v2 = vand.u32 2147483647, %v2566_v33  ;;  %v1994_v10 = vld [vmem:[#allocation7 + $0x18] sm:$0xff] }
 0x2cc   : > { %2988 = vrcp.f32 %v1016_v41  ;;  %v1386_v12 = vand.u32 2147483647, %v2567_v47  ;;  %v1257_v30 = vmax.f32 %v2566_v33, 0.0  ;;  %v1258_v4 = vmax.f32 %v2567_v47, 0.0  ;;  %v1992_v41 = vld [vmem:[#allocation7 + $0x8] sm:$0xff] }
 0x2cd   : > { %2990 = vrcp.f32 %v1448_v20  ;;  %v2568_v37 = vadd.f32 -0.0025, %v1131_v48  ;;  %v2569_v55 = vadd.f32 -0.0025, %v1132_v17  ;;  %v1449_v57 = vadd.f32 1e-12, %v1385_v2 }
 0x2ce   : > { %v2983_v59 = vpop.eup %2982  ;;  %v1450_v53 = vadd.f32 1e-12, %v1386_v12  ;;  %v1320_v12 = vmul.f32 %v1256_v25, %v1128_v51 }
 0x2cf   : > { %v1019_v58 = vpop.xlane.xlu1 %1018  ;;  %v1387_v31 = vand.u32 2147483647, %v2568_v37  ;;  %v1388_v29 = vand.u32 2147483647, %v2569_v55  ;;  %v4262_v62 = vmul.f32 %v2983_v59, %v4031_v3  ;;  %v4265_v42 = vmul.f32 %v2983_v59, %v4033_v39 }
 0x2d0   : > { %2992 = vrcp.f32 %v1019_v58  ;;  %v1259_v20 = vmax.f32 %v2568_v37, 0.0  ;;  %v1260_v22 = vmax.f32 %v2569_v55, 0.0  ;;  %v2708_v37 = vpack.c.bf16 %v1994_v10, %v1992_v41 }
 0x2d1   : > { %2994 = vrcp.f32 %v1449_v57  ;;  %v1451_v40 = vadd.f32 1e-12, %v1387_v31  ;;  %v1452_v33 = vadd.f32 1e-12, %v1388_v29  ;;  %v4268_v47 = vadd.f32 -0.0025, %v4262_v62 }
 0x2d2   : > { %v2985_v44 = vpop.eup %2984  ;;  %2996 = vrcp.f32 %v1450_v53  ;;  %v4271_v2 = vadd.f32 -0.0025, %v4265_v42  ;;  %v1321_v31 = vmul.f32 %v1257_v30, %v1129_v56  ;;  %v1322_v55 = vmul.f32 %v1258_v4, %v1130_v43  ;;  %2709 = vmatprep.subr.bf16.mxu1 %v2708_v37 }
 0x2d3   : > { %v1022_v3 = vpop.xlane.xlu1 %1021  ;;  %2998 = vrcp.f32 %v1451_v40  ;;  %v4274_v39 = vmul.f32 %v2985_v44, %v4039_v8  ;;  %v4277_v59 = vmul.f32 %v2985_v44, %v4041_v38  ;;  %v1389_v53 = vand.u32 2147483647, %v4268_v47 }
 0x2d4   : > { %3000 = vrcp.f32 %v1452_v33  ;;  %v1390_v58 = vand.u32 2147483647, %v4271_v2  ;;  %v1323_v41 = vmul.f32 %v1259_v20, %v1131_v48  ;;  %v1324_v43 = vmul.f32 %v1260_v22, %v1132_v17 }
 0x2d5   : > { %v2987_v57 = vpop.eup %2986  ;;  %v2572_v29 = vadd.f32 -0.0025, %v4274_v39  ;;  %v4283_v40 = vadd.f32 -0.0025, %v4277_v59  ;;  %3002 = vrcp.f32 %v1022_v3  ;;  %v1453_v51 = vadd.f32 1e-12, %v1389_v53 }
 0x2d6   : > { %v2989_v8 = vpop.eup %2988  ;;  %v4285_v38 = vmul.f32 %v2987_v57, %v1319_v9  ;;  %v1261_v25 = vmax.f32 %v4268_v47, 0.0  ;;  %v1454_v30 = vadd.f32 1e-12, %v1390_v58  ;;  %v1262_v3 = vmax.f32 %v4271_v2, 0.0 }
 0x2d7   : > { %v2991_v56 = vpop.eup %2990  ;;  %v1025_v4 = vpop.xlane.xlu1 %1024  ;;  %v1391_v10 = vand.u32 2147483647, %v2572_v29  ;;  %v1392_v37 = vand.u32 2147483647, %v4283_v40  ;;  %v1263_v9 = vmax.f32 %v2572_v29, 0.0  ;;  %v4295_v22 = vmul.f32 %v2989_v8, %v4047_v13 }
 0x2d8   : > { %3004 = vrcp.f32 %v1025_v4  ;;  %v4288_v44 = vmul.f32 %v2991_v56, %v1320_v12  ;;  %v1639_v33 = vand.u32 2147483647, %v4285_v38  ;;  %v1264_v57 = vmax.f32 %v4283_v40, 0.0 }
 0x2d9   : > { %3006 = vrcp.f32 %v1453_v51  ;;  %v1455_v48 = vadd.f32 1e-12, %v1391_v10  ;;  %v1456_v17 = vadd.f32 1e-12, %v1392_v37  ;;  %v4299_v58 = vmul.f32 %v2989_v8, %v4049_v5 }
 0x2da   : > { %v2993_v20 = vpop.eup %2992  ;;  %v1640_v53 = vand.u32 2147483647, %v4288_v44  ;;  %3008 = vrcp.f32 %v1454_v30  ;;  %v4307_v4 = vadd.f32 -0.0025, %v4295_v22  ;;  %v1325_v37 = vmul.f32 %v1261_v25, %v4262_v62 }
 0x2db   : > { %v2995_v47 = vpop.eup %2994  ;;  %v1028_v12 = vpop.xlane.xlu1 %1027  ;;  %3010 = vrcp.f32 %v1455_v48  ;;  %v4302_v2 = vmul.f32 %v2993_v20, %v4055_v18  ;;  %v2575_v40 = vadd.f32 -0.0025, %v4299_v58  ;;  %v4313_v5 = vmul.f32 %v2993_v20, %v4057_v50 }
 0x2dc   : > { %v2997_v29 = vpop.eup %2996  ;;  %3012 = vrcp.f32 %v1028_v12  ;;  %v1703_v51 = vadd.f32 %v1640_v53, %v1639_v33  ;;  %v4304_v56 = vmul.f32 %v2995_v47, %v1321_v31  ;;  %v1393_v31 = vand.u32 2147483647, %v4307_v4 }
 0x2dd   : > { %v2999_v13 = vpop.eup %2998  ;;  %v4309_v30 = vmul.f32 %v2997_v29, %v1322_v55  ;;  %3014 = vrcp.f32 %v1456_v17  ;;  %v4320_v10 = vadd.f32 -0.0025, %v4302_v2  ;;  %v1394_v48 = vand.u32 2147483647, %v2575_v40 }
 0x2de   : > { %5413 = vst [vmem:[#allocation39_spill] sm:$0xff] %v4304_v56  ;;  %1704 = vadd.xlane.f32.xlu0 %v1703_v51  ;;  %v1641_v18 = vand.u32 2147483647, %v4304_v56  ;;  %v4316_v8 = vmul.f32 %v2999_v13, %v1323_v41  ;;  %v3001_v33 = vpop.eup %3000  ;;  %v1326_v20 = vmul.f32 %v1262_v3, %v4265_v42  ;;  %v1327_v41 = vmul.f32 %v1263_v9, %v4274_v39 }
 0x2df   : > { %5414 = vst [vmem:[#allocation40_spill] sm:$0xff] %v4309_v30  ;;  %v1642_v55 = vand.u32 2147483647, %v4309_v30  ;;  %v3003_v53 = vpop.eup %3002  ;;  %v4324_v17 = vmul.f32 %v3001_v33, %v1324_v43  ;;  %v1031_v47 = vpop.xlane.xlu0 %1030  ;;  %v1265_v29 = vmax.f32 %v4307_v4, 0.0  ;;  %v1457_v51 = vadd.f32 1e-12, %v1393_v31 }
 0x2e0   : > { %v1643_v50 = vand.u32 2147483647, %v4316_v8  ;;  %v1458_v13 = vadd.f32 1e-12, %v1394_v48  ;;  %v1328_v62 = vmul.f32 %v1264_v57, %v4277_v59  ;;  %v4333_v43 = vadd.f32 -0.0025, %v4313_v5 }
 0x2e1   : > { %v1706_v12 = vadd.f32 %v1642_v55, %v1641_v18  ;;  %v1644_v30 = vand.u32 2147483647, %v4324_v17  ;;  %v1395_v25 = vand.u32 2147483647, %v4320_v10  ;;  %v1266_v42 = vmax.f32 %v2575_v40, 0.0 }
 0x2e2   : > { %v3005_v56 = vpop.eup %3004  ;;  %3016 = vrcp.f32 %v1457_v51  ;;  %v4337_v39 = vmul.f32 %v3003_v53, %v4063_v23  ;;  %v4340_v3 = vmul.f32 %v3003_v53, %v4065_v36  ;;  %v1267_v59 = vmax.f32 %v4320_v10, 0.0 }
 0x2e3   : > { %v3007_v33 = vpop.eup %3006  ;;  %1707 = vadd.xlane.f32.xlu0 %v1706_v12  ;;  %3018 = vrcp.f32 %v1031_v47  ;;  %v1709_v4 = vadd.f32 %v1644_v30, %v1643_v50  ;;  %v1034_v31 = vpop.xlane.xlu1 %1033  ;;  %v1396_v40 = vand.u32 2147483647, %v4333_v43  ;;  %v1459_v48 = vadd.f32 1e-12, %v1395_v25 }
 0x2e4   : > { %v3009_v9 = vpop.eup %3008  ;;  %v4342_v18 = vmul.f32 %v3007_v33, %v1325_v37  ;;  %3020 = vrcp.f32 %v1458_v13  ;;  %v2578_v53 = vadd.f32 -0.0025, %v4337_v39  ;;  %v4353_v30 = vmul.f32 %v3005_v56, %v4071_v28 }
 0x2e5   : > { %v3011_v57 = vpop.eup %3010  ;;  %v4345_v55 = vmul.f32 %v3009_v9, %v1326_v20  ;;  %v1460_v50 = vadd.f32 1e-12, %v1396_v40  ;;  %3022 = vrcp.f32 %v1459_v48  ;;  %v2579_v20 = vadd.f32 -0.0025, %v4340_v3 }
 0x2e6   : > { %v3013_v23 = vpop.eup %3012  ;;  %v1645_v12 = vand.u32 2147483647, %v4342_v18  ;;  %v4349_v36 = vmul.f32 %v3011_v57, %v1327_v41  ;;  %3024 = vrcp.f32 %v1034_v31  ;;  %v1329_v13 = vmul.f32 %v1265_v29, %v4295_v22 }
 0x2e7   : > { %v3015_v37 = vpop.eup %3014  ;;  %1710 = vadd.xlane.f32.xlu0 %v1709_v4  ;;  %v1646_v10 = vand.u32 2147483647, %v4345_v55  ;;  %v1037_v47 = vpop.xlane.xlu0 %1036  ;;  %v1330_v28 = vmul.f32 %v1266_v42, %v4299_v58  ;;  %3026 = vrcp.f32 %v1460_v50  ;;  %v1397_v33 = vand.u32 2147483647, %v2578_v53 }
 0x2e8   : > { %v4357_v51 = vmul.f32 %v3015_v37, %v1328_v62  ;;  %v1647_v41 = vand.u32 2147483647, %v4349_v36  ;;  %v1268_v4 = vmax.f32 %v4333_v43, 0.0  ;;  %v1398_v57 = vand.u32 2147483647, %v2579_v20 }
 0x2e9   : > { %v1712_v25 = vadd.f32 %v1646_v10, %v1645_v12  ;;  %v1144_v40 = vmul.f32 %v3005_v56, %v4073_v19  ;;  %3028 = vrcp.f32 %v1037_v47  ;;  %v1461_v62 = vadd.f32 1e-12, %v1397_v33 }
 0x2ea   : > { %v1648_v9 = vand.u32 2147483647, %v4357_v51  ;;  %v2580_v31 = vadd.f32 -0.0025, %v4353_v30  ;;  %v4367_v48 = vmul.f32 %v3013_v23, %v4079_v35  ;;  %v1269_v29 = vmax.f32 %v2578_v53, 0.0 }
 0x2eb   : > { %1713 = vadd.xlane.f32.xlu0 %v1712_v25  ;;  %v1462_v58 = vadd.f32 1e-12, %v1398_v57  ;;  %v2581_v42 = vadd.f32 -0.0025, %v1144_v40  ;;  %v1040_v37 = vpop.xlane.xlu1 %1039  ;;  %v1270_v10 = vmax.f32 %v2579_v20, 0.0  ;;  %3030 = vrcp.f32 %v1461_v62 }
 0x2ec   : > { %v1715_v22 = vadd.f32 %v1648_v9, %v1647_v41  ;;  %v3017_v12 = vpop.eup %3016  ;;  %v1399_v43 = vand.u32 2147483647, %v2580_v31  ;;  %v4370_v50 = vmul.f32 %v3013_v23, %v4081_v52  ;;  %v1271_v47 = vmax.f32 %v2580_v31, 0.0 }
 0x2ed   : > { %v3019_v19 = vpop.eup %3018  ;;  %v4372_v56 = vmul.f32 %v3017_v12, %v1329_v13  ;;  %3032 = vrcp.f32 %v1462_v58  ;;  %v1400_v25 = vand.u32 2147483647, %v2581_v42  ;;  %v1331_v53 = vmul.f32 %v1267_v59, %v4302_v2 }
 0x2ee   : > { %v3021_v35 = vpop.eup %3020  ;;  %v1463_v41 = vadd.f32 1e-12, %v1399_v43  ;;  %v4376_v33 = vadd.f32 -0.0025, %v4367_v48  ;;  %v4379_v20 = vadd.f32 -0.0025, %v4370_v50  ;;  %3034 = vrcp.f32 %v1040_v37 }
 0x2ef   : > { %5415 = vst [vmem:[#allocation41_spill] sm:$0xff] %v4372_v56  ;;  %1716 = vadd.xlane.f32.xlu0 %v1715_v22  ;;  %v4381_v52 = vmul.f32 %v3021_v35, %v1330_v28  ;;  %v1649_v23 = vand.u32 2147483647, %v4372_v56  ;;  %v1332_v13 = vmul.f32 %v1268_v4, %v4313_v5  ;;  %v3023_v9 = vpop.eup %3022  ;;  %v1043_v57 = vpop.xlane.xlu0 %1042  ;;  %v1333_v62 = vmul.f32 %v1269_v29, %v4337_v39 }
 0x2f0   : > { %v1272_v31 = vmax.f32 %v2581_v42, 0.0  ;;  %v1464_v2 = vadd.f32 1e-12, %v1400_v25  ;;  %3036 = vrcp.f32 %v1463_v41  ;;  %v3025_v59 = vpop.eup %3024  ;;  %v4387_v58 = vmul.f32 %v3023_v9, %v1331_v53 }
 0x2f1   : > { %v1650_v22 = vand.u32 2147483647, %v4381_v52  ;;  %v1401_v12 = vand.u32 2147483647, %v4376_v33  ;;  %v1402_v28 = vand.u32 2147483647, %v4379_v20  ;;  %v3027_v37 = vpop.eup %3026  ;;  %v1334_v43 = vmul.f32 %v1270_v10, %v4340_v3 }
 0x2f2   : > { %v1335_v5 = vmul.f32 %v1271_v47, %v4353_v30  ;;  %3038 = vrcp.f32 %v1464_v2  ;;  %v1147_v39 = vmul.f32 %v3019_v19, %v4087_v46  ;;  %v4394_v29 = vmul.f32 %v3027_v37, %v1332_v13 }
 0x2f3   : > { %3040 = vrcp.f32 %v1043_v57  ;;  %v1718_v4 = vadd.f32 %v1650_v22, %v1649_v23  ;;  %v1651_v42 = vand.u32 2147483647, %v4387_v58  ;;  %v3029_v25 = vpop.eup %3028  ;;  %v1046_v35 = vpop.xlane.xlu1 %1045  ;;  %v1465_v53 = vadd.f32 1e-12, %v1401_v12 }
 0x2f4   : > { %v1466_v41 = vadd.f32 1e-12, %v1402_v28  ;;  %v1148_v9 = vmul.f32 %v3019_v19, %v4089_v34  ;;  %v2584_v56 = vadd.f32 -0.0025, %v1147_v39  ;;  %v1652_v3 = vand.u32 2147483647, %v4394_v29 }
 0x2f5   : > { %1719 = vadd.xlane.f32.xlu1 %v1718_v4  ;;  %v1336_v30 = vmul.f32 %v1272_v31, %v1144_v40  ;;  %v1273_v10 = vmax.f32 %v4376_v33, 0.0  ;;  %v4401_v46 = vmul.f32 %v3025_v59, %v4095_v54  ;;  %v3031_v47 = vpop.eup %3030  ;;  %3042 = vrcp.f32 %v1465_v53 }
 0x2f6   : > { %v2585_v23 = vadd.f32 -0.0025, %v1148_v9  ;;  %v1403_v13 = vand.u32 2147483647, %v2584_v56  ;;  %v4404_v57 = vmul.f32 %v3025_v59, %v4097_v45  ;;  %3044 = vrcp.f32 %v1046_v35 }
 0x2f7   : > { %v3033_v2 = vpop.eup %3032  ;;  %v1721_v34 = vadd.f32 %v1652_v3, %v1651_v42  ;;  %v1049_v19 = vpop.xlane.xlu0 %1048  ;;  %v4406_v22 = vmul.f32 %v3031_v47, %v1333_v62  ;;  %v4409_v40 = vadd.f32 -0.0025, %v4401_v46  ;;  %v1274_v54 = vmax.f32 %v4379_v20, 0.0 }
 0x2f8   : > { %v4411_v33 = vmul.f32 %v3033_v2, %v1334_v43  ;;  %3046 = vrcp.f32 %v1466_v41  ;;  %v1275_v31 = vmax.f32 %v2584_v56, 0.0  ;;  %v3035_v12 = vpop.eup %3034  ;;  %v1404_v59 = vand.u32 2147483647, %v2585_v23 }
 0x2f9   : > { %1722 = vadd.xlane.f32.xlu0 %v1721_v34  ;;  %v1653_v45 = vand.u32 2147483647, %v4406_v22  ;;  %v1467_v28 = vadd.f32 1e-12, %v1403_v13  ;;  %v4416_v37 = vmul.f32 %v3029_v25, %v4103_v63  ;;  %3048 = vrcp.f32 %v1049_v19 }
 0x2fa   : > { %v3037_v62 = vpop.eup %3036  ;;  %v1654_v4 = vand.u32 2147483647, %v4411_v33  ;;  %v2587_v43 = vadd.f32 -0.0025, %v4404_v57  ;;  %v4421_v42 = vmul.f32 %v3029_v25, %v4105_v61  ;;  %v1276_v56 = vmax.f32 %v2585_v23, 0.0 }
 0x2fb   : > { %v4423_v20 = vmul.f32 %v3037_v62, %v1335_v5  ;;  %v1468_v35 = vadd.f32 1e-12, %v1404_v59  ;;  %v1405_v53 = vand.u32 2147483647, %v4409_v40  ;;  %v1052_v47 = vpop.xlane.xlu1 %1051  ;;  %v1337_v63 = vmul.f32 %v1273_v10, %v4367_v48 }
 0x2fc   : > { %v3039_v41 = vpop.eup %3038  ;;  %v1724_v3 = vadd.f32 %v1654_v4, %v1653_v45  ;;  %v1338_v13 = vmul.f32 %v1274_v54, %v4370_v50  ;;  %3050 = vrcp.f32 %v1467_v28  ;;  %v1406_v5 = vand.u32 2147483647, %v2587_v43 }
 0x2fd   : > { %v3041_v2 = vpop.eup %3040  ;;  %v4428_v34 = vmul.f32 %v3039_v41, %v1336_v30  ;;  %v1655_v61 = vand.u32 2147483647, %v4423_v20  ;;  %3052 = vrcp.f32 %v1468_v35  ;;  %v1339_v25 = vmul.f32 %v1275_v31, %v1147_v39 }
 0x2fe   : > { %1725 = vadd.xlane.f32.xlu1 %v1724_v3  ;;  %v1469_v23 = vadd.f32 1e-12, %v1405_v53  ;;  %v2588_v19 = vadd.f32 -0.0025, %v4416_v37  ;;  %v2589_v45 = vadd.f32 -0.0025, %v4421_v42  ;;  %3054 = vrcp.f32 %v1052_v47 }
 0x2ff   : > { %v1656_v48 = vand.u32 2147483647, %v4428_v34  ;;  %v1340_v10 = vmul.f32 %v1276_v56, %v1148_v9  ;;  %v1470_v50 = vadd.f32 1e-12, %v1406_v5  ;;  %v3043_v54 = vpop.eup %3042  ;;  %v1277_v30 = vmax.f32 %v4409_v40, 0.0  ;;  %v1055_v40 = vpop.xlane.xlu0 %1054 }
 0x300   : > { %3056 = vrcp.f32 %v1469_v23  ;;  %v1407_v59 = vand.u32 2147483647, %v2588_v19  ;;  %v4436_v28 = vmul.f32 %v3035_v12, %v4111_v7  ;;  %v3045_v62 = vpop.eup %3044  ;;  %v4438_v31 = vmul.f32 %v3043_v54, %v1337_v63 }
 0x301   : > { %v1727_v39 = vadd.f32 %v1656_v48, %v1655_v61  ;;  %3058 = vrcp.f32 %v1470_v50  ;;  %v1408_v4 = vand.u32 2147483647, %v2589_v45  ;;  %v1278_v53 = vmax.f32 %v2587_v43, 0.0 }
 0x302   : > { %v3047_v35 = vpop.eup %3046  ;;  %v1279_v41 = vmax.f32 %v2588_v19, 0.0  ;;  %v1471_v3 = vadd.f32 1e-12, %v1407_v59  ;;  %v4441_v9 = vmul.f32 %v3035_v12, %v4113_v60  ;;  %v1657_v7 = vand.u32 2147483647, %v4438_v31 }
 0x303   : > { %1728 = vadd.xlane.f32.xlu0 %v1727_v39  ;;  %v4443_v56 = vmul.f32 %v3047_v35, %v1338_v13  ;;  %v1280_v47 = vmax.f32 %v2589_v45, 0.0  ;;  %v1472_v5 = vadd.f32 1e-12, %v1408_v4  ;;  %v3049_v61 = vpop.eup %3048  ;;  %v2590_v63 = vadd.f32 -0.0025, %v4436_v28  ;;  %v1058_v12 = vpop.xlane.xlu1 %1057 }
 0x304   : > { %3060 = vrcp.f32 %v1471_v3  ;;  %v4448_v23 = vadd.f32 -0.0025, %v4441_v9  ;;  %v4451_v43 = vmul.f32 %v3041_v2, %v4119_v15  ;;  %v1341_v13 = vmul.f32 %v1277_v30, %v4401_v46 }
 0x305   : > { %v1658_v60 = vand.u32 2147483647, %v4443_v56  ;;  %3062 = vrcp.f32 %v1472_v5  ;;  %v4456_v19 = vmul.f32 %v3041_v2, %v4121_v1  ;;  %v1342_v48 = vmul.f32 %v1278_v53, %v4404_v57 }
 0x306   : > { %v3051_v45 = vpop.eup %3050  ;;  %3064 = vrcp.f32 %v1055_v40  ;;  %v1409_v50 = vand.u32 2147483647, %v2590_v63  ;;  %v1410_v54 = vand.u32 2147483647, %v4448_v23  ;;  %v1343_v4 = vmul.f32 %v1279_v41, %v4416_v37 }
 0x307   : > { %v3053_v59 = vpop.eup %3052  ;;  %v1730_v39 = vadd.f32 %v1658_v60, %v1657_v7  ;;  %v4460_v15 = vmul.f32 %v3051_v45, %v1339_v25  ;;  %v2592_v35 = vadd.f32 -0.0025, %v4451_v43  ;;  %3066 = vrcp.f32 %v1058_v12 }
 0x308   : > { %v4464_v46 = vmul.f32 %v3053_v59, %v1340_v10  ;;  %v1344_v1 = vmul.f32 %v1280_v47, %v4421_v42  ;;  %v1473_v2 = vadd.f32 1e-12, %v1409_v50  ;;  %v4467_v30 = vpop.eup %3054  ;;  %v1474_v53 = vadd.f32 1e-12, %v1410_v54  ;;  %v1061_v10 = vpop.xlane.xlu0 %1060 }
 0x309   : > { %1731 = vadd.xlane.f32.xlu1 %v1730_v39  ;;  %v1659_v57 = vand.u32 2147483647, %v4460_v15  ;;  %v4471_v3 = vadd.f32 -0.0025, %v4456_v19  ;;  %v4474_v25 = vmul.f32 %v3045_v62, %v4127_v24  ;;  %v1411_v40 = vand.u32 2147483647, %v2592_v35 }
 0x30a   : > { %v3057_v37 = vpop.eup %3056  ;;  %v1660_v41 = vand.u32 2147483647, %v4464_v46  ;;  %3068 = vrcp.f32 %v1473_v2  ;;  %v4478_v42 = vmul.f32 %v3045_v62, %v4129_v6  ;;  %v1281_v5 = vmax.f32 %v2590_v63, 0.0 }
 0x30b   : > { %v3059_v7 = vpop.eup %3058  ;;  %v4480_v47 = vmul.f32 %v3057_v37, %v1341_v13  ;;  %v1282_v60 = vmax.f32 %v4448_v23, 0.0  ;;  %v1412_v12 = vand.u32 2147483647, %v4471_v3  ;;  %v1064_v50 = vpop.xlane.xlu1 %1063  ;;  %3070 = vrcp.f32 %v1474_v53 }
 0x30c   : > { %v1733_v45 = vadd.f32 %v1660_v41, %v1659_v57  ;;  %v4484_v24 = vmul.f32 %v3059_v7, %v1342_v48  ;;  %v1283_v54 = vmax.f32 %v2592_v35, 0.0  ;;  %3072 = vrcp.f32 %v1061_v10 }
 0x30d   : > { %v1661_v59 = vand.u32 2147483647, %v4480_v47  ;;  %v1475_v39 = vadd.f32 1e-12, %v1411_v40  ;;  %v1476_v6 = vadd.f32 1e-12, %v1412_v12  ;;  %v4491_v2 = vmul.f32 %v3049_v61, %v4135_v32 }
 0x30e   : > { %v3061_v62 = vpop.eup %3060  ;;  %1734 = vadd.xlane.f32.xlu0 %v1733_v45  ;;  %v1662_v13 = vand.u32 2147483647, %v4484_v24  ;;  %v2594_v63 = vadd.f32 -0.0025, %v4474_v25  ;;  %v2595_v23 = vadd.f32 -0.0025, %v4478_v42  ;;  %3074 = vrcp.f32 %v1064_v50 }
 0x30f   : > { %v3063_v48 = vpop.eup %3062  ;;  %v4493_v57 = vmul.f32 %v3061_v62, %v1343_v4  ;;  %v1345_v35 = vmul.f32 %v1281_v5, %v4436_v28  ;;  %v4497_v53 = vmul.f32 %v3049_v61, %v4137_v11  ;;  %v1067_v40 = vpop.xlane.xlu0 %1066  ;;  %v1346_v7 = vmul.f32 %v1282_v60, %v4441_v9 }
 0x310   : > { %v3065_v37 = vpop.eup %3064  ;;  %v1736_v41 = vadd.f32 %v1662_v13, %v1661_v59  ;;  %v4499_v10 = vmul.f32 %v3063_v48, %v1344_v1  ;;  %3076 = vrcp.f32 %v1475_v39  ;;  %v1284_v12 = vmax.f32 %v4471_v3, 0.0 }
 0x311   : > { %v1663_v32 = vand.u32 2147483647, %v4493_v57  ;;  %3078 = vrcp.f32 %v1476_v6  ;;  %v1413_v4 = vand.u32 2147483647, %v2594_v63  ;;  %v4504_v45 = vpop.eup %3066  ;;  %v1347_v28 = vmul.f32 %v1283_v54, %v4451_v43 }
 0x312   : > { %1737 = vadd.xlane.f32.xlu1 %v1736_v41  ;;  %v1664_v11 = vand.u32 2147483647, %v4499_v10  ;;  %v1414_v61 = vand.u32 2147483647, %v2595_v23  ;;  %v4509_v1 = vadd.f32 -0.0025, %v4491_v2  ;;  %3080 = vrcp.f32 %v1067_v40 }
 0x313   : > { %v1285_v9 = vmax.f32 %v2594_v63, 0.0  ;;  %v1477_v5 = vadd.f32 1e-12, %v1413_v4  ;;  %v2597_v60 = vadd.f32 -0.0025, %v4497_v53  ;;  %v1070_v59 = vpop.xlane.xlu1 %1069  ;;  %v4515_v62 = vmul.f32 %v4467_v30, %v4143_v49 }
 0x314   : > { %v3069_v50 = vpop.eup %3068  ;;  %v1739_v3 = vadd.f32 %v1664_v11, %v1663_v32  ;;  %v1478_v39 = vadd.f32 1e-12, %v1414_v61  ;;  %v1415_v6 = vand.u32 2147483647, %v4509_v1  ;;  %v1286_v54 = vmax.f32 %v2595_v23, 0.0 }
 0x315   : > { %v4517_v43 = vmul.f32 %v3069_v50, %v1345_v35  ;;  %3082 = vrcp.f32 %v1477_v5  ;;  %v1416_v13 = vand.u32 2147483647, %v2597_v60  ;;  %v3071_v48 = vpop.eup %3070  ;;  %v1348_v63 = vmul.f32 %v1284_v12, %v4456_v19 }
 0x316   : > { %1740 = vadd.xlane.f32.xlu0 %v1739_v3  ;;  %3084 = vrcp.f32 %v1478_v39  ;;  %v1479_v41 = vadd.f32 1e-12, %v1415_v6  ;;  %v1162_v40 = vmul.f32 %v4467_v30, %v4145_v16  ;;  %v4522_v32 = vpop.eup %3072  ;;  %v4524_v4 = vmul.f32 %v3071_v48, %v1346_v7 }
 0x317   : > { %5416 = vst [vmem:[#allocation42_spill] sm:$0xff] %v4517_v43  ;;  %v1665_v49 = vand.u32 2147483647, %v4517_v43  ;;  %3086 = vrcp.f32 %v1070_v59  ;;  %v1349_v23 = vmul.f32 %v1285_v9, %v4474_v25  ;;  %v1480_v35 = vadd.f32 1e-12, %v1416_v13  ;;  %v1073_v50 = vpop.xlane.xlu0 %1072 }
 0x318   : > { %3088 = vrcp.f32 %v1479_v41  ;;  %v2598_v11 = vadd.f32 -0.0025, %v4515_v62  ;;  %v2599_v61 = vadd.f32 -0.0025, %v1162_v40  ;;  %v4529_v19 = vpop.eup %3074  ;;  %v1666_v12 = vand.u32 2147483647, %v4524_v4 }
 0x319   : > { %v1350_v16 = vmul.f32 %v1286_v54, %v4478_v42  ;;  %v1287_v30 = vmax.f32 %v4509_v1, 0.0  ;;  %v4535_v7 = vmul.f32 %v3065_v37, %v4151_v0  ;;  %v1288_v3 = vmax.f32 %v2597_v60, 0.0 }
 0x31a   : > { %v3077_v5 = vpop.eup %3076  ;;  %3090 = vrcp.f32 %v1480_v35  ;;  %v1417_v25 = vand.u32 2147483647, %v2598_v11  ;;  %v4538_v9 = vmul.f32 %v3065_v37, %v4153_v21  ;;  %v1742_v39 = vadd.f32 %v1666_v12, %v1665_v49 }
 0x31b   : > { %v3079_v59 = vpop.eup %3078  ;;  %v4540_v6 = vmul.f32 %v3077_v5, %v1347_v28  ;;  %v1418_v13 = vand.u32 2147483647, %v2599_v61  ;;  %v4544_v42 = vmul.f32 %v4504_v45, %v4159_v14  ;;  %v1076_v0 = vpop.xlane.xlu1 %1075  ;;  %v1289_v54 = vmax.f32 %v2598_v11, 0.0 }
 0x31c   : > { %v4546_v1 = vmul.f32 %v3079_v59, %v1348_v63  ;;  %v1290_v48 = vmax.f32 %v2599_v61, 0.0  ;;  %v1481_v60 = vadd.f32 1e-12, %v1417_v25  ;;  %v4548_v41 = vpop.eup %3080  ;;  %1743 = vadd.xlane.f32.xlu1 %v1742_v39  ;;  %3092 = vrcp.f32 %v1073_v50 }
 0x31d   : > { %5417 = vst [vmem:[#allocation43_spill] sm:$0xff] %v4540_v6  ;;  %v1667_v21 = vand.u32 2147483647, %v4540_v6  ;;  %v1482_v37 = vadd.f32 1e-12, %v1418_v13  ;;  %v4556_v63 = vmul.f32 %v4504_v45, %v4161_v26  ;;  %v1351_v11 = vmul.f32 %v1287_v30, %v4491_v2  ;;  %v1995_v6 = vld [vmem:[#allocation7 + $0x20] sm:$0xff] }
 0x31e   : > { %5418 = vst [vmem:[#allocation44_spill] sm:$0xff] %v4546_v1  ;;  %v2600_v28 = vadd.f32 -0.0025, %v4535_v7  ;;  %v1668_v49 = vand.u32 2147483647, %v4546_v1  ;;  %3094 = vrcp.f32 %v1481_v60  ;;  %v1352_v61 = vmul.f32 %v1288_v3, %v4497_v53  ;;  %v1997_v1 = vld [vmem:[#allocation7 + $0x30] sm:$0xff] }
 0x31f   : > { %v2601_v14 = vadd.f32 -0.0025, %v4538_v9  ;;  %v3083_v35 = vpop.eup %3082  ;;  %3096 = vrcp.f32 %v1076_v0  ;;  %v1079_v12 = vpop.xlane.xlu0 %1078  ;;  %v2602_v39 = vadd.f32 -0.0025, %v4544_v42  ;;  %v1353_v26 = vmul.f32 %v1289_v54, %v4515_v62 }
 0x320   : > { %v1419_v5 = vand.u32 2147483647, %v2600_v28  ;;  %v3085_v50 = vpop.eup %3084  ;;  %v1745_v25 = vadd.f32 %v1668_v49, %v1667_v21  ;;  %v4560_v59 = vmul.f32 %v3083_v35, %v1349_v23  ;;  %3098 = vrcp.f32 %v1482_v37 }
 0x321   : > { %v4563_v13 = vpop.eup %3086  ;;  %v4565_v60 = vmul.f32 %v3085_v50, %v1350_v16  ;;  %v1420_v45 = vand.u32 2147483647, %v2601_v14  ;;  %3100 = vrcp.f32 %v1079_v12  ;;  %v1354_v30 = vmul.f32 %v1290_v48, %v1162_v40 }
 0x322   : > { %5419 = vst [vmem:[#allocation45_spill] sm:$0xff] %v4560_v59  ;;  %v1483_v0 = vadd.f32 1e-12, %v1419_v5  ;;  %v3089_v2 = vpop.eup %3088  ;;  %1746 = vadd.xlane.f32.xlu0 %v1745_v25  ;;  %v1669_v53 = vand.u32 2147483647, %v4560_v59  ;;  %v1291_v49 = vmax.f32 %v2600_v28, 0.0 }
 0x323   : > { %5420 = vst [vmem:[#allocation46_spill] sm:$0xff] %v4565_v60  ;;  %v1082_v3 = vpop.xlane.xlu1 %1081  ;;  %v2603_v23 = vadd.f32 -0.0025, %v4556_v63  ;;  %v1670_v21 = vand.u32 2147483647, %v4565_v60  ;;  %v4571_v37 = vmul.f32 %v3089_v2, %v1351_v11  ;;  %v1292_v50 = vmax.f32 %v2601_v14, 0.0 }
 0x324   : > { %v1484_v16 = vadd.f32 1e-12, %v1420_v45  ;;  %v3091_v35 = vpop.eup %3090  ;;  %3102 = vrcp.f32 %v1483_v0  ;;  %v1293_v62 = vmax.f32 %v2602_v39, 0.0  ;;  %v1421_v54 = vand.u32 2147483647, %v2602_v39  ;;  %v5423_v28 = vld [vmem:[#allocation29_spill] sm:$0xff] }
 0x325   : > { %5421 = vst [vmem:[#allocation47_spill] sm:$0xff] %v4571_v37  ;;  %v1748_v5 = vadd.f32 %v1670_v21, %v1669_v53  ;;  %v4573_v25 = vmul.f32 %v3091_v35, %v1352_v61  ;;  %v1671_v12 = vand.u32 2147483647, %v4571_v37  ;;  %v1422_v48 = vand.u32 2147483647, %v2603_v23  ;;  %v5424_v0 = vld [vmem:[#allocation16_spill] sm:$0xff] }
 0x326   : > { %3104 = vrcp.f32 %v1484_v16  ;;  %v1485_v59 = vadd.f32 1e-12, %v1421_v54  ;;  %v4578_v11 = vmul.f32 %v4522_v32, %v4167_v27  ;;  %v4582_v45 = vmul.f32 %v4522_v32, %v5423_v28  ;;  %v4584_v14 = vpop.eup %3092  ;;  %v5425_v53 = vld [vmem:[#allocation30_spill] sm:$0xff] }
 0x327   : > { %5422 = vst [vmem:[#allocation48_spill] sm:$0xff] %v4573_v25  ;;  %v1085_v40 = vpop.xlane.xlu1 %1084  ;;  %1749 = vadd.xlane.f32.xlu1 %v1748_v5  ;;  %v1672_v61 = vand.u32 2147483647, %v4573_v25  ;;  %v1294_v39 = vmax.f32 %v2603_v23, 0.0  ;;  %v4589_v2 = vmul.f32 %v4529_v19, %v5424_v0  ;;  %v4593_v21 = vmul.f32 %v4529_v19, %v5425_v53 }
 0x328   : > { %v3095_v27 = vpop.eup %3094  ;;  %v1486_v16 = vadd.f32 1e-12, %v1422_v48  ;;  %3106 = vrcp.f32 %v1485_v59  ;;  %v2604_v32 = vadd.f32 -0.0025, %v4578_v11  ;;  %v4597_v35 = vadd.f32 -0.0025, %v4582_v45 }
 0x329   : > { %v4599_v54 = vpop.eup %3096  ;;  %v1751_v5 = vadd.f32 %v1672_v61, %v1671_v12  ;;  %v4601_v23 = vmul.f32 %v3095_v27, %v1353_v26  ;;  %v1355_v28 = vmul.f32 %v1291_v49, %v4535_v7  ;;  %v1356_v0 = vmul.f32 %v1292_v50, %v4538_v9 }
 0x32a   : > { %v3099_v37 = vpop.eup %3098  ;;  %3108 = vrcp.f32 %v1486_v16  ;;  %v1423_v53 = vand.u32 2147483647, %v2604_v32  ;;  %v2606_v59 = vadd.f32 -0.0025, %v4589_v2  ;;  %v4607_v48 = vadd.f32 -0.0025, %v4593_v21 }
 0x32b   : > { %5426 = vst [vmem:[#allocation29_spill] sm:$0xff] %v4601_v23  ;;  %v1088_v19 = vpop.xlane.xlu1 %1087  ;;  %1752 = vadd.xlane.f32.xlu0 %v1751_v5  ;;  %v4609_v25 = vmul.f32 %v3099_v37, %v1354_v30  ;;  %v1673_v12 = vand.u32 2147483647, %v4601_v23  ;;  %3110 = vrcp.f32 %v1082_v3  ;;  %v1424_v26 = vand.u32 2147483647, %v4597_v35  ;;  %v4613_v7 = vpop.eup %3100  ;;  %v5428_v16 = vld [vmem:[#allocation17_spill] sm:$0xff] }
 0x32c   : > { %3112 = vrcp.f32 %v1085_v40  ;;  %v1357_v9 = vmul.f32 %v1293_v62, %v4544_v42  ;;  %v1358_v49 = vmul.f32 %v1294_v39, %v4556_v63  ;;  %v1487_v50 = vadd.f32 1e-12, %v1423_v53  ;;  %v1991_v62 = vld [vmem:[#allocation7] sm:$0xff]  ;;  %v1993_v39 = vld [vmem:[#allocation7 + $0x10] sm:$0xff] }
 0x32d   : > { %5427 = vst [vmem:[#allocation16_spill] sm:$0xff] %v4609_v25  ;;  %v1674_v61 = vand.u32 2147483647, %v4609_v25  ;;  %3114 = vrcp.f32 %v1088_v19  ;;  %v1488_v27 = vadd.f32 1e-12, %v1424_v26  ;;  %v4620_v30 = vmul.f32 %v4548_v41, %v5428_v16 }
 0x32e   : > { %v3103_v37 = vpop.eup %3102  ;;  %v1295_v3 = vmax.f32 %v2604_v32, 0.0  ;;  %3116 = vrcp.f32 %v1487_v50  ;;  %v1425_v5 = vand.u32 2147483647, %v2606_v59  ;;  %v1426_v23 = vand.u32 2147483647, %v4607_v48  ;;  %v5431_v50 = vld [vmem:[#allocation18_spill] sm:$0xff] }
 0x32f   : > { %v1754_v60 = vadd.f32 %v1674_v61, %v1673_v12  ;;  %v4623_v42 = vmul.f32 %v3103_v37, %v1355_v28  ;;  %v1296_v63 = vmax.f32 %v4597_v35, 0.0  ;;  %3118 = vrcp.f32 %v1488_v27  ;;  %v5432_v12 = vld [vmem:[#allocation19_spill] sm:$0xff] }
 0x330   : > { %v3105_v40 = vpop.eup %3104  ;;  %v1297_v53 = vmax.f32 %v2606_v59, 0.0  ;;  %v1489_v26 = vadd.f32 1e-12, %v1425_v5  ;;  %v1490_v16 = vadd.f32 1e-12, %v1426_v23  ;;  %v4631_v25 = vmul.f32 %v4548_v41, %v5431_v50  ;;  %v5433_v59 = vld [vmem:[#allocation20_spill] sm:$0xff]  ;;  %v1091_v50 = vpop.xlane.xlu1 %1090 }
 0x331   : > { %5429 = vst [vmem:[#allocation30_spill] sm:$0xff] %v4623_v42  ;;  %v4626_v19 = vmul.f32 %v3105_v40, %v1356_v0  ;;  %1755 = vadd.xlane.f32.xlu1 %v1754_v60  ;;  %v1675_v32 = vand.u32 2147483647, %v4623_v42  ;;  %v2608_v28 = vadd.f32 -0.0025, %v4620_v30  ;;  %v4636_v35 = vmul.f32 %v4563_v13, %v5432_v12 }
 0x332   : > { %v3107_v61 = vpop.eup %3106  ;;  %3120 = vrcp.f32 %v1489_v26  ;;  %v4641_v23 = vmul.f32 %v4563_v13, %v5433_v59  ;;  %v2710_v60 = vpack.c.bf16 %v1993_v39, %v1991_v62  ;;  %v1359_v41 = vmul.f32 %v1295_v3, %v4578_v11 }
 0x333   : > { %5430 = vst [vmem:[#allocation17_spill] sm:$0xff] %v4626_v19  ;;  %v1676_v0 = vand.u32 2147483647, %v4626_v19  ;;  %v4643_v27 = vmul.f32 %v3107_v61, %v1357_v9  ;;  %3122 = vrcp.f32 %v1490_v16  ;;  %v4647_v37 = vadd.f32 -0.0025, %v4631_v25  ;;  %v1998_v19 = vld [vmem:[#allocation7 + $0x38] sm:$0xff] }
 0x334   : > { %v3109_v5 = vpop.eup %3108  ;;  %v1298_v12 = vmax.f32 %v4607_v48, 0.0  ;;  %v1427_v42 = vand.u32 2147483647, %v2608_v28  ;;  %v4651_v26 = vadd.f32 -0.0025, %v4636_v35  ;;  %2711 = vmatpush1.bf16.msra.mxu1 %v2710_v60  ;;  %v1360_v3 = vmul.f32 %v1296_v63, %v4582_v45  ;;  %v5436_v45 = vld [vmem:[#allocation21_spill] sm:$0xff] }
 0x335   : > { %5434 = vst [vmem:[#allocation18_spill] sm:$0xff] %v4643_v27  ;;  %v1757_v40 = vadd.f32 %v1676_v0, %v1675_v32  ;;  %v4653_v13 = vpop.eup %3110  ;;  %v4655_v9 = vmul.f32 %v3109_v5, %v1358_v49  ;;  %v1677_v11 = vand.u32 2147483647, %v4643_v27  ;;  %v1299_v62 = vmax.f32 %v2608_v28, 0.0  ;;  %v1996_v60 = vld [vmem:[#allocation7 + $0x28] sm:$0xff] }
 0x336   : > { %v4659_v39 = vpop.eup %3112  ;;  %v1361_v16 = vmul.f32 %v1297_v53, %v4589_v2  ;;  %v1428_v48 = vand.u32 2147483647, %v4647_v37  ;;  %v1491_v32 = vadd.f32 1e-12, %v1427_v42  ;;  %v4664_v61 = vadd.f32 -0.0025, %v4641_v23 }
 0x337   : > { %5435 = vst [vmem:[#allocation19_spill] sm:$0xff] %v4655_v9  ;;  %1758 = vadd.xlane.f32.xlu0 %v1757_v40  ;;  %v4666_v0 = vpop.eup %3114  ;;  %v1678_v49 = vand.u32 2147483647, %v4655_v9  ;;  %3124 = vrcp.f32 %v1091_v50  ;;  %v1429_v59 = vand.u32 2147483647, %v4651_v26  ;;  %v4672_v63 = vmul.f32 %v4584_v14, %v5436_v45 }
 0x338   : > { %v3117_v28 = vpop.eup %3116  ;;  %v1362_v2 = vmul.f32 %v1298_v12, %v4593_v21  ;;  %v1492_v53 = vadd.f32 1e-12, %v1428_v48  ;;  %3126 = vrcp.f32 %v1491_v32  ;;  %v1430_v42 = vand.u32 2147483647, %v4664_v61  ;;  %v5437_v48 = vld [vmem:[#allocation22_spill] sm:$0xff] }
 0x339   : > { %v3119_v5 = vpop.eup %3118  ;;  %v1760_v40 = vadd.f32 %v1678_v49, %v1677_v11  ;;  %v4676_v27 = vmul.f32 %v3117_v28, %v1359_v41  ;;  %v1300_v50 = vmax.f32 %v4647_v37, 0.0  ;;  %v1493_v9 = vadd.f32 1e-12, %v1429_v59  ;;  %v2000_v59 = vld [vmem:[#allocation7 + $0x48] sm:$0xff] }
 0x33a   : > { %v4679_v45 = vmul.f32 %v3119_v5, %v1360_v3  ;;  %v1363_v43 = vmul.f32 %v1299_v62, %v4620_v30  ;;  %3128 = vrcp.f32 %v1492_v53  ;;  %v1494_v21 = vadd.f32 1e-12, %v1430_v42 }
 0x33b   : > { %1761 = vadd.xlane.f32.xlu1 %v1760_v40  ;;  %v1679_v12 = vand.u32 2147483647, %v4676_v27  ;;  %3130 = vrcp.f32 %v1493_v9  ;;  %v4685_v41 = vmul.f32 %v4584_v14, %v5437_v48  ;;  %v2612_v37 = vadd.f32 -0.0025, %v4672_v63  ;;  %v2002_v14 = vld [vmem:[#allocation7 + $0x58] sm:$0xff]  ;;  %v5439_v40 = vld [vmem:[#allocation23_spill] sm:$0xff] }
 0x33c   : > { %v3121_v11 = vpop.eup %3120  ;;  %v1680_v32 = vand.u32 2147483647, %v4679_v45  ;;  %3132 = vrcp.f32 %v1494_v21  ;;  %v2712_v3 = vpack.c.bf16 %v1998_v19, %v1996_v60  ;;  %v2714_v49 = vpack.c.bf16 %v1997_v1, %v1995_v6  ;;  %v5440_v6 = vld [vmem:[#allocation24_spill] sm:$0xff]  ;;  %v1999_v19 = vld [vmem:[#allocation7 + $0x40] sm:$0xff] }
 0x33d   : > { %v3123_v30 = vpop.eup %3122  ;;  %v4689_v62 = vmul.f32 %v3121_v11, %v1361_v16  ;;  %v1301_v28 = vmax.f32 %v4651_v26, 0.0  ;;  %v4693_v9 = vadd.f32 -0.0025, %v4685_v41  ;;  %v1431_v53 = vand.u32 2147483647, %v2612_v37  ;;  %v2001_v16 = vld [vmem:[#allocation7 + $0x50] sm:$0xff] }
 0x33e   : > { %v1763_v42 = vadd.f32 %v1680_v32, %v1679_v12  ;;  %v4695_v5 = vmul.f32 %v3123_v30, %v1362_v2  ;;  %2713 = vmatprep.subr.bf16.mxu1 %v2712_v3  ;;  %v4699_v21 = vmul.f32 %v4599_v54, %v5439_v40  ;;  %v4703_v1 = vmul.f32 %v4599_v54, %v5440_v6 }
 0x33f   : > { %5438 = vst [vmem:[#allocation20_spill] sm:$0xff] %v4689_v62  ;;  %v1681_v26 = vand.u32 2147483647, %v4689_v62  ;;  %v1364_v60 = vmul.f32 %v1300_v50, %v4631_v25  ;;  %v1302_v48 = vmax.f32 %v4664_v61, 0.0  ;;  %v1432_v2 = vand.u32 2147483647, %v4693_v9  ;;  %2715 = vmatpush1.bf16.msra.mxu1 %v2714_v49 }
 0x340   : > { %1764 = vadd.xlane.f32.xlu0 %v1763_v42  ;;  %v1682_v12 = vand.u32 2147483647, %v4695_v5  ;;  %v1495_v11 = vadd.f32 1e-12, %v1431_v53  ;;  %v4711_v32 = vadd.f32 -0.0025, %v4699_v21  ;;  %v2716_v54 = vpack.c.bf16 %v2002_v14, %v2000_v59 }
 0x341   : > { %v4713_v3 = vpop.eup %3124  ;;  %v1303_v30 = vmax.f32 %v2612_v37, 0.0  ;;  %v1496_v40 = vadd.f32 1e-12, %v1432_v2  ;;  %v4716_v6 = vadd.f32 -0.0025, %v4703_v1  ;;  %v2718_v25 = vpack.c.bf16 %v2001_v16, %v1999_v19 }
 0x342   : > { %v3127_v61 = vpop.eup %3126  ;;  %v1766_v50 = vadd.f32 %v1682_v12, %v1681_v26  ;;  %v1365_v49 = vmul.f32 %v1301_v28, %v4636_v35  ;;  %3134 = vrcp.f32 %v1495_v11  ;;  %v1433_v42 = vand.u32 2147483647, %v4711_v32  ;;  %2717 = vmatprep.subr.bf16.mxu1 %v2716_v54  ;;  %v5442_v26 = vld [vmem:[#allocation25_spill] sm:$0xff]  ;;  %v5443_v28 = vld [vmem:[#allocation26_spill] sm:$0xff] }
 0x343   : > { %v4720_v53 = vmul.f32 %v3127_v61, %v1363_v43  ;;  %v1366_v59 = vmul.f32 %v1302_v48, %v4641_v23  ;;  %3136 = vrcp.f32 %v1496_v40  ;;  %v1434_v37 = vand.u32 2147483647, %v4716_v6  ;;  %2719 = vmatpush1.bf16.msra.mxu1 %v2718_v25  ;;  %v2004_v43 = vld [vmem:[#allocation7 + $0x68] sm:$0xff]  ;;  %v2006_v12 = vld [vmem:[#allocation7 + $0x78] sm:$0xff] }
 0x344   : > { %v3129_v14 = vpop.eup %3128  ;;  %1767 = vadd.xlane.f32.xlu1 %v1766_v50  ;;  %v1304_v19 = vmax.f32 %v4693_v9, 0.0  ;;  %v1497_v16 = vadd.f32 1e-12, %v1433_v42  ;;  %v4727_v35 = vmul.f32 %v4613_v7, %v5442_v26  ;;  %v4731_v2 = vmul.f32 %v4613_v7, %v5443_v28  ;;  %v2003_v50 = vld [vmem:[#allocation7 + $0x60] sm:$0xff]  ;;  %v2005_v42 = vld [vmem:[#allocation7 + $0x70] sm:$0xff]  ;;  %v2010_v28 = vld [vmem:[#allocation7 + $0x98] sm:$0xff] }
 0x345   : > { %5441 = vst [vmem:[#allocation21_spill] sm:$0xff] %v4720_v53  ;;  %v3131_v23 = vpop.eup %3130  ;;  %v4733_v48 = vmul.f32 %v3129_v14, %v1364_v60  ;;  %v1683_v11 = vand.u32 2147483647, %v4720_v53  ;;  %v1367_v54 = vmul.f32 %v1303_v30, %v4672_v63  ;;  %v1498_v40 = vadd.f32 1e-12, %v1434_v37  ;;  %v2008_v63 = vld [vmem:[#allocation7 + $0x88] sm:$0xff] }
 0x346   : > { %v3133_v9 = vpop.eup %3132  ;;  %v4737_v25 = vmul.f32 %v3131_v23, %v1365_v49  ;;  %3138 = vrcp.f32 %v1497_v16  ;;  %v4740_v61 = vadd.f32 -0.0025, %v4727_v35  ;;  %v4743_v7 = vadd.f32 -0.0025, %v4731_v2 }
 0x347   : > { %v1684_v60 = vand.u32 2147483647, %v4733_v48  ;;  %v4746_v14 = vmul.f32 %v3133_v9, %v1366_v59  ;;  %3140 = vrcp.f32 %v1498_v40  ;;  %v2720_v26 = vpack.c.bf16 %v2006_v12, %v2004_v43  ;;  %v2007_v9 = vld [vmem:[#allocation7 + $0x80] sm:$0xff]  ;;  %v2009_v40 = vld [vmem:[#allocation7 + $0x90] sm:$0xff] }
 0x348   : > { %5444 = vst [vmem:[#allocation22_spill] sm:$0xff] %v4737_v25  ;;  %v1685_v30 = vand.u32 2147483647, %v4737_v25  ;;  %v1368_v49 = vmul.f32 %v1304_v19, %v4685_v41  ;;  %v1305_v37 = vmax.f32 %v4711_v32, 0.0  ;;  %v1435_v16 = vand.u32 2147483647, %v4740_v61 }
 0x349   : > { %5445 = vst [vmem:[#allocation23_spill] sm:$0xff] %v4746_v14  ;;  %v1769_v23 = vadd.f32 %v1684_v60, %v1683_v11  ;;  %v1686_v53 = vand.u32 2147483647, %v4746_v14  ;;  %v1436_v62 = vand.u32 2147483647, %v4743_v7  ;;  %2721 = vmatprep.subr.bf16.mxu1 %v2720_v26  ;;  %v2722_v59 = vpack.c.bf16 %v2005_v42, %v2003_v50  ;;  %v5446_v41 = vld [vmem:[#allocation27_spill] sm:$0xff] }
 0x34a   : > { %v1306_v43 = vmax.f32 %v4716_v6, 0.0  ;;  %v1307_v12 = vmax.f32 %v4740_v61, 0.0  ;;  %v1499_v25 = vadd.f32 1e-12, %v1435_v16  ;;  %v4758_v32 = vmul.f32 %v4653_v13, %v5446_v41  ;;  %v5447_v60 = vld [vmem:[#allocation31_spill] sm:$0xff]  ;;  %v5448_v26 = vld [vmem:[#allocation28_spill] sm:$0xff] }
 0x34b   : > { %1770 = vadd.xlane.f32.xlu0 %v1769_v23  ;;  %v1772_v19 = vadd.f32 %v1686_v53, %v1685_v30  ;;  %v1500_v11 = vadd.f32 1e-12, %v1436_v62  ;;  %2723 = vmatpush1.bf16.msra.mxu1 %v2722_v59  ;;  %v4762_v14 = vmul.f32 %v4653_v13, %v5447_v60  ;;  %v2724_v50 = vpack.c.bf16 %v2010_v28, %v2008_v63  ;;  %v2012_v41 = vld [vmem:[#allocation7 + $0xa8] sm:$0xff]  ;;  %v2014_v23 = vld [vmem:[#allocation7 + $0xb8] sm:$0xff]  ;;  %v1094_v30 = vpop.xlane.xlu1 %1093 }
 0x34c   : > { %v3135_v42 = vpop.eup %3134  ;;  %3142 = vrcp.f32 %v1499_v25  ;;  %v4765_v6 = vadd.f32 -0.0025, %v4758_v32  ;;  %v2726_v61 = vpack.c.bf16 %v2009_v40, %v2007_v9  ;;  %v4769_v16 = vmul.f32 %v4659_v39, %v5448_v26  ;;  %v5450_v25 = vld [vmem:[#allocation32_spill] sm:$0xff] }
 0x34d   : > { %v3137_v53 = vpop.eup %3136  ;;  %1773 = vadd.xlane.f32.xlu1 %v1772_v19  ;;  %v4771_v62 = vmul.f32 %v3135_v42, %v1367_v54  ;;  %3144 = vrcp.f32 %v1500_v11  ;;  %v4774_v13 = vadd.f32 -0.0025, %v4762_v14  ;;  %2725 = vmatprep.subr.bf16.mxu1 %v2724_v50  ;;  %v4778_v63 = vmul.f32 %v4659_v39, %v5450_v25  ;;  %v2013_v25 = vld [vmem:[#allocation7 + $0xb0] sm:$0xff] }
 0x34e   : > { %v4780_v28 = vmul.f32 %v3137_v53, %v1368_v49  ;;  %v1369_v59 = vmul.f32 %v1305_v37, %v4699_v21  ;;  %v1308_v9 = vmax.f32 %v4743_v7, 0.0  ;;  %v1437_v40 = vand.u32 2147483647, %v4765_v6  ;;  %v2011_v53 = vld [vmem:[#allocation7 + $0xa0] sm:$0xff] }
 0x34f   : > { %5449 = vst [vmem:[#allocation24_spill] sm:$0xff] %v4771_v62  ;;  %v1687_v54 = vand.u32 2147483647, %v4771_v62  ;;  %v1438_v19 = vand.u32 2147483647, %v4774_v13  ;;  %2727 = vmatpush1.bf16.msra.mxu1 %v2726_v61  ;;  %v2728_v60 = vpack.c.bf16 %v2014_v23, %v2012_v41  ;;  %v1370_v49 = vmul.f32 %v1306_v43, %v4703_v1  ;;  %v2016_v1 = vld [vmem:[#allocation7 + $0xc8] sm:$0xff] }
 0x350   : > { %5451 = vst [vmem:[#allocation25_spill] sm:$0xff] %v4780_v28  ;;  %v4788_v11 = vadd.f32 -0.0025, %v4769_v16  ;;  %v3139_v39 = vpop.eup %3138  ;;  %v1688_v50 = vand.u32 2147483647, %v4780_v28  ;;  %3146 = vrcp.f32 %v1094_v30  ;;  %v1371_v26 = vmul.f32 %v1307_v12, %v4727_v35  ;;  %v2018_v43 = vld [vmem:[#allocation7 + $0xd8] sm:$0xff] }
 0x351   : > { %v1501_v42 = vadd.f32 1e-12, %v1437_v40  ;;  %v4793_v21 = vadd.f32 -0.0025, %v4778_v63  ;;  %v3141_v7 = vpop.eup %3140  ;;  %v4795_v37 = vmul.f32 %v3139_v39, %v1369_v59  ;;  %v1502_v61 = vadd.f32 1e-12, %v1438_v19  ;;  %2729 = vmatprep.subr.bf16.mxu1 %v2728_v60 }
 0x352   : > { %v1775_v41 = vadd.f32 %v1688_v50, %v1687_v54  ;;  %v4798_v23 = vmul.f32 %v3141_v7, %v1370_v49  ;;  %v1372_v62 = vmul.f32 %v1308_v9, %v4731_v2  ;;  %v2015_v40 = vld [vmem:[#allocation7 + $0xc0] sm:$0xff]  ;;  %v1309_v30 = vmax.f32 %v4765_v6, 0.0  ;;  %v2017_v12 = vld [vmem:[#allocation7 + $0xd0] sm:$0xff]  ;;  %v5455_v50 = vld [vmem:[#allocation34_spill] sm:$0xff] }
 0x353   : > { %5452 = vst [vmem:[#allocation26_spill] sm:$0xff] %v4795_v37  ;;  %3148 = vrcp.f32 %v1501_v42  ;;  %v1689_v28 = vand.u32 2147483647, %v4795_v37  ;;  %v1439_v35 = vand.u32 2147483647, %v4788_v11  ;;  %v1310_v54 = vmax.f32 %v4774_v13, 0.0 }
 0x354   : > { %5453 = vst [vmem:[#allocation27_spill] sm:$0xff] %v4798_v23  ;;  %3150 = vrcp.f32 %v1502_v61  ;;  %1776 = vadd.xlane.f32.xlu0 %v1775_v41  ;;  %v1690_v59 = vand.u32 2147483647, %v4798_v23  ;;  %v1440_v19 = vand.u32 2147483647, %v4793_v21  ;;  %v2730_v2 = vpack.c.bf16 %v2013_v25, %v2011_v53  ;;  %v5454_v60 = vld [vmem:[#allocation33_spill] sm:$0xff] }
 0x355   : > { %v1503_v9 = vadd.f32 1e-12, %v1439_v35  ;;  %v4809_v39 = vmul.f32 %v4666_v0, %v5454_v60  ;;  %v4813_v6 = vmul.f32 %v4666_v0, %v5455_v50  ;;  %v2732_v49 = vpack.c.bf16 %v2018_v43, %v2016_v1  ;;  %v5456_v37 = vld [vmem:[#allocation35_spill] sm:$0xff]  ;;  %v2020_v1 = vld [vmem:[#allocation7 + $0xe8] sm:$0xff] }
 0x356   : > { %v3143_v42 = vpop.eup %3142  ;;  %v1778_v7 = vadd.f32 %v1690_v59, %v1689_v28  ;;  %v1504_v61 = vadd.f32 1e-12, %v1440_v19  ;;  %2731 = vmatpush1.bf16.msra.mxu1 %v2730_v2  ;;  %v2734_v41 = vpack.c.bf16 %v2017_v12, %v2015_v40  ;;  %v4817_v13 = vmul.f32 %v4713_v3, %v5456_v37  ;;  %v2022_v28 = vld [vmem:[#allocation7 + $0xf8] sm:$0xff]  ;;  %v5459_v40 = vld [vmem:[#allocation36_spill] sm:$0xff] }
 0x357   : > { %v3145_v53 = vpop.eup %3144  ;;  %v4819_v25 = vmul.f32 %v3143_v42, %v1371_v26  ;;  %3152 = vrcp.f32 %v1503_v9  ;;  %v4822_v35 = vadd.f32 -0.0025, %v4809_v39  ;;  %v4825_v0 = vadd.f32 -0.0025, %v4813_v6  ;;  %2733 = vmatprep.subr.bf16.mxu1 %v2732_v49 }
 0x358   : > { %1779 = vadd.xlane.f32.xlu1 %v1778_v7  ;;  %v4827_v43 = vmul.f32 %v3145_v53, %v1372_v62  ;;  %3154 = vrcp.f32 %v1504_v61  ;;  %v4831_v37 = vmul.f32 %v4713_v3, %v5459_v40  ;;  %v4834_v26 = vadd.f32 -0.0025, %v4817_v13  ;;  %v2019_v40 = vld [vmem:[#allocation7 + $0xe0] sm:$0xff] }
 0x359   : > { %5457 = vst [vmem:[#allocation31_spill] sm:$0xff] %v4819_v25  ;;  %v1691_v12 = vand.u32 2147483647, %v4819_v25  ;;  %v1311_v59 = vmax.f32 %v4788_v11, 0.0  ;;  %v1312_v19 = vmax.f32 %v4793_v21, 0.0  ;;  %v2736_v3 = vpack.c.bf16 %v2022_v28, %v2020_v1  ;;  %v2021_v25 = vld [vmem:[#allocation7 + $0xf0] sm:$0xff] }
 0x35a   : > { %5458 = vst [vmem:[#allocation28_spill] sm:$0xff] %v4827_v43  ;;  %v1441_v2 = vand.u32 2147483647, %v4822_v35  ;;  %v1692_v9 = vand.u32 2147483647, %v4827_v43  ;;  %2735 = vmatpush1.bf16.msra.mxu1 %v2734_v41  ;;  %v3147_v50 = vpop.eup %3146  ;;  %v1373_v49 = vmul.f32 %v1309_v30, %v4758_v32  ;;  %v1374_v11 = vmul.f32 %v1310_v54, %v4762_v14  ;;  %v2024_v32 = vld [vmem:[#allocation7 + $0x108] sm:$0xff] }
 0x35b   : > { %v1442_v62 = vand.u32 2147483647, %v4825_v0  ;;  %v4843_v60 = vadd.f32 -0.0025, %v4831_v37  ;;  %v1443_v53 = vand.u32 2147483647, %v4834_v26  ;;  %2737 = vmatprep.subr.bf16.mxu1 %v2736_v3  ;;  %v1375_v23 = vmul.f32 %v1311_v59, %v4769_v16 }
 0x35c   : > { %v1505_v42 = vadd.f32 1e-12, %v1441_v2  ;;  %v1781_v61 = vadd.f32 %v1692_v9, %v1691_v12  ;;  %v2026_v30 = vld [vmem:[#allocation7 + $0x118] sm:$0xff]  ;;  %v1376_v14 = vmul.f32 %v1312_v19, %v4778_v63  ;;  %v2023_v12 = vld [vmem:[#allocation7 + $0x100] sm:$0xff]  ;;  %v2025_v2 = vld [vmem:[#allocation7 + $0x110] sm:$0xff]  ;;  %v2738_v3 = vpack.c.bf16 %v2021_v25, %v2019_v40 }
 0x35d   : > { %v3149_v7 = vpop.eup %3148  ;;  %v1506_v21 = vadd.f32 1e-12, %v1442_v62  ;;  %v1444_v1 = vand.u32 2147483647, %v4843_v60  ;;  %v1507_v54 = vadd.f32 1e-12, %v1443_v53  ;;  %v2740_v63 = vpack.c.bf16 %v2026_v30, %v2024_v32 }
 0x35e   : > { %v3151_v43 = vpop.eup %3150  ;;  %v4848_v41 = vmul.f32 %v3149_v7, %v1373_v49  ;;  %3156 = vrcp.f32 %v1505_v42  ;;  %1782 = vadd.xlane.f32.xlu0 %v1781_v61  ;;  %v5462_v49 = vld [vmem:[#allocation37_spill] sm:$0xff]  ;;  %v2028_v59 = vld [vmem:[#allocation7 + $0x128] sm:$0xff]  ;;  %v2030_v42 = vld [vmem:[#allocation7 + $0x138] sm:$0xff]  ;;  %2739 = vmatpush1.bf16.msra.mxu1 %v2738_v3  ;;  %v2742_v25 = vpack.c.bf16 %v2025_v2, %v2023_v12 }
 0x35f   : > { %v4852_v28 = vmul.f32 %v3151_v43, %v1374_v11  ;;  %3158 = vrcp.f32 %v1506_v21  ;;  %v1508_v62 = vadd.f32 1e-12, %v1444_v1  ;;  %v4857_v16 = vmul.f32 %v3147_v50, %v5462_v49  ;;  %v5463_v43 = vld [vmem:[#allocation38_spill] sm:$0xff]  ;;  %2741 = vmatprep.subr.bf16.mxu1 %v2740_v63  ;;  %v2029_v32 = vld [vmem:[#allocation7 + $0x130] sm:$0xff]  ;;  %v2032_v3 = vld [vmem:[#allocation7 + $0x148] sm:$0xff] }
 0x360   : > { %5460 = vst [vmem:[#allocation32_spill] sm:$0xff] %v4848_v41  ;;  %v1693_v9 = vand.u32 2147483647, %v4848_v41  ;;  %3160 = vrcp.f32 %v1507_v54  ;;  %v4861_v61 = vmul.f32 %v3147_v50, %v5463_v43  ;;  %v1313_v11 = vmax.f32 %v4822_v35, 0.0  ;;  %v2027_v54 = vld [vmem:[#allocation7 + $0x120] sm:$0xff]  ;;  %v2034_v43 = vld [vmem:[#allocation7 + $0x158] sm:$0xff] }
 0x361   : > { %5461 = vst [vmem:[#allocation33_spill] sm:$0xff] %v4852_v28  ;;  %v1694_v7 = vand.u32 2147483647, %v4852_v28  ;;  %v3153_v19 = vpop.eup %3152  ;;  %3162 = vrcp.f32 %v1508_v62  ;;  %v4865_v21 = vadd.f32 -0.0025, %v4857_v16  ;;  %v2744_v50 = vpack.c.bf16 %v2030_v42, %v2028_v59  ;;  %v2038_v28 = vld [vmem:[#allocation7 + $0x178] sm:$0xff] }
 0x362   : > { %v3155_v53 = vpop.eup %3154  ;;  %v4867_v1 = vmul.f32 %v3153_v19, %v1375_v23  ;;  %v4870_v49 = vadd.f32 -0.0025, %v4861_v61  ;;  %v1314_v35 = vmax.f32 %v4825_v0, 0.0  ;;  %2743 = vmatpush1.bf16.msra.mxu1 %v2742_v25  ;;  %v2746_v42 = vpack.c.bf16 %v2029_v32, %v2027_v54  ;;  %v2031_v19 = vld [vmem:[#allocation7 + $0x140] sm:$0xff] }
 0x363   : > { %v1784_v40 = vadd.f32 %v1694_v7, %v1693_v9  ;;  %v4872_v30 = vmul.f32 %v3155_v53, %v1376_v14  ;;  %v1445_v62 = vand.u32 2147483647, %v4865_v21  ;;  %v1315_v9 = vmax.f32 %v4834_v26, 0.0  ;;  %2745 = vmatprep.subr.bf16.mxu1 %v2744_v50  ;;  %v2033_v53 = vld [vmem:[#allocation7 + $0x150] sm:$0xff]  ;;  %v2035_v32 = vld [vmem:[#allocation7 + $0x160] sm:$0xff] }
 0x364   : > { %5464 = vst [vmem:[#allocation34_spill] sm:$0xff] %v4867_v1  ;;  %v1695_v12 = vand.u32 2147483647, %v4867_v1  ;;  %v1446_v23 = vand.u32 2147483647, %v4870_v49  ;;  %v1377_v14 = vmul.f32 %v1313_v11, %v4809_v39  ;;  %v1316_v0 = vmax.f32 %v4843_v60, 0.0 }
 0x365   : > { %5465 = vst [vmem:[#allocation35_spill] sm:$0xff] %v4872_v30  ;;  %1785 = vadd.xlane.f32.xlu1 %v1784_v40  ;;  %v1696_v2 = vand.u32 2147483647, %v4872_v30  ;;  %v1509_v59 = vadd.f32 1e-12, %v1445_v62  ;;  %v2748_v63 = vpack.c.bf16 %v2034_v43, %v2032_v3  ;;  %v1378_v41 = vmul.f32 %v1314_v35, %v4813_v6  ;;  %v2036_v30 = vld [vmem:[#allocation7 + $0x168] sm:$0xff] }
 0x366   : > { %v1510_v7 = vadd.f32 1e-12, %v1446_v23  ;;  %v1379_v60 = vmul.f32 %v1315_v9, %v4817_v13  ;;  %2747 = vmatpush1.bf16.msra.mxu1 %v2746_v42  ;;  %v2750_v11 = vpack.c.bf16 %v2033_v53, %v2031_v19  ;;  %v1380_v54 = vmul.f32 %v1316_v0, %v4831_v37  ;;  %v2037_v35 = vld [vmem:[#allocation7 + $0x170] sm:$0xff]  ;;  %v2040_v23 = vld [vmem:[#allocation7 + $0x188] sm:$0xff]  ;;  %v2042_v13 = vld [vmem:[#allocation7 + $0x198] sm:$0xff] }
 0x367   : > { %v1787_v1 = vadd.f32 %v1696_v2, %v1695_v12  ;;  %3164 = vrcp.f32 %v1509_v59  ;;  %2749 = vmatprep.subr.bf16.mxu1 %v2748_v63  ;;  %v2752_v6 = vpack.c.bf16 %v2038_v28, %v2036_v30  ;;  %v1317_v9 = vmax.f32 %v4865_v21, 0.0  ;;  %v2039_v0 = vld [vmem:[#allocation7 + $0x180] sm:$0xff]  ;;  %v2044_v19 = vld [vmem:[#allocation7 + $0x1a8] sm:$0xff]  ;;  %v2046_v53 = vld [vmem:[#allocation7 + $0x1b8] sm:$0xff] }
 0x368   : > { %v3157_v40 = vpop.eup %3156  ;;  %3166 = vrcp.f32 %v1510_v7  ;;  %v1318_v59 = vmax.f32 %v4870_v49, 0.0  ;;  %v2754_v30 = vpack.c.bf16 %v2037_v35, %v2035_v32  ;;  %v2041_v7 = vld [vmem:[#allocation7 + $0x190] sm:$0xff] }
 0x369   : > { %v3159_v26 = vpop.eup %3158  ;;  %v4883_v62 = vmul.f32 %v3157_v40, %v1377_v14  ;;  %1788 = vadd.xlane.f32.xlu0 %v1787_v1  ;;  %v2756_v14 = vpack.c.bf16 %v2042_v13, %v2040_v23  ;;  %v1381_v21 = vmul.f32 %v1317_v9, %v4857_v16  ;;  %v2045_v32 = vld [vmem:[#allocation7 + $0x1b0] sm:$0xff]  ;;  %v2050_v16 = vld [vmem:[#allocation7 + $0x1d8] sm:$0xff]  ;;  %v2047_v9 = vld [vmem:[#allocation7 + $0x1c0] sm:$0xff] }
 0x36a   : > { %v4885_v39 = vmul.f32 %v3159_v26, %v1378_v41  ;;  %v3161_v25 = vpop.eup %3160  ;;  %2751 = vmatpush1.bf16.msra.mxu1 %v2750_v11  ;;  %v2758_v11 = vpack.c.bf16 %v2041_v7, %v2039_v0 }
 0x36b   : > { %v1697_v50 = vand.u32 2147483647, %v4883_v62  ;;  %v1705_v3 = vpop.xlane.xlu0 %1704  ;;  %v3163_v43 = vpop.eup %3162  ;;  %v4891_v1 = vmul.f32 %v3161_v25, %v1379_v60  ;;  %2753 = vmatprep.subr.bf16.mxu1 %v2752_v6  ;;  %v1382_v60 = vmul.f32 %v1318_v59, %v4861_v61  ;;  %v2043_v6 = vld [vmem:[#allocation7 + $0x1a0] sm:$0xff]  ;;  %v2049_v59 = vld [vmem:[#allocation7 + $0x1d0] sm:$0xff] }
 0x36c   : > { %v1698_v12 = vand.u32 2147483647, %v4885_v39  ;;  %v1799_v41 = vmax.f32 %v1705_v3, 1e-12  ;;  %v4893_v2 = vmul.f32 %v3163_v43, %v1380_v54  ;;  %v2760_v54 = vpack.c.bf16 %v2046_v53, %v2044_v19  ;;  %v2048_v43 = vld [vmem:[#allocation7 + $0x1c8] sm:$0xff] }
 0x36d   : > { %v1699_v28 = vand.u32 2147483647, %v4891_v1  ;;  %v2762_v23 = vpack.c.bf16 %v2045_v32, %v2043_v6  ;;  %v2764_v13 = vpack.c.bf16 %v2050_v16, %v2048_v43  ;;  %v2766_v19 = vpack.c.bf16 %v2049_v59, %v2047_v9 }
 0x36e   : > { %v1790_v37 = vadd.f32 %v1698_v12, %v1697_v50  ;;  %3168 = vrcp.f32 %v1799_v41  ;;  %v1700_v42 = vand.u32 2147483647, %v4893_v2  ;;  %2755 = vmatpush1.bf16.msra.mxu1 %v2754_v30 }
 0x36f   : > { %2757 = vmatprep.subr.bf16.mxu1 %v2756_v14  ;;  %v2054_v14 = vld [vmem:[#allocation7 + $0x1f8] sm:$0xff] }
 0x370   : > { %1791 = vadd.xlane.f32.xlu1 %v1790_v37  ;;  %v1708_v63 = vpop.xlane.xlu0 %1707  ;;  %v1793_v40 = vadd.f32 %v1700_v42, %v1699_v28  ;;  %v2052_v42 = vld [vmem:[#allocation7 + $0x1e8] sm:$0xff] }
 0x371   : > { %v1800_v49 = vmax.f32 %v1708_v63, 1e-12  ;;  %v3165_v26 = vpop.eup %3164  ;;  %v2768_v53 = vpack.c.bf16 %v2054_v14, %v2052_v42 }
 0x372   : > { %v3167_v25 = vpop.eup %3166  ;;  %1794 = vadd.xlane.f32.xlu0 %v1793_v40  ;;  %v4901_v50 = vmul.f32 %v3165_v26, %v1381_v21  ;;  %2759 = vmatpush1.bf16.msra.mxu1 %v2758_v11  ;;  %v2051_v40 = vld [vmem:[#allocation7 + $0x1e0] sm:$0xff]  ;;  %v2053_v21 = vld [vmem:[#allocation7 + $0x1f0] sm:$0xff] }
 0x373   : > { %3170 = vrcp.f32 %v1800_v49  ;;  %v4903_v35 = vmul.f32 %v3167_v25, %v1382_v60  ;;  %2761 = vmatprep.subr.bf16.mxu1 %v2760_v54  ;;  %v2770_v26 = vpack.c.bf16 %v2053_v21, %v2051_v40  ;;  %v5466_v60 = vld [vmem:[#allocation40_spill] sm:$0xff]  ;;  %v5467_v25 = vld [vmem:[#allocation39_spill] sm:$0xff] }
 0x374   : > { %v1711_v3 = vpop.xlane.xlu0 %1710  ;;  %v1701_v12 = vand.u32 2147483647, %v4901_v50 }
 0x375   : > { %v1801_v41 = vmax.f32 %v1711_v3, 1e-12  ;;  %v1702_v61 = vand.u32 2147483647, %v4903_v35 }
 0x376   : > { %2763 = vmatpush1.bf16.msra.mxu1 %v2762_v23 }
 0x377   : > { %3172 = vrcp.f32 %v1801_v41  ;;  %v1796_v28 = vadd.f32 %v1702_v61, %v1701_v12  ;;  %2765 = vmatprep.subr.bf16.mxu1 %v2764_v13 }
 0x378   : > { %v3169_v37 = vpop.eup %3168  ;;  %v1714_v30 = vpop.xlane.xlu0 %1713 }
 0x379   : > { %v1802_v0 = vmax.f32 %v1714_v30, 1e-12  ;;  %v1864_v7 = vmul.f32 %v3169_v37, %v4288_v44  ;;  %v1863_v63 = vmul.f32 %v3169_v37, %v4285_v38  ;;  %1797 = vadd.xlane.f32.xlu1 %v1796_v28  ;;  %v5468_v30 = vld [vmem:[#allocation41_spill] sm:$0xff] }
 0x37a   : > { %2767 = vmatpush1.bf16.msra.mxu1 %v2766_v19 }
 0x37b   : > { %3174 = vrcp.f32 %v1802_v0  ;;  %1928 = vst [vmem:[%s4910_s19 + $0x8] sm:$0xff] %v1864_v7  ;;  %2131 = vmatprep.mubr.f32.mxu1 %v1864_v7  ;;  %1927 = vst [vmem:[%s4910_s19] sm:$0xff] %v1863_v63  ;;  %2769 = vmatprep.subr.bf16.mxu1 %v2768_v53 }
 0x37c   : > { %v1717_v44 = vpop.xlane.xlu0 %1716 }
 0x37d   : > { %v3171_v49 = vpop.eup %3170  ;;  %v1803_v38 = vmax.f32 %v1717_v44, 1e-12 }
 0x37e   : > { %v1866_v11 = vmul.f32 %v3171_v49, %v5466_v60  ;;  %v1865_v54 = vmul.f32 %v3171_v49, %v5467_v25  ;;  %2771 = vmatpush1.bf16.msra.mxu1 %v2770_v26 }
 0x37f   : > { %3176 = vrcp.f32 %v1803_v38 }
 0x380   : > { %1930 = vst [vmem:[%s4910_s19 + $0x18] sm:$0xff] %v1866_v11  ;;  %1929 = vst [vmem:[%s4910_s19 + $0x10] sm:$0xff] %v1865_v54 }
 0x381   : > { %v3173_v6 = vpop.eup %3172  ;;  %2132 = vmatmul.mubr.f32.vlgmr.msra.gmra.mrb[0].mxu1 %v1863_v63 }
 0x382   : > { %v1868_v32 = vmul.f32 %v3173_v6, %v4324_v17  ;;  %v1867_v3 = vmul.f32 %v3173_v6, %v4316_v8  ;;  %v1720_v43 = vpop.xlane.xlu1 %1719  ;;  %2137 = vmatprep.mubr.f32.mxu1 %v1866_v11 }
 0x383   : > { %v1804_v16 = vmax.f32 %v1720_v43, 1e-12 }
 0x384   : > { %1932 = vst [vmem:[%s4910_s19 + $0x28] sm:$0xff] %v1868_v32  ;;  %1931 = vst [vmem:[%s4910_s19 + $0x20] sm:$0xff] %v1867_v3 }
 0x385   : > { %v3175_v12 = vpop.eup %3174  ;;  %3178 = vrcp.f32 %v1804_v16  ;;  %2138 = vmatmul.mubr.f32.gmra.mrb[2].mxu1 %v1865_v54 }
 0x386   : > { %v1870_v41 = vmul.f32 %v3175_v12, %v4345_v55  ;;  %v1869_v61 = vmul.f32 %v3175_v12, %v4342_v18  ;;  %v1723_v23 = vpop.xlane.xlu0 %1722  ;;  %2143 = vmatprep.mubr.f32.mxu1 %v1868_v32 }
 0x387   : > { %v1805_v13 = vmax.f32 %v1723_v23, 1e-12  ;;  %v5469_v23 = vld [vmem:[#allocation42_spill] sm:$0xff] }
 0x388   : > { %1934 = vst [vmem:[%s4910_s19 + $0x38] sm:$0xff] %v1870_v41  ;;  %1933 = vst [vmem:[%s4910_s19 + $0x30] sm:$0xff] %v1869_v61 }
 0x389   : > { %v3177_v17 = vpop.eup %3176  ;;  %3180 = vrcp.f32 %v1805_v13  ;;  %2144 = vmatmul.mubr.f32.gmra.mrb[4].mxu1 %v1867_v3 }
 0x38a   : > { %v1872_v8 = vmul.f32 %v3177_v17, %v4357_v51  ;;  %v1871_v9 = vmul.f32 %v3177_v17, %v4349_v36  ;;  %2149 = vmatprep.mubr.f32.mxu1 %v1870_v41  ;;  %v5470_v17 = vld [vmem:[#allocation44_spill] sm:$0xff] }
 0x38b   : > { %v1726_v59 = vpop.xlane.xlu1 %1725 }
 0x38c   : > { %1936 = vst [vmem:[%s4910_s19 + $0x48] sm:$0xff] %v1872_v8  ;;  %1935 = vst [vmem:[%s4910_s19 + $0x40] sm:$0xff] %v1871_v9  ;;  %v1806_v55 = vmax.f32 %v1726_v59, 1e-12 }
 0x38d   : > { %2150 = vmatmul.mubr.f32.gmra.mrb[6].mxu1 %v1869_v61 }
 0x38e   : > { %3182 = vrcp.f32 %v1806_v55  ;;  %2155 = vmatprep.mubr.f32.mxu1 %v1872_v8 }
 0x38f   : > { %v3179_v18 = vpop.eup %3178 }
 0x390   : > { %v1729_v37 = vpop.xlane.xlu0 %1728  ;;  %v1874_v28 = vmul.f32 %v3179_v18, %v4381_v52  ;;  %v1873_v51 = vmul.f32 %v3179_v18, %v5468_v30  ;;  %v5473_v30 = vld [vmem:[#allocation45_spill] sm:$0xff] }
 0x391   : > { %v1807_v42 = vmax.f32 %v1729_v37, 1e-12  ;;  %2156 = vmatmul.mubr.f32.gmra.mrb[8].mxu1 %v1871_v9  ;;  %v5471_v9 = vld [vmem:[#allocation43_spill] sm:$0xff]  ;;  %v5472_v37 = vld [vmem:[#allocation46_spill] sm:$0xff] }
 0x392   : > { %1938 = vst [vmem:[%s4910_s19 + $0x58] sm:$0xff] %v1874_v28  ;;  %1937 = vst [vmem:[%s4910_s19 + $0x50] sm:$0xff] %v1873_v51  ;;  %2161 = vmatprep.mubr.f32.mxu1 %v1874_v28 }
 0x393   : > { %v3181_v36 = vpop.eup %3180  ;;  %3184 = vrcp.f32 %v1807_v42 }
 0x394   : > { %v1876_v14 = vmul.f32 %v3181_v36, %v4394_v29  ;;  %v1875_v0 = vmul.f32 %v3181_v36, %v4387_v58 }
 0x395   : > { %2162 = vmatmul.mubr.f32.gmra.mrb[10].mxu1 %v1873_v51 }
 0x396   : > { %v1732_v7 = vpop.xlane.xlu1 %1731  ;;  %1940 = vst [vmem:[%s4910_s19 + $0x68] sm:$0xff] %v1876_v14  ;;  %1939 = vst [vmem:[%s4910_s19 + $0x60] sm:$0xff] %v1875_v0  ;;  %2167 = vmatprep.mubr.f32.mxu1 %v1876_v14 }
 0x397   : > { %v1808_v52 = vmax.f32 %v1732_v7, 1e-12 }
 0x398   : > { %v3183_v63 = vpop.eup %3182 }
 0x399   : > { %3186 = vrcp.f32 %v1808_v52  ;;  %v1878_v19 = vmul.f32 %v3183_v63, %v4411_v33  ;;  %v1877_v53 = vmul.f32 %v3183_v63, %v4406_v22  ;;  %2168 = vmatmul.mubr.f32.gmra.mrb[12].mxu1 %v1875_v0  ;;  %v5474_v0 = vld [vmem:[#allocation48_spill] sm:$0xff]  ;;  %v5475_v52 = vld [vmem:[#allocation47_spill] sm:$0xff] }
 0x39b   : > { %v1735_v40 = vpop.xlane.xlu0 %1734  ;;  %1942 = vst [vmem:[%s4910_s19 + $0x78] sm:$0xff] %v1878_v19  ;;  %1941 = vst [vmem:[%s4910_s19 + $0x70] sm:$0xff] %v1877_v53  ;;  %2173 = vmatprep.mubr.f32.mxu1 %v1878_v19 }
 0x39c   : > { %v1809_v29 = vmax.f32 %v1735_v40, 1e-12 }
 0x39d   : > { %v3185_v58 = vpop.eup %3184  ;;  %2174 = vmatmul.mubr.f32.gmra.mrb[14].mxu1 %v1877_v53 }
 0x39e   : > { %3188 = vrcp.f32 %v1809_v29  ;;  %v1880_v21 = vmul.f32 %v3185_v58, %v4428_v34  ;;  %v1879_v44 = vmul.f32 %v3185_v58, %v4423_v20  ;;  %v5476_v29 = vld [vmem:[#allocation16_spill] sm:$0xff] }
 0x39f   : > { %v1738_v49 = vpop.xlane.xlu1 %1737 }
 0x3a0   : > { %v1810_v38 = vmax.f32 %v1738_v49, 1e-12  ;;  %1944 = vst [vmem:[%s4910_s19 + $0x88] sm:$0xff] %v1880_v21  ;;  %1943 = vst [vmem:[%s4910_s19 + $0x80] sm:$0xff] %v1879_v44  ;;  %2179 = vmatprep.mubr.f32.mxu1 %v1880_v21  ;;  %v5477_v21 = vld [vmem:[#allocation29_spill] sm:$0xff] }
 0x3a1   : > { %2180 = vmatmul.mubr.f32.gmra.mrb[16].mxu1 %v1879_v44 }
 0x3a2   : > { %3190 = vrcp.f32 %v1810_v38 }
 0x3a3   : > { %v3187_v22 = vpop.eup %3186  ;;  %v1741_v33 = vpop.xlane.xlu0 %1740 }
 0x3a4   : > { %v1811_v26 = vmax.f32 %v1741_v33, 1e-12  ;;  %v1882_v60 = vmul.f32 %v3187_v22, %v4443_v56  ;;  %v1881_v34 = vmul.f32 %v3187_v22, %v4438_v31 }
 0x3a6   : > { %3192 = vrcp.f32 %v1811_v26  ;;  %1946 = vst [vmem:[%s4910_s19 + $0x98] sm:$0xff] %v1882_v60  ;;  %2185 = vmatprep.mubr.f32.mxu1 %v1882_v60  ;;  %1945 = vst [vmem:[%s4910_s19 + $0x90] sm:$0xff] %v1881_v34  ;;  %v5478_v26 = vld [vmem:[#allocation17_spill] sm:$0xff] }
 0x3a7   : > { %2186 = vmatmul.mubr.f32.gmra.mrb[18].mxu1 %v1881_v34  ;;  %v5479_v34 = vld [vmem:[#allocation30_spill] sm:$0xff] }
 0x3a8   : > { %v3189_v20 = vpop.eup %3188 }
 0x3a9   : > { %v1884_v11 = vmul.f32 %v3189_v20, %v4464_v46  ;;  %v1883_v25 = vmul.f32 %v3189_v20, %v4460_v15  ;;  %v1744_v54 = vpop.xlane.xlu1 %1743 }
 0x3aa   : > { %v1812_v6 = vmax.f32 %v1744_v54, 1e-12  ;;  %v5480_v54 = vld [vmem:[#allocation19_spill] sm:$0xff] }
 0x3ab   : > { %1948 = vst [vmem:[%s4910_s19 + $0xa8] sm:$0xff] %v1884_v11  ;;  %2191 = vmatprep.mubr.f32.mxu1 %v1884_v11  ;;  %1947 = vst [vmem:[%s4910_s19 + $0xa0] sm:$0xff] %v1883_v25 }
 0x3ac   : > { %v3191_v56 = vpop.eup %3190  ;;  %2192 = vmatmul.mubr.f32.gmra.mrb[20].mxu1 %v1883_v25  ;;  %3194 = vrcp.f32 %v1812_v6 }
 0x3ad   : > { %v1886_v31 = vmul.f32 %v3191_v56, %v4484_v24  ;;  %v1885_v32 = vmul.f32 %v3191_v56, %v4480_v47  ;;  %v5481_v56 = vld [vmem:[#allocation18_spill] sm:$0xff] }
 0x3af   : > { %v1747_v3 = vpop.xlane.xlu0 %1746  ;;  %1950 = vst [vmem:[%s4910_s19 + $0xb8] sm:$0xff] %v1886_v31  ;;  %2197 = vmatprep.mubr.f32.mxu1 %v1886_v31  ;;  %1949 = vst [vmem:[%s4910_s19 + $0xb0] sm:$0xff] %v1885_v32 }
 0x3b0   : > { %v3193_v46 = vpop.eup %3192  ;;  %v1813_v15 = vmax.f32 %v1747_v3, 1e-12  ;;  %2198 = vmatmul.mubr.f32.gmra.mrb[22].mxu1 %v1885_v32 }
 0x3b1   : > { %v1888_v43 = vmul.f32 %v3193_v46, %v4499_v10  ;;  %v1887_v16 = vmul.f32 %v3193_v46, %v4493_v57 }
 0x3b2   : > { %3196 = vrcp.f32 %v1813_v15 }
 0x3b3   : > { %1952 = vst [vmem:[%s4910_s19 + $0xc8] sm:$0xff] %v1888_v43  ;;  %2203 = vmatprep.mubr.f32.mxu1 %v1888_v43  ;;  %1951 = vst [vmem:[%s4910_s19 + $0xc0] sm:$0xff] %v1887_v16 }
 0x3b4   : > { %v1750_v24 = vpop.xlane.xlu1 %1749  ;;  %2204 = vmatmul.mubr.f32.gmra.mrb[24].mxu1 %v1887_v16 }
 0x3b5   : > { %v1814_v47 = vmax.f32 %v1750_v24, 1e-12 }
 0x3b6   : > { %v3195_v12 = vpop.eup %3194 }
 0x3b7   : > { %3198 = vrcp.f32 %v1814_v47  ;;  %v1890_v61 = vmul.f32 %v3195_v12, %v4524_v4  ;;  %v1889_v13 = vmul.f32 %v3195_v12, %v5469_v23 }
 0x3b8   : > { %v1753_v41 = vpop.xlane.xlu0 %1752 }
 0x3b9   : > { %v1815_v10 = vmax.f32 %v1753_v41, 1e-12  ;;  %1954 = vst [vmem:[%s4910_s19 + $0xd8] sm:$0xff] %v1890_v61  ;;  %2209 = vmatprep.mubr.f32.mxu1 %v1890_v61  ;;  %1953 = vst [vmem:[%s4910_s19 + $0xd0] sm:$0xff] %v1889_v13  ;;  %v5482_v41 = vld [vmem:[#allocation20_spill] sm:$0xff] }
 0x3ba   : > { %2210 = vmatmul.mubr.f32.gmra.mrb[26].mxu1 %v1889_v13 }
 0x3bb   : > { %3200 = vrcp.f32 %v1815_v10 }
 0x3bc   : > { %v3197_v57 = vpop.eup %3196 }
 0x3bd   : > { %v1892_v8 = vmul.f32 %v3197_v57, %v5470_v17  ;;  %v1891_v59 = vmul.f32 %v3197_v57, %v5471_v9  ;;  %v5483_v17 = vld [vmem:[#allocation21_spill] sm:$0xff]  ;;  %v5484_v9 = vld [vmem:[#allocation23_spill] sm:$0xff] }
 0x3be   : > { %v1756_v55 = vpop.xlane.xlu1 %1755 }
 0x3bf   : > { %v1816_v18 = vmax.f32 %v1756_v55, 1e-12  ;;  %1956 = vst [vmem:[%s4910_s19 + $0xe8] sm:$0xff] %v1892_v8  ;;  %2215 = vmatprep.mubr.f32.mxu1 %v1892_v8  ;;  %1955 = vst [vmem:[%s4910_s19 + $0xe0] sm:$0xff] %v1891_v59  ;;  %v5485_v55 = vld [vmem:[#allocation22_spill] sm:$0xff] }
 0x3c0   : > { %2216 = vmatmul.mubr.f32.gmra.mrb[28].mxu1 %v1891_v59 }
 0x3c1   : > { %v3199_v4 = vpop.eup %3198  ;;  %3202 = vrcp.f32 %v1816_v18 }
 0x3c2   : > { %v1894_v28 = vmul.f32 %v3199_v4, %v5472_v37  ;;  %v1893_v51 = vmul.f32 %v3199_v4, %v5473_v30 }
 0x3c4   : > { %v1759_v42 = vpop.xlane.xlu0 %1758  ;;  %1958 = vst [vmem:[%s4910_s19 + $0xf8] sm:$0xff] %v1894_v28  ;;  %2221 = vmatprep.mubr.f32.mxu1 %v1894_v28  ;;  %1957 = vst [vmem:[%s4910_s19 + $0xf0] sm:$0xff] %v1893_v51  ;;  %v5486_v28 = vld [vmem:[#allocation25_spill] sm:$0xff] }
 0x3c5   : > { %v1817_v36 = vmax.f32 %v1759_v42, 1e-12  ;;  %v3201_v14 = vpop.eup %3200  ;;  %2222 = vmatmul.mubr.f32.gmra.mrb[30].mxu1 %v1893_v51  ;;  %v5487_v51 = vld [vmem:[#allocation24_spill] sm:$0xff] }
 0x3c6   : > { %v1896_v7 = vmul.f32 %v3201_v14, %v5474_v0  ;;  %v1895_v63 = vmul.f32 %v3201_v14, %v5475_v52 }
 0x3c7   : > { %3204 = vrcp.f32 %v1817_v36 }
 0x3c8   : > { %v1762_v19 = vpop.xlane.xlu1 %1761  ;;  %1960 = vst [vmem:[%s4910_s19 + $0x108] sm:$0xff] %v1896_v7  ;;  %2227 = vmatprep.mubr.f32.mxu1 %v1896_v7  ;;  %1959 = vst [vmem:[%s4910_s19 + $0x100] sm:$0xff] %v1895_v63  ;;  %v5488_v7 = vld [vmem:[#allocation27_spill] sm:$0xff] }
 0x3c9   : > { %v1818_v53 = vmax.f32 %v1762_v19, 1e-12  ;;  %2228 = vmatmul.mubr.f32.gmra.mrb[32].mxu1 %v1895_v63  ;;  %v5489_v63 = vld [vmem:[#allocation26_spill] sm:$0xff] }
 0x3cb   : > { %v3203_v40 = vpop.eup %3202  ;;  %3206 = vrcp.f32 %v1818_v53 }
 0x3cc   : > { %v1898_v58 = vmul.f32 %v3203_v40, %v5476_v29  ;;  %v1897_v44 = vmul.f32 %v3203_v40, %v5477_v21 }
 0x3cd   : > { %v1765_v49 = vpop.xlane.xlu0 %1764 }
 0x3ce   : > { %v1819_v38 = vmax.f32 %v1765_v49, 1e-12  ;;  %1962 = vst [vmem:[%s4910_s19 + $0x118] sm:$0xff] %v1898_v58  ;;  %2233 = vmatprep.mubr.f32.mxu1 %v1898_v58  ;;  %1961 = vst [vmem:[%s4910_s19 + $0x110] sm:$0xff] %v1897_v44  ;;  %v5490_v58 = vld [vmem:[#allocation28_spill] sm:$0xff] }
 0x3cf   : > { %2234 = vmatmul.mubr.f32.gmra.mrb[34].mxu1 %v1897_v44  ;;  %v5491_v44 = vld [vmem:[#allocation31_spill] sm:$0xff] }
 0x3d0   : > { %3208 = vrcp.f32 %v1819_v38 }
 0x3d1   : > { %v3205_v22 = vpop.eup %3204  ;;  %v1768_v33 = vpop.xlane.xlu1 %1767 }
 0x3d2   : > { %v1900_v60 = vmul.f32 %v3205_v22, %v5478_v26  ;;  %v1899_v20 = vmul.f32 %v3205_v22, %v5479_v34  ;;  %v1820_v11 = vmax.f32 %v1768_v33, 1e-12 }
 0x3d4   : > { %1964 = vst [vmem:[%s4910_s19 + $0x128] sm:$0xff] %v1900_v60  ;;  %2239 = vmatprep.mubr.f32.mxu1 %v1900_v60  ;;  %1963 = vst [vmem:[%s4910_s19 + $0x120] sm:$0xff] %v1899_v20  ;;  %3210 = vrcp.f32 %v1820_v11  ;;  %v5492_v60 = vld [vmem:[#allocation33_spill] sm:$0xff] }
 0x3d5   : > { %2240 = vmatmul.mubr.f32.gmra.mrb[36].mxu1 %v1899_v20  ;;  %v3207_v25 = vpop.eup %3206  ;;  %v5493_v20 = vld [vmem:[#allocation32_spill] sm:$0xff] }
 0x3d6   : > { %v1902_v6 = vmul.f32 %v3207_v25, %v5480_v54  ;;  %v1901_v31 = vmul.f32 %v3207_v25, %v5481_v56 }
 0x3d8   : > { %v1771_v32 = vpop.xlane.xlu0 %1770  ;;  %1966 = vst [vmem:[%s4910_s19 + $0x138] sm:$0xff] %v1902_v6  ;;  %2245 = vmatprep.mubr.f32.mxu1 %v1902_v6  ;;  %1965 = vst [vmem:[%s4910_s19 + $0x130] sm:$0xff] %v1901_v31  ;;  %v5494_v6 = vld [vmem:[#allocation35_spill] sm:$0xff] }
 0x3d9   : > { %v1821_v3 = vmax.f32 %v1771_v32, 1e-12  ;;  %2246 = vmatmul.mubr.f32.gmra.mrb[38].mxu1 %v1901_v31  ;;  %v5495_v31 = vld [vmem:[#allocation34_spill] sm:$0xff] }
 0x3da   : > { %v3209_v46 = vpop.eup %3208  ;;  %v1774_v15 = vpop.xlane.xlu1 %1773 }
 0x3db   : > { %3212 = vrcp.f32 %v1821_v3  ;;  %v1822_v43 = vmax.f32 %v1774_v15, 1e-12  ;;  %v1904_v16 = vmul.f32 %v3209_v46, %v4679_v45  ;;  %v1903_v24 = vmul.f32 %v3209_v46, %v4676_v27 }
 0x3dd   : > { %3214 = vrcp.f32 %v1822_v43  ;;  %1968 = vst [vmem:[%s4910_s19 + $0x148] sm:$0xff] %v1904_v16  ;;  %2251 = vmatprep.mubr.f32.mxu1 %v1904_v16  ;;  %1967 = vst [vmem:[%s4910_s19 + $0x140] sm:$0xff] %v1903_v24 }
 0x3de   : > { %v3211_v47 = vpop.eup %3210  ;;  %2252 = vmatmul.mubr.f32.gmra.mrb[40].mxu1 %v1903_v24 }
 0x3df   : > { %v1906_v12 = vmul.f32 %v3211_v47, %v4695_v5  ;;  %v1905_v61 = vmul.f32 %v3211_v47, %v5482_v41 }
 0x3e1   : > { %v1777_v23 = vpop.xlane.xlu0 %1776  ;;  %1970 = vst [vmem:[%s4910_s19 + $0x158] sm:$0xff] %v1906_v12  ;;  %2257 = vmatprep.mubr.f32.mxu1 %v1906_v12  ;;  %1969 = vst [vmem:[%s4910_s19 + $0x150] sm:$0xff] %v1905_v61 }
 0x3e2   : > { %v1823_v13 = vmax.f32 %v1777_v23, 1e-12  ;;  %2258 = vmatmul.mubr.f32.gmra.mrb[42].mxu1 %v1905_v61  ;;  %v5496_v61 = vld [vmem:[#allocation15_spill] sm:$0xff] }
 0x3e4   : > { %3216 = vrcp.f32 %v1823_v13  ;;  %v5498_v13 = vsub.s32 1, %v5496_v61 }
 0x3e5   : > { %v3213_v27 = vpop.eup %3212  ;;  %v1780_v45 = vpop.xlane.xlu1 %1779 }
 0x3e6   : > { %v1824_v10 = vmax.f32 %v1780_v45, 1e-12  ;;  %v1908_v57 = vmul.f32 %v3213_v27, %v4733_v48  ;;  %v1907_v5 = vmul.f32 %v3213_v27, %v5483_v17 }
 0x3e7   : > { %v3215_v8 = vpop.eup %3214 }
 0x3e8   : > { %3218 = vrcp.f32 %v1824_v10  ;;  %1972 = vst [vmem:[%s4910_s19 + $0x168] sm:$0xff] %v1908_v57  ;;  %2263 = vmatprep.mubr.f32.mxu1 %v1908_v57  ;;  %1971 = vst [vmem:[%s4910_s19 + $0x160] sm:$0xff] %v1907_v5  ;;  %v1910_v59 = vmul.f32 %v3215_v8, %v5484_v9  ;;  %v1909_v18 = vmul.f32 %v3215_v8, %v5485_v55 }
 0x3e9   : > { %2264 = vmatmul.mubr.f32.gmra.mrb[44].mxu1 %v1907_v5 }
 0x3ea   : > { %1974 = vst [vmem:[%s4910_s19 + $0x178] sm:$0xff] %v1910_v59  ;;  %2269 = vmatprep.mubr.f32.mxu1 %v1910_v59  ;;  %1973 = vst [vmem:[%s4910_s19 + $0x170] sm:$0xff] %v1909_v18 }
 0x3eb   : > { %v1783_v4 = vpop.xlane.xlu0 %1782 }
 0x3ec   : > { %v1825_v37 = vmax.f32 %v1783_v4, 1e-12 }
 0x3ed   : > { %2270 = vmatmul.mubr.f32.gmra.mrb[46].mxu1 %v1909_v18 }
 0x3ee   : > { %v3217_v48 = vpop.eup %3216  ;;  %3220 = vrcp.f32 %v1825_v37 }
 0x3ef   : > { %v1912_v30 = vmul.f32 %v3217_v48, %v5486_v28  ;;  %v1911_v42 = vmul.f32 %v3217_v48, %v5487_v51 }
 0x3f1   : > { %1976 = vst [vmem:[%s4910_s19 + $0x188] sm:$0xff] %v1912_v30  ;;  %2275 = vmatprep.mubr.f32.mxu1 %v1912_v30  ;;  %1975 = vst [vmem:[%s4910_s19 + $0x180] sm:$0xff] %v1911_v42 }
 0x3f2   : > { %v1786_v36 = vpop.xlane.xlu1 %1785  ;;  %v3219_v14 = vpop.eup %3218  ;;  %2276 = vmatmul.mubr.f32.gmra.mrb[48].mxu1 %v1911_v42 }
 0x3f3   : > { %v1826_v0 = vmax.f32 %v1786_v36, 1e-12  ;;  %v1914_v52 = vmul.f32 %v3219_v14, %v5488_v7  ;;  %v1913_v19 = vmul.f32 %v3219_v14, %v5489_v63 }
 0x3f5   : > { %3222 = vrcp.f32 %v1826_v0  ;;  %1978 = vst [vmem:[%s4910_s19 + $0x198] sm:$0xff] %v1914_v52  ;;  %2281 = vmatprep.mubr.f32.mxu1 %v1914_v52  ;;  %1977 = vst [vmem:[%s4910_s19 + $0x190] sm:$0xff] %v1913_v19 }
 0x3f6   : > { %v1789_v53 = vpop.xlane.xlu0 %1788  ;;  %2282 = vmatmul.mubr.f32.gmra.mrb[50].mxu1 %v1913_v19 }
 0x3f7   : > { %v1827_v40 = vmax.f32 %v1789_v53, 1e-12 }
 0x3f8   : > { %v3221_v29 = vpop.eup %3220 }
 0x3f9   : > { %3224 = vrcp.f32 %v1827_v40  ;;  %v1916_v21 = vmul.f32 %v3221_v29, %v5490_v58  ;;  %v1915_v49 = vmul.f32 %v3221_v29, %v5491_v44 }
 0x3fb   : > { %1980 = vst [vmem:[%s4910_s19 + $0x1a8] sm:$0xff] %v1916_v21  ;;  %2287 = vmatprep.mubr.f32.mxu1 %v1916_v21  ;;  %1979 = vst [vmem:[%s4910_s19 + $0x1a0] sm:$0xff] %v1915_v49 }
 0x3fc   : > { %2288 = vmatmul.mubr.f32.gmra.mrb[52].mxu1 %v1915_v49 }
 0x3fd   : > { %v1792_v38 = vpop.xlane.xlu1 %1791 }
 0x3fe   : > { %v1828_v22 = vmax.f32 %v1792_v38, 1e-12 }
 0x3ff   : > { %v3223_v33 = vpop.eup %3222  ;;  %v1795_v26 = vpop.xlane.xlu0 %1794 }
 0x400   : > { %3226 = vrcp.f32 %v1828_v22  ;;  %v1918_v34 = vmul.f32 %v3223_v33, %v5492_v60  ;;  %v1917_v11 = vmul.f32 %v3223_v33, %v5493_v20  ;;  %v1829_v25 = vmax.f32 %v1795_v26, 1e-12 }
 0x402   : > { %1982 = vst [vmem:[%s4910_s19 + $0x1b8] sm:$0xff] %v1918_v34  ;;  %2293 = vmatprep.mubr.f32.mxu1 %v1918_v34  ;;  %1981 = vst [vmem:[%s4910_s19 + $0x1b0] sm:$0xff] %v1917_v11  ;;  %3228 = vrcp.f32 %v1829_v25 }
 0x403   : > { %2294 = vmatmul.mubr.f32.gmra.mrb[54].mxu1 %v1917_v11  ;;  %v3225_v54 = vpop.eup %3224 }
 0x404   : > { %v1920_v56 = vmul.f32 %v3225_v54, %v5494_v6  ;;  %v1919_v32 = vmul.f32 %v3225_v54, %v5495_v31 }
 0x406   : > { %v1798_v3 = vpop.xlane.xlu1 %1797  ;;  %1984 = vst [vmem:[%s4910_s19 + $0x1c8] sm:$0xff] %v1920_v56  ;;  %2299 = vmatprep.mubr.f32.mxu1 %v1920_v56  ;;  %1983 = vst [vmem:[%s4910_s19 + $0x1c0] sm:$0xff] %v1919_v32 }
 0x407   : > { %v1830_v46 = vmax.f32 %v1798_v3, 1e-12  ;;  %2300 = vmatmul.mubr.f32.gmra.mrb[56].mxu1 %v1919_v32 }
 0x409   : > { %3230 = vrcp.f32 %v1830_v46 }
 0x40a   : > { %v3227_v15 = vpop.eup %3226 }
 0x40b   : > { %v1922_v43 = vmul.f32 %v3227_v15, %v4885_v39  ;;  %v1921_v16 = vmul.f32 %v3227_v15, %v4883_v62 }
 0x40c   : > { %v3229_v24 = vpop.eup %3228 }
 0x40d   : > { %1986 = vst [vmem:[%s4910_s19 + $0x1d8] sm:$0xff] %v1922_v43  ;;  %2305 = vmatprep.mubr.f32.mxu1 %v1922_v43  ;;  %1985 = vst [vmem:[%s4910_s19 + $0x1d0] sm:$0xff] %v1921_v16  ;;  %v1924_v47 = vmul.f32 %v3229_v24, %v4893_v2  ;;  %v1923_v12 = vmul.f32 %v3229_v24, %v4891_v1  ;;  %v2055_v2 = vld [vmem:[%s5277_s4] sm:$0x3]  ;;  %v5497_v1 = vsub.s32 0, %v5496_v61 }
 0x40e   : > { %2306 = vmatmul.mubr.f32.gmra.mrb[58].mxu1 %v1921_v16  ;;  %v5047_v27 = vrot.slane %v2055_v2, %v5498_v13 }
 0x40f   : > { %1988 = vst [vmem:[%s4910_s19 + $0x1e8] sm:$0xff] %v1924_v47  ;;  %2311 = vmatprep.mubr.f32.mxu1 %v1924_v47  ;;  %1987 = vst [vmem:[%s4910_s19 + $0x1e0] sm:$0xff] %v1923_v12  ;;  %v5043_v23 = vrot.slane %v2055_v2, %v5497_v1 }
 0x412   : > { %2312 = vmatmul.mubr.f32.gmra.mrb[60].mxu1 %v1923_v12 }
 0x413   : > { %v3231_v41 = vpop.eup %3230 }
 0x414   : > { %v1926_v39 = vmul.f32 %v3231_v41, %v4903_v35  ;;  %v1925_v62 = vmul.f32 %v3231_v41, %v4901_v50 }
 0x416   : > { %1990 = vst [vmem:[%s4910_s19 + $0x1f8] sm:$0xff] %v1926_v39  ;;  %2317 = vmatprep.mubr.f32.mxu1 %v1926_v39  ;;  %1989 = vst [vmem:[%s4910_s19 + $0x1f0] sm:$0xff] %v1925_v62 }
 0x417   : > { %2318 = vmatmul.mubr.f32.gmra.mrb[62].mxu1 %v1925_v62 }
 0x454   : > { %v2133_v45 = vpop.f32.mrb[0].mxu1 }
 0x455   : > { %v2134_v35 = vadd.f32 %v2133_v45, %v5043_v23  ;;  %v2135_v50 = vpop.f32.mrb[1].mxu1 }
 0x456   : > { %v2136_v10 = vadd.f32 %v2135_v50, %v5047_v27 }
 0x457   : > { %2324 = vst [vmem:[%s5052_s17] sm:$0xff] %v2134_v35 }
 0x458   : > { %2325 = vst [vmem:[%s5052_s17 + $0x8] sm:$0xff] %v2136_v10  ;;  %v2139_v57 = vpop.f32.mrb[2].mxu1 }
 0x459   : > { %v2140_v17 = vadd.f32 %v2139_v57, %v5043_v23  ;;  %v2141_v5 = vpop.f32.mrb[3].mxu1 }
 0x45a   : > { %v2142_v8 = vadd.f32 %v2141_v5, %v5047_v27 }
 0x45b   : > { %2326 = vst [vmem:[%s5052_s17 + $0x10] sm:$0xff] %v2140_v17 }
 0x45c   : > { %2327 = vst [vmem:[%s5052_s17 + $0x18] sm:$0xff] %v2142_v8  ;;  %v2145_v9 = vpop.f32.mrb[4].mxu1 }
 0x45d   : > { %v2146_v59 = vadd.f32 %v2145_v9, %v5043_v23  ;;  %v2147_v55 = vpop.f32.mrb[5].mxu1 }
 0x45e   : > { %v2148_v18 = vadd.f32 %v2147_v55, %v5047_v27 }
 0x45f   : > { %2328 = vst [vmem:[%s5052_s17 + $0x20] sm:$0xff] %v2146_v59 }
 0x460   : > { %2329 = vst [vmem:[%s5052_s17 + $0x28] sm:$0xff] %v2148_v18  ;;  %v2151_v4 = vpop.f32.mrb[6].mxu1 }
 0x461   : > { %v2152_v37 = vadd.f32 %v2151_v4, %v5043_v23  ;;  %v2153_v48 = vpop.f32.mrb[7].mxu1 }
 0x462   : > { %v2154_v28 = vadd.f32 %v2153_v48, %v5047_v27 }
 0x463   : > { %2330 = vst [vmem:[%s5052_s17 + $0x30] sm:$0xff] %v2152_v37 }
 0x464   : > { %2331 = vst [vmem:[%s5052_s17 + $0x38] sm:$0xff] %v2154_v28  ;;  %v2157_v30 = vpop.f32.mrb[8].mxu1 }
 0x465   : > { %v2158_v51 = vadd.f32 %v2157_v30, %v5043_v23  ;;  %v2159_v42 = vpop.f32.mrb[9].mxu1 }
 0x466   : > { %v2160_v36 = vadd.f32 %v2159_v42, %v5047_v27 }
 0x467   : > { %2332 = vst [vmem:[%s5052_s17 + $0x40] sm:$0xff] %v2158_v51 }
 0x468   : > { %2333 = vst [vmem:[%s5052_s17 + $0x48] sm:$0xff] %v2160_v36  ;;  %v2163_v14 = vpop.f32.mrb[10].mxu1 }
 0x469   : > { %v2164_v0 = vadd.f32 %v2163_v14, %v5043_v23  ;;  %v2165_v7 = vpop.f32.mrb[11].mxu1 }
 0x46a   : > { %v2166_v52 = vadd.f32 %v2165_v7, %v5047_v27 }
 0x46b   : > { %2334 = vst [vmem:[%s5052_s17 + $0x50] sm:$0xff] %v2164_v0 }
 0x46c   : > { %2335 = vst [vmem:[%s5052_s17 + $0x58] sm:$0xff] %v2166_v52  ;;  %v2169_v63 = vpop.f32.mrb[12].mxu1 }
 0x46d   : > { %v2170_v19 = vadd.f32 %v2169_v63, %v5043_v23  ;;  %v2171_v53 = vpop.f32.mrb[13].mxu1 }
 0x46e   : > { %v2172_v40 = vadd.f32 %v2171_v53, %v5047_v27 }
 0x46f   : > { %2336 = vst [vmem:[%s5052_s17 + $0x60] sm:$0xff] %v2170_v19 }
 0x470   : > { %2337 = vst [vmem:[%s5052_s17 + $0x68] sm:$0xff] %v2172_v40  ;;  %v2175_v29 = vpop.f32.mrb[14].mxu1 }
 0x471   : > { %3331 = shalt.err (!%p3328_p1)
}
 0x472   : > { %s3332_s19 = scalar_lea.hbm %s5084_s10, 8192  ;;  %s3336_s12 = scalar_lea.hbm %s5279_s6, 16384 }
 0x473   : > { %p3333_p13 = scmp.ne.s32.totalorder %s5084_s10, %s3332_s19  ;;  %p3337_p4 = scmp.lt.u32.totalorder %s5084_s10, %s5279_s6 }
 0x474   : > { %p3338_p5 = scmp.lt.u32.totalorder %s3336_s12, %s3332_s19  ;;  %p3340_p11 = scmp.lt.u32.totalorder %s3332_s19, %s5084_s10 }
 0x475   : > { %p3334_p6 = pnand %p3333_p13, %p5499_p0 }
 0x476   : > { %p3339_p8 = por %p3338_p5, %p3337_p4 }
 0x477   : > { %p3335_p10 = pneg %p3334_p6 }
 0x478   : > { %p3341_p2 = por %p3340_p11, %p3339_p8 }
 0x47a   : > { %p3342_p3 = pnand %p3341_p2, %p3335_p10 }
 0x47c   : > { %3345 = shalt.err (!%p3342_p3)
}
 0x47d   : > { %s3428_s18 = smov 256   ;;  %s3429_s27 = smov 16   ;;  %v2176_v58 = vadd.f32 %v2175_v29, %v5043_v23  ;;  %v2177_v21 = vpop.f32.mrb[15].mxu1 }
 0x47e   : > { %2783 = dma.vmem_to_hbm [thread:$0]  (%p5499_p0), %s5088_s15, 8192, %s5084_s10, %s2394_s14, %s3428_s18, %s3428_s18, %s3429_s27   ;;  %v2178_v44 = vadd.f32 %v2177_v21, %v5047_v27  ;;  %v2181_v49 = vpop.f32.mrb[16].mxu1 }
 0x47f   : > { %2338 = vst [vmem:[%s5052_s17 + $0x70] sm:$0xff] %v2176_v58  ;;  %v2182_v38 = vadd.f32 %v2181_v49, %v5043_v23  ;;  %v2183_v22 = vpop.f32.mrb[17].mxu1  ;;  %s2408_s10 = sshll.u32 %s5052_s17, 4  ;;  %s5222_s29 = scalar_lea.hbm %s5278_s5, %s2641_s26  ;;  %s5224_s10 = int_to_ptr.vmem [resolvable:$true] %s2408_s10 }
 0x480   : > { %2339 = vst [vmem:[%s5052_s17 + $0x78] sm:$0xff] %v2178_v44  ;;  %v2184_v33 = vadd.f32 %v2183_v22, %v5047_v27  ;;  %v2187_v26 = vpop.f32.mrb[18].mxu1  ;;  %s2389_s19 = scalar_lea.sflag [#allocation4], %s3647_s30  ;;  %s3346_s20 = scalar_lea.vmem %s5224_s10, 8192 }
 0x481   : > { %2340 = vst [vmem:[%s5052_s17 + $0x80] sm:$0xff] %v2182_v38  ;;  %v2188_v60 = vadd.f32 %v2187_v26, %v5043_v23  ;;  %v2189_v34 = vpop.f32.mrb[19].mxu1  ;;  %p3347_p7 = scmp.ne.s32.totalorder %s5224_s10, %s3346_s20  ;;  %s3430_s16 = smov [#allocation8]  }
 0x482   : > { %2341 = vst [vmem:[%s5052_s17 + $0x88] sm:$0xff] %v2184_v33  ;;  %v2190_v20 = vadd.f32 %v2189_v34, %v5047_v27  ;;  %v2193_v11 = vpop.f32.mrb[20].mxu1  ;;  %s3350_s25 = sshll.u32 %s3430_s16, 4  ;;  %s3351_s25 = int_to_ptr.vmem [resolvable:$false] %s3350_s25 }
 0x483   : > { %2342 = vst [vmem:[%s5052_s17 + $0x90] sm:$0xff] %v2188_v60  ;;  %v2194_v25 = vadd.f32 %v2193_v11, %v5043_v23  ;;  %v2195_v54 = vpop.f32.mrb[21].mxu1  ;;  %p3348_p9 = pnand %p3347_p7, %p5499_p0  ;;  %s3352_s12 = scalar_lea.vmem %s3351_s25, 16384 }
 0x484   : > { %2343 = vst [vmem:[%s5052_s17 + $0x98] sm:$0xff] %v2190_v20  ;;  %v2196_v6 = vadd.f32 %v2195_v54, %v5047_v27  ;;  %v2199_v56 = vpop.f32.mrb[22].mxu1  ;;  %p3353_p1 = scmp.lt.s32.totalorder %s5224_s10, %s3351_s25  ;;  %p3354_p13 = scmp.lt.s32.totalorder %s3352_s12, %s3346_s20 }
 0x485   : > { %2344 = vst [vmem:[%s5052_s17 + $0xa0] sm:$0xff] %v2194_v25  ;;  %v2200_v31 = vadd.f32 %v2199_v56, %v5043_v23  ;;  %v2201_v32 = vpop.f32.mrb[23].mxu1  ;;  %p3349_p12 = pneg %p3348_p9 }
 0x486   : > { %2345 = vst [vmem:[%s5052_s17 + $0xa8] sm:$0xff] %v2196_v6  ;;  %v2202_v3 = vadd.f32 %v2201_v32, %v5047_v27  ;;  %p3355_p6 = por %p3354_p13, %p3353_p1 }
 0x487   : > { %2346 = vst [vmem:[%s5052_s17 + $0xb0] sm:$0xff] %v2200_v31  ;;  %v2205_v46 = vpop.f32.mrb[24].mxu1 }
 0x488   : > { %2347 = vst [vmem:[%s5052_s17 + $0xb8] sm:$0xff] %v2202_v3  ;;  %v2206_v15 = vadd.f32 %v2205_v46, %v5043_v23  ;;  %v2207_v43 = vpop.f32.mrb[25].mxu1  ;;  %p3356_p10 = pnand %p3355_p6, %p3349_p12 }
 0x489   : > { %v2208_v16 = vadd.f32 %v2207_v43, %v5047_v27 }
 0x48a   : > { %2348 = vst [vmem:[%s5052_s17 + $0xc0] sm:$0xff] %v2206_v15 }
 0x48b   : > { %2349 = vst [vmem:[%s5052_s17 + $0xc8] sm:$0xff] %v2208_v16 }
 0x48d   : > { %v2211_v24 = vpop.f32.mrb[26].mxu1 }
 0x48e   : > { %v2212_v47 = vadd.f32 %v2211_v24, %v5043_v23  ;;  %v2213_v12 = vpop.f32.mrb[27].mxu1 }
 0x48f   : > { %v2214_v41 = vadd.f32 %v2213_v12, %v5047_v27 }
 0x490   : > { %2350 = vst [vmem:[%s5052_s17 + $0xd0] sm:$0xff] %v2212_v47 }
 0x491   : > { %2351 = vst [vmem:[%s5052_s17 + $0xd8] sm:$0xff] %v2214_v41 }
 0x493   : > { %v2217_v39 = vpop.f32.mrb[28].mxu1 }
 0x494   : > { %v2218_v62 = vadd.f32 %v2217_v39, %v5043_v23  ;;  %v2219_v2 = vpop.f32.mrb[29].mxu1 }
 0x495   : > { %v2220_v61 = vadd.f32 %v2219_v2, %v5047_v27 }
 0x496   : > { %2352 = vst [vmem:[%s5052_s17 + $0xe0] sm:$0xff] %v2218_v62 }
 0x497   : > { %2353 = vst [vmem:[%s5052_s17 + $0xe8] sm:$0xff] %v2220_v61 }
 0x498   : > { %v2223_v1 = vpop.f32.mrb[30].mxu1 }
 0x499   : > { %v2224_v13 = vadd.f32 %v2223_v1, %v5043_v23  ;;  %v2225_v45 = vpop.f32.mrb[31].mxu1 }
 0x49a   : > { %v2226_v35 = vadd.f32 %v2225_v45, %v5047_v27 }
 0x49b   : > { %2354 = vst [vmem:[%s5052_s17 + $0xf0] sm:$0xff] %v2224_v13 }
 0x49c   : > { %2355 = vst [vmem:[%s5052_s17 + $0xf8] sm:$0xff] %v2226_v35  ;;  %v2229_v50 = vpop.f32.mrb[32].mxu1 }
 0x49d   : > { %v2230_v10 = vadd.f32 %v2229_v50, %v5043_v23  ;;  %v2231_v57 = vpop.f32.mrb[33].mxu1 }
 0x49e   : > { %v2232_v17 = vadd.f32 %v2231_v57, %v5047_v27 }
 0x49f   : > { %2356 = vst [vmem:[%s5052_s17 + $0x100] sm:$0xff] %v2230_v10 }
 0x4a0   : > { %2357 = vst [vmem:[%s5052_s17 + $0x108] sm:$0xff] %v2232_v17 }
 0x4a2   : > { %v2235_v5 = vpop.f32.mrb[34].mxu1 }
 0x4a3   : > { %v2236_v8 = vadd.f32 %v2235_v5, %v5043_v23  ;;  %v2237_v9 = vpop.f32.mrb[35].mxu1 }
 0x4a4   : > { %v2238_v59 = vadd.f32 %v2237_v9, %v5047_v27 }
 0x4a5   : > { %2358 = vst [vmem:[%s5052_s17 + $0x110] sm:$0xff] %v2236_v8 }
 0x4a6   : > { %2359 = vst [vmem:[%s5052_s17 + $0x118] sm:$0xff] %v2238_v59 }
 0x4a8   : > { %v2241_v55 = vpop.f32.mrb[36].mxu1 }
 0x4a9   : > { %v2242_v18 = vadd.f32 %v2241_v55, %v5043_v23  ;;  %v2243_v4 = vpop.f32.mrb[37].mxu1 }
 0x4aa   : > { %v2244_v37 = vadd.f32 %v2243_v4, %v5047_v27 }
 0x4ab   : > { %2360 = vst [vmem:[%s5052_s17 + $0x120] sm:$0xff] %v2242_v18 }
 0x4ac   : > { %2361 = vst [vmem:[%s5052_s17 + $0x128] sm:$0xff] %v2244_v37  ;;  %v2247_v48 = vpop.f32.mrb[38].mxu1 }
 0x4ad   : > { %v2248_v28 = vadd.f32 %v2247_v48, %v5043_v23  ;;  %v2249_v30 = vpop.f32.mrb[39].mxu1 }
 0x4ae   : > { %v2250_v51 = vadd.f32 %v2249_v30, %v5047_v27 }
 0x4af   : > { %2362 = vst [vmem:[%s5052_s17 + $0x130] sm:$0xff] %v2248_v28 }
 0x4b0   : > { %2363 = vst [vmem:[%s5052_s17 + $0x138] sm:$0xff] %v2250_v51 }
 0x4b1   : > { %v2253_v42 = vpop.f32.mrb[40].mxu1 }
 0x4b2   : > { %v2254_v36 = vadd.f32 %v2253_v42, %v5043_v23  ;;  %v2255_v14 = vpop.f32.mrb[41].mxu1 }
 0x4b3   : > { %v2256_v0 = vadd.f32 %v2255_v14, %v5047_v27 }
 0x4b4   : > { %2364 = vst [vmem:[%s5052_s17 + $0x140] sm:$0xff] %v2254_v36 }
 0x4b5   : > { %2365 = vst [vmem:[%s5052_s17 + $0x148] sm:$0xff] %v2256_v0  ;;  %v2259_v7 = vpop.f32.mrb[42].mxu1 }
 0x4b6   : > { %v2260_v52 = vadd.f32 %v2259_v7, %v5043_v23  ;;  %v2261_v63 = vpop.f32.mrb[43].mxu1 }
 0x4b7   : > { %v2262_v19 = vadd.f32 %v2261_v63, %v5047_v27 }
 0x4b8   : > { %2366 = vst [vmem:[%s5052_s17 + $0x150] sm:$0xff] %v2260_v52 }
 0x4b9   : > { %2367 = vst [vmem:[%s5052_s17 + $0x158] sm:$0xff] %v2262_v19 }
 0x4bc   : > { %v2265_v53 = vpop.f32.mrb[44].mxu1 }
 0x4bd   : > { %v2266_v40 = vadd.f32 %v2265_v53, %v5043_v23  ;;  %v2267_v29 = vpop.f32.mrb[45].mxu1 }
 0x4be   : > { %v2268_v58 = vadd.f32 %v2267_v29, %v5047_v27 }
 0x4bf   : > { %2368 = vst [vmem:[%s5052_s17 + $0x160] sm:$0xff] %v2266_v40 }
 0x4c0   : > { %2369 = vst [vmem:[%s5052_s17 + $0x168] sm:$0xff] %v2268_v58  ;;  %v2271_v21 = vpop.f32.mrb[46].mxu1 }
 0x4c1   : > { %v2272_v44 = vadd.f32 %v2271_v21, %v5043_v23  ;;  %v2273_v49 = vpop.f32.mrb[47].mxu1 }
 0x4c2   : > { %v2274_v38 = vadd.f32 %v2273_v49, %v5047_v27 }
 0x4c3   : > { %2370 = vst [vmem:[%s5052_s17 + $0x170] sm:$0xff] %v2272_v44 }
 0x4c4   : > { %2371 = vst [vmem:[%s5052_s17 + $0x178] sm:$0xff] %v2274_v38 }
 0x4c5   : > { %v2277_v22 = vpop.f32.mrb[48].mxu1 }
 0x4c6   : > { %v2278_v33 = vadd.f32 %v2277_v22, %v5043_v23  ;;  %v2279_v26 = vpop.f32.mrb[49].mxu1 }
 0x4c7   : > { %v2280_v60 = vadd.f32 %v2279_v26, %v5047_v27 }
 0x4c8   : > { %2372 = vst [vmem:[%s5052_s17 + $0x180] sm:$0xff] %v2278_v33 }
 0x4c9   : > { %2373 = vst [vmem:[%s5052_s17 + $0x188] sm:$0xff] %v2280_v60  ;;  %v2283_v34 = vpop.f32.mrb[50].mxu1 }
 0x4ca   : > { %v2284_v20 = vadd.f32 %v2283_v34, %v5043_v23  ;;  %v2285_v11 = vpop.f32.mrb[51].mxu1 }
 0x4cb   : > { %v2286_v25 = vadd.f32 %v2285_v11, %v5047_v27 }
 0x4cc   : > { %2374 = vst [vmem:[%s5052_s17 + $0x190] sm:$0xff] %v2284_v20 }
 0x4cd   : > { %2375 = vst [vmem:[%s5052_s17 + $0x198] sm:$0xff] %v2286_v25 }
 0x4cf   : > { %v2289_v54 = vpop.f32.mrb[52].mxu1 }
 0x4d0   : > { %v2290_v6 = vadd.f32 %v2289_v54, %v5043_v23  ;;  %v2291_v56 = vpop.f32.mrb[53].mxu1 }
 0x4d1   : > { %v2292_v31 = vadd.f32 %v2291_v56, %v5047_v27 }
 0x4d2   : > { %2376 = vst [vmem:[%s5052_s17 + $0x1a0] sm:$0xff] %v2290_v6 }
 0x4d3   : > { %2377 = vst [vmem:[%s5052_s17 + $0x1a8] sm:$0xff] %v2292_v31 }
 0x4d6   : > { %v2295_v32 = vpop.f32.mrb[54].mxu1 }
 0x4d7   : > { %v2296_v3 = vadd.f32 %v2295_v32, %v5043_v23  ;;  %v2297_v46 = vpop.f32.mrb[55].mxu1 }
 0x4d8   : > { %v2298_v15 = vadd.f32 %v2297_v46, %v5047_v27 }
 0x4d9   : > { %2378 = vst [vmem:[%s5052_s17 + $0x1b0] sm:$0xff] %v2296_v3 }
 0x4da   : > { %2379 = vst [vmem:[%s5052_s17 + $0x1b8] sm:$0xff] %v2298_v15  ;;  %v2301_v43 = vpop.f32.mrb[56].mxu1 }
 0x4db   : > { %v2302_v16 = vadd.f32 %v2301_v43, %v5043_v23  ;;  %v2303_v24 = vpop.f32.mrb[57].mxu1 }
 0x4dc   : > { %v2304_v47 = vadd.f32 %v2303_v24, %v5047_v27 }
 0x4dd   : > { %2380 = vst [vmem:[%s5052_s17 + $0x1c0] sm:$0xff] %v2302_v16 }
 0x4de   : > { %2381 = vst [vmem:[%s5052_s17 + $0x1c8] sm:$0xff] %v2304_v47 }
 0x4e1   : > { %v2307_v12 = vpop.f32.mrb[58].mxu1 }
 0x4e2   : > { %v2308_v41 = vadd.f32 %v2307_v12, %v5043_v23  ;;  %v2309_v39 = vpop.f32.mrb[59].mxu1 }
 0x4e3   : > { %v2310_v62 = vadd.f32 %v2309_v39, %v5047_v27 }
 0x4e4   : > { %2382 = vst [vmem:[%s5052_s17 + $0x1d0] sm:$0xff] %v2308_v41 }
 0x4e5   : > { %2383 = vst [vmem:[%s5052_s17 + $0x1d8] sm:$0xff] %v2310_v62  ;;  %v2313_v2 = vpop.f32.mrb[60].mxu1 }
 0x4e6   : > { %v2314_v61 = vadd.f32 %v2313_v2, %v5043_v23  ;;  %v2315_v1 = vpop.f32.mrb[61].mxu1 }
 0x4e7   : > { %v2316_v13 = vadd.f32 %v2315_v1, %v5047_v27 }
 0x4e8   : > { %2384 = vst [vmem:[%s5052_s17 + $0x1e0] sm:$0xff] %v2314_v61 }
 0x4e9   : > { %2385 = vst [vmem:[%s5052_s17 + $0x1e8] sm:$0xff] %v2316_v13 }
 0x4ea   : > { %v2319_v45 = vpop.f32.mrb[62].mxu1 }
 0x4eb   : > { %v2320_v35 = vadd.f32 %v2319_v45, %v5043_v23  ;;  %v2321_v50 = vpop.f32.mrb[63].mxu1 }
 0x4ec   : > { %v2322_v10 = vadd.f32 %v2321_v50, %v5047_v27 }
 0x4ed   : > { %2386 = vst [vmem:[%s5052_s17 + $0x1f0] sm:$0xff] %v2320_v35 }
 0x4ee   : > { %2387 = vst [vmem:[%s5052_s17 + $0x1f8] sm:$0xff] %v2322_v10 }
 0x4ef   : > { %3359 = shalt.err (!%p3356_p10)
}
 0x4f0   : > { %s3360_s17 = scalar_lea.hbm %s5222_s29, 8192  ;;  %s3364_s7 = scalar_lea.hbm %s5278_s5, 16384 }
 0x4f1   : > { %p3361_p4 = scmp.ne.s32.totalorder %s5222_s29, %s3360_s17  ;;  %p3365_p11 = scmp.lt.u32.totalorder %s5222_s29, %s5278_s5 }
 0x4f2   : > { %p3366_p2 = scmp.lt.u32.totalorder %s3364_s7, %s3360_s17  ;;  %p3368_p7 = scmp.lt.u32.totalorder %s3360_s17, %s5222_s29 }
 0x4f3   : > { %p3362_p5 = pnand %p3361_p4, %p5499_p0 }
 0x4f4   : > { %p3367_p3 = por %p3366_p2, %p3365_p11 }
 0x4f5   : > { %p3363_p8 = pneg %p3362_p5 }
 0x4f6   : > { %p3369_p9 = por %p3368_p7, %p3367_p3 }
 0x4f8   : > { %p3370_p12 = pnand %p3369_p9, %p3363_p8 }
 0x4fa   : > { %3373 = shalt.err (!%p3370_p12)
}
 0x4fb   : > { %2782 = dma.vmem_to_hbm [thread:$0]  (%p5499_p0), %s5224_s10, 8192, %s5222_s29, %s2389_s19, %s3428_s18, %s3428_s18, %s3429_s27  }
 0x4fc PF: > { %s2440_s20 = sand.u32 1, %s3408_s21   ;;  %p5500_p1 = scmp.ne.s32.totalorder %s5354_s28, 0 }
 0x4fd   : > { %p5501_p13 = scmp.ge.s32.totalorder %s3420_s24, 2  ;;  %s2441_s16 = scalar_lea.sflag [#allocation4], %s2440_s20 }
 0x4ff   : > { %p2798_p6 = pnand %p5501_p13, %p5500_p1 }
 0x501   : > { %3399 = dma.done.wait (!%p2798_p6), %s2441_s16, 8192  }
 0x502   : > { %3401 = vsyncadd (!%p2798_p6), %s2441_s16, 4294959104  ;;  %s2450_s9 = scalar_lea.sflag [#allocation10], %s2440_s20 }
 0x503   : > { %3403 = dma.done.wait (!%p2798_p6), %s2450_s9, 8192  }
 0x504   : > { %3405 = vsyncadd (!%p2798_p6), %s2450_s9, 4294959104  ;;  %p24_p0 = scmp.ge.s32.totalorder %s3582_s8, 4   ;;  %s5502_s21 = smov %s3412_s22 }
 0x505   : > { %s5503_s22 = smov %s3416_s23  ;;  %s5504_s23 = smov %s3598_s11 }
 0x506   : > { %s5505_s24 = smov %s3582_s8  ;;  %26 = sbr.rel (!%p24_p0) target bundleno = 8 (0x8), region = 110 }
 0x50d   :  { %2455 = vsyncpa [#allocation3], 1 }
 0x50e   :  { %2457 = vsyncpa [#allocation3 + $0x1], 1 }
 0x50f   :  { %2458 = vsyncpa [#allocation6], 1 }
 0x510   :  { %2459 = vsyncpa [#allocation4], 1 }
 0x511   :  { %2461 = vsyncpa [#allocation4 + $0x1], 1 }
 0x512   :  { %2462 = vsyncpa [#allocation10], 1 }
 0x513   :  { %2464 = vsyncpa [#allocation10 + $0x1], 1 }

</bundles_post_ra>
